<compile_context>
chip_gen: v6e
topology: v6e:2x2x1
jax: 0.10.0
libtpu: 0.0.40
codegen_flags: <defaults>
</compile_context>

<pallas_src>
import numpy as np
import jax
import jax.numpy as jnp
from jax.experimental import pallas as pl
from jax.experimental.pallas import tpu as pltpu


_SQRT_HALF = 0.7071067811865476
_N_BLOCKS = 4            # conv0..conv3 / w0..w3 in the module


def _erf_approx(z):
    # Abramowitz & Stegun 7.1.26 (max abs error ~1.5e-7); the divide goes to
    # the EUP via an approximate reciprocal (error far below the 1e-2 tol).
    a1, a2, a3, a4, a5 = (0.254829592, -0.284496736, 1.421413741,
                          -1.453152027, 1.061405429)
    p = 0.3275911
    sgn = jnp.where(z >= 0.0, 1.0, -1.0)
    az = jnp.abs(z)
    t = pl.reciprocal(1.0 + p * az, approx=True)
    poly = ((((a5 * t + a4) * t + a3) * t + a2) * t + a1) * t
    return sgn * (1.0 - poly * jnp.exp(-az * az))


def _gelu(x):
    # matches torch.nn.functional.gelu (exact, erf-based) within ~1e-4
    return x * 0.5 * (1.0 + _erf_approx(x * _SQRT_HALF))


# ----------------------------------------------------------------------------
# Fused forward: head (feature lift + fc0) -> 4 Fourier blocks -> tail
# ----------------------------------------------------------------------------
def fourier_forward_pallas(x, prep, meta):
    """x: (B, T, 1) -> (B, T, prob_dim); one grid-less pallas_call."""
    B, T, _ = x.shape
    W, K, F, P, NL = meta["W"], meta["K"], meta["F"], meta["P"], meta["NL"]
    BT, BK = B * T, B * K
    C_W0, C_W1, C_W2, C_WC = meta["C_W0"], meta["C_W1"], meta["C_W2"], meta["C_WC"]
    C_B0, C_BC, C_B1, C_B2 = meta["C_B0"], meta["C_BC"], meta["C_B1"], meta["C_B2"]

    assert prep["fwd"].shape == (BT, 4 * BK)
    assert prep["inv"].shape == (4 * BK, BT)
    assert prep["wpack"].shape == (NL, W, W, 4 * BK)

    def kernel(scal_ref, x_ref, fwd_ref, inv_ref, wpack_ref, sw_ref, out_ref):
        # --- scalar parameters from SMEM
        omega = scal_ref[0]
        omega_t = scal_ref[1]
        omega_t2 = scal_ref[2]
        omega_ln = scal_ref[3]

        # --- head: feature lift on a lane-dense (1, B*T) row
        xrow = x_ref[...]                                    # (1, BT)
        f_sin = jnp.sin(omega * xrow)
        f_lin = omega_t * xrow
        f_exp = jnp.exp(-jnp.abs(omega_t2) * xrow)
        f_log = jnp.log(omega_ln * xrow + 1.0)

        # fc0 (amplitude A folded into the weight) as 4 broadcast-FMAs
        h = (sw_ref[0:W, C_W0 + 0:C_W0 + 1] * f_sin
             + sw_ref[0:W, C_W0 + 1:C_W0 + 2] * f_lin
             + sw_ref[0:W, C_W0 + 2:C_W0 + 3] * f_exp
             + sw_ref[0:W, C_W0 + 3:C_W0 + 4] * f_log
             + sw_ref[0:W, C_B0:C_B0 + 1])                   # (W, BT)

        for l in range(NL):
            # forward truncated real DFT (cos & -sin fused, block-diag over
            # batch, columns replicated) -> [xr | xr | xi | xi] : (W, 4*BK)
            xf = jnp.dot(h, fwd_ref[...], preferred_element_type=jnp.float32)

            # per-mode complex channel mix: lane-dense broadcast-FMA over the
            # input channels with weights packed as [wr | wi | -wi | wr]
            acc = wpack_ref[l, 0] * xf[0:1, :]
            for i in range(1, W):
                acc = acc + wpack_ref[l, i] * xf[i:i + 1, :]

            # inverse real DFT: the duplicated-row basis folds the four lane
            # groups of `acc` into o_r/o_i implicitly -> (W, BT) on the MXU
            spec = jnp.dot(acc, inv_ref[...], preferred_element_type=jnp.float32)

            # pointwise 1x1 conv on the MXU + bias
            wc = sw_ref[0:W, C_WC + l * W:C_WC + (l + 1) * W]          # (W, W)
            conv = jnp.dot(wc, h, preferred_element_type=jnp.float32)
            h = spec + conv + sw_ref[0:W, C_BC + l:C_BC + l + 1]
            if l < NL - 1:                                   # GELU after blocks 0..2
                h = _gelu(h)

        # --- tail: fc1 -> GELU -> fc2, channel-major (B*T stays on lanes)
        w1 = sw_ref[0:F, C_W1:C_W1 + W]
        h1 = jnp.dot(w1, h, preferred_element_type=jnp.float32) \
            + sw_ref[0:F, C_B1:C_B1 + 1]
        h1 = _gelu(h1)
        w2 = sw_ref[0:P, C_W2:C_W2 + F]
        out_ref[...] = (jnp.dot(w2, h1, preferred_element_type=jnp.float32)
                        + sw_ref[0:P, C_B2:C_B2 + 1])        # lane-dense store

    x_row = x.reshape(1, BT)                                 # batch packed on lanes
    vmem = pl.BlockSpec(memory_space=pltpu.MemorySpace.VMEM)
    out_ct = pl.pallas_call(
        kernel,
        out_shape=jax.ShapeDtypeStruct((P, BT), jnp.float32),
        in_specs=[
            pl.BlockSpec(memory_space=pltpu.MemorySpace.SMEM),   # 4 scalar params
            vmem,                                                 # x row (1, BT)
            vmem,                                                 # fused fwd DFT basis
            vmem,                                                 # fused inv DFT basis
            vmem,                                                 # spectral weight pack
            vmem,                                                 # small weights/biases
        ],
        out_specs=vmem,
    )(prep["scal"], x_row, prep["fwd"], prep["inv"], prep["wpack"], prep["smallw"])
    # back to the module's (B, T, prob_dim) layout (tiny wrapper-side transpose)
    return jnp.transpose(out_ct.reshape(P, B, T), (1, 2, 0))


# ----------------------------------------------------------------------------
# One-time parameter / DFT-basis packing into 5 lane-dense device arrays
# ----------------------------------------------------------------------------
def preprocess_params(params, B, T, modes):
    W = params["fc0_w"].shape[0]
    F = params["fc1_w"].shape[0]
    P = params["fc2_w"].shape[0]
    NL = len(params["spec_wr"])
    K = modes
    BT, BK = B * T, B * K

    # ---- fused, block-diagonal (over the lane-packed batch) DFT bases
    t = np.arange(T, dtype=np.float64)
    k = np.arange(K, dtype=np.float64)
    ang = 2.0 * np.pi * np.outer(t, k) / T                  # (T, K)
    cosb, msinb = np.cos(ang), -np.sin(ang)
    coef = np.full((K,), 2.0)
    coef[0] = 1.0
    if T % 2 == 0 and K == T // 2 + 1:                      # Nyquist bin (not hit here)
        coef[-1] = 1.0
    icos = (coef[None, :] * np.cos(ang) / T).T              # (K, T)
    imsin = (-coef[None, :] * np.sin(ang) / T).T            # (K, T)

    fwd = np.zeros((BT, 4 * BK), np.float32)                # cols: [cos|cos|-sin|-sin]
    inv_half = np.zeros((2 * BK, BT), np.float32)           # rows: [icos|imsin]
    for b in range(B):
        r0, c0 = b * T, b * K
        fwd[r0:r0 + T, 0 * BK + c0:0 * BK + c0 + K] = cosb
        fwd[r0:r0 + T, 1 * BK + c0:1 * BK + c0 + K] = cosb
        fwd[r0:r0 + T, 2 * BK + c0:2 * BK + c0 + K] = msinb
        fwd[r0:r0 + T, 3 * BK + c0:3 * BK + c0 + K] = msinb
        inv_half[0 * BK + c0:0 * BK + c0 + K, r0:r0 + T] = icos
        inv_half[1 * BK + c0:1 * BK + c0 + K, r0:r0 + T] = imsin
    inv = np.concatenate([inv_half, inv_half], axis=0)      # (4*BK, BT): free o_r/o_i fold

    # ---- spectral mix weights, lane-dense pack [wr | wi | -wi | wr] per (l, i)
    wr = np.stack([np.asarray(w) for w in params["spec_wr"]], axis=0)   # (NL, W, W, K)
    wi = np.stack([np.asarray(w) for w in params["spec_wi"]], axis=0)
    wrB = np.tile(wr, (1, 1, 1, B))                          # replicate over batch lanes
    wiB = np.tile(wi, (1, 1, 1, B))
    wpack = np.ascontiguousarray(
        np.concatenate([wrB, wiB, -wiB, wrB], axis=-1), dtype=np.float32)  # (NL,W,W,4BK)

    # ---- all small dense weights & biases in one lane-dense slab
    scal_np = np.asarray(params["scalars"], dtype=np.float32).reshape(-1)
    amp = scal_np[4]
    C_W0 = 0
    C_W1 = C_W0 + 4
    C_W2 = C_W1 + W
    C_WC = C_W2 + F
    C_B0 = C_WC + NL * W
    C_BC = C_B0 + 1
    C_B1 = C_BC + NL
    C_B2 = C_B1 + 1
    ncol = C_B2 + 1
    ncol_pad = int(np.ceil(max(ncol, 128) / 128.0)) * 128
    rows = max(W, F, P, 8)
    sw = np.zeros((rows, ncol_pad), np.float32)
    sw[0:W, C_W0:C_W0 + 4] = np.asarray(params["fc0_w"]) * amp   # A folded into fc0
    sw[0:F, C_W1:C_W1 + W] = np.asarray(params["fc1_w"])
    sw[0:P, C_W2:C_W2 + F] = np.asarray(params["fc2_w"])
    for l in range(NL):
        sw[0:W, C_WC + l * W:C_WC + (l + 1) * W] = np.asarray(params["conv_w"][l])[:, :, 0]
        sw[0:W, C_BC + l] = np.asarray(params["conv_b"][l])
    sw[0:W, C_B0] = np.asarray(params["fc0_b"])
    sw[0:F, C_B1] = np.asarray(params["fc1_b"])
    sw[0:P, C_B2] = np.asarray(params["fc2_b"])

    prep = {
        "scal": jnp.asarray(scal_np[:4]),                    # omega, omega_t, omega_t2, omega_ln
        "fwd": jnp.asarray(fwd),
        "inv": jnp.asarray(inv),
        "wpack": jnp.asarray(wpack),
        "smallw": jnp.asarray(sw),
    }
    meta = dict(B=B, T=T, W=W, K=K, F=F, P=P, NL=NL,
                C_W0=C_W0, C_W1=C_W1, C_W2=C_W2, C_WC=C_WC,
                C_B0=C_B0, C_BC=C_BC, C_B1=C_B1, C_B2=C_B2)
    return prep, meta


def init_params(key, width, modes, fc_map_dim, prob_dim):
    keys = iter(jax.random.split(key, 32))

    def u(shape, lo, hi):
        return jax.random.uniform(next(keys), shape, minval=lo, maxval=hi,
                                  dtype=jnp.float32)

    p = {}
    # omega, omega_t, omega_t2, omega_ln, A  (same init values as the module)
    p["scalars"] = jnp.array([[1.4938150574984748, 1.0, 1.0, 1.0, 10.0]],
                             dtype=jnp.float32)
    b0 = 1.0 / np.sqrt(4.0)
    p["fc0_w"] = u((width, 4), -b0, b0)               # torch Linear(4, width).weight
    p["fc0_b"] = u((width,), -b0, b0)
    scale = 1.0 / (width * width)
    p["spec_wr"] = [u((width, width, modes), 0.0, 1.0) * scale for _ in range(_N_BLOCKS)]
    p["spec_wi"] = [u((width, width, modes), 0.0, 1.0) * scale for _ in range(_N_BLOCKS)]
    bc = 1.0 / np.sqrt(width)
    p["conv_w"] = [u((width, width, 1), -bc, bc) for _ in range(_N_BLOCKS)]
    p["conv_b"] = [u((width,), -bc, bc) for _ in range(_N_BLOCKS)]
    b1 = 1.0 / np.sqrt(width)
    p["fc1_w"] = u((fc_map_dim, width), -b1, b1)
    p["fc1_b"] = u((fc_map_dim,), -b1, b1)
    b2 = 1.0 / np.sqrt(fc_map_dim)
    p["fc2_w"] = u((prob_dim, fc_map_dim), -b2, b2)
    p["fc2_b"] = u((prob_dim,), -b2, b2)
    return p


# ----------------------------------------------------------------------------
# Pure-JAX reference (rfft/irfft) mirroring the PyTorch forward
# ----------------------------------------------------------------------------
def fourier_forward_reference(x, params, modes):
    B, T, _ = x.shape
    s = params["scalars"][0]
    omega, omega_t, omega_t2, omega_ln, amp = (s[0], s[1], s[2], s[3], s[4])
    f1 = jnp.sin(omega * x)
    f2 = x * omega_t
    f3 = jnp.exp(-jnp.abs(omega_t2) * x)
    f4 = jnp.log(x * omega_ln + 1.0)
    feat = jnp.concatenate([f1, f2, f3, f4], axis=-1) * amp      # (B,T,4)
    h = feat @ params["fc0_w"].T + params["fc0_b"]               # (B,T,C)
    h = jnp.transpose(h, (0, 2, 1))                              # (B,C,T)
    for i in range(_N_BLOCKS):
        wcplx = (params["spec_wr"][i] + 1j * params["spec_wi"][i]).astype(jnp.complex64)
        x_ft = jnp.fft.rfft(h, axis=-1)                          # (B,C,T//2+1)
        prod = jnp.einsum("bix,iox->box", x_ft[:, :, :modes], wcplx)
        out_ft = jnp.zeros(x_ft.shape, dtype=jnp.complex64).at[:, :, :modes].set(prod)
        x1 = jnp.fft.irfft(out_ft, n=T, axis=-1)
        x2 = (jnp.einsum("oi,bit->bot", params["conv_w"][i][:, :, 0], h)
              + params["conv_b"][i][None, :, None])
        h = x1 + x2
        if i < _N_BLOCKS - 1:
            h = jax.nn.gelu(h, approximate=False)
    h = jnp.transpose(h, (0, 2, 1))
    h = jax.nn.gelu(h @ params["fc1_w"].T + params["fc1_b"], approximate=False)
    return h @ params["fc2_w"].T + params["fc2_b"]


if __name__ == "__main__":
    B, T = 2, 64
    WIDTH, MODES, FC_MAP_DIM, PROB_DIM = 16, 16, 32, 2

    key = jax.random.PRNGKey(0)
    kp, kx = jax.random.split(key)
    params = init_params(kp, WIDTH, MODES, FC_MAP_DIM, PROB_DIM)
    # time-like positive input, mirrors config.x of shape (B, T_N, 1)
    x = jax.random.uniform(kx, (B, T, 1), minval=0.0, maxval=2.0, dtype=jnp.float32)

    prep, meta = preprocess_params(params, B, T, MODES)   # one-time packing
    fwd_fn = jax.jit(lambda xx, pp: fourier_forward_pallas(xx, pp, meta))

    out = jax.block_until_ready(fwd_fn(x, prep))

    assert out.shape == (B, T, PROB_DIM)
    assert bool(jnp.all(jnp.isfinite(out)))

    ref = fourier_forward_reference(x, params, MODES)
    err = float(jnp.max(jnp.abs(out - ref)))
    scale = float(jnp.max(jnp.abs(ref)))
    assert err <= 1e-2 + 1e-2 * scale, f"mismatch: max abs err {err} (ref scale {scale})"

    print("KERNEL_OK")
</pallas_src>

<mosaic_0001>
module attributes {stable_mosaic.version = 11 : i64} {
  func.func @kernel(%arg0: memref<4xf32, #tpu.memory_space<smem>>, %arg1: memref<1x128xf32, #tpu.memory_space<vmem>>, %arg2: memref<128x128xf32, #tpu.memory_space<vmem>>, %arg3: memref<128x128xf32, #tpu.memory_space<vmem>>, %arg4: memref<4x16x16x128xf32, #tpu.memory_space<vmem>>, %arg5: memref<32x128xf32, #tpu.memory_space<vmem>>, %arg6: memref<2x128xf32, #tpu.memory_space<vmem>>) attributes {dimension_semantics = [], scalar_prefetch = 0 : i64, scratch_operands = 0 : i64, tpu.core_type = #tpu.core_type<tc>} {
    %c0 = arith.constant 0 : index
    %0 = memref.load %arg0[%c0] : memref<4xf32, #tpu.memory_space<smem>>
    %c1 = arith.constant 1 : index
    %1 = memref.load %arg0[%c1] : memref<4xf32, #tpu.memory_space<smem>>
    %c2 = arith.constant 2 : index
    %2 = memref.load %arg0[%c2] : memref<4xf32, #tpu.memory_space<smem>>
    %c3 = arith.constant 3 : index
    %3 = memref.load %arg0[%c3] : memref<4xf32, #tpu.memory_space<smem>>
    %c0_0 = arith.constant 0 : index
    %c0_1 = arith.constant 0 : index
    %4 = vector.load %arg1[%c0_0, %c0_1] : memref<1x128xf32, #tpu.memory_space<vmem>>, vector<1x128xf32>
    %5 = vector.broadcast %0 : f32 to vector<1x128xf32>
    %6 = arith.mulf %5, %4 : vector<1x128xf32>
    %7 = math.sin %6 : vector<1x128xf32>
    %8 = vector.broadcast %1 : f32 to vector<1x128xf32>
    %9 = arith.mulf %8, %4 : vector<1x128xf32>
    %10 = math.absf %2 : f32
    %cst = arith.constant 0.000000e+00 : f32
    %11 = arith.subf %cst, %10 : f32
    %12 = vector.broadcast %11 : f32 to vector<1x128xf32>
    %13 = arith.mulf %12, %4 : vector<1x128xf32>
    %14 = math.exp %13 : vector<1x128xf32>
    %15 = vector.broadcast %3 : f32 to vector<1x128xf32>
    %16 = arith.mulf %15, %4 : vector<1x128xf32>
    %cst_2 = arith.constant 1.000000e+00 : f32
    %17 = vector.broadcast %cst_2 : f32 to vector<1x128xf32>
    %18 = arith.addf %16, %17 : vector<1x128xf32>
    %19 = math.log %18 : vector<1x128xf32>
    %c0_3 = arith.constant 0 : index
    %c0_4 = arith.constant 0 : index
    %20 = vector.load %arg5[%c0_3, %c0_4] : memref<32x128xf32, #tpu.memory_space<vmem>>, vector<16x1xf32>
    %21 = vector.broadcast %20 : vector<16x1xf32> to vector<16x128xf32>
    %22 = vector.broadcast %7 : vector<1x128xf32> to vector<16x128xf32>
    %23 = arith.mulf %21, %22 : vector<16x128xf32>
    %c0_5 = arith.constant 0 : index
    %c1_6 = arith.constant 1 : index
    %24 = vector.load %arg5[%c0_5, %c1_6] : memref<32x128xf32, #tpu.memory_space<vmem>>, vector<16x1xf32>
    %25 = vector.broadcast %24 : vector<16x1xf32> to vector<16x128xf32>
    %26 = vector.broadcast %9 : vector<1x128xf32> to vector<16x128xf32>
    %27 = arith.mulf %25, %26 : vector<16x128xf32>
    %28 = arith.addf %23, %27 : vector<16x128xf32>
    %c0_7 = arith.constant 0 : index
    %c2_8 = arith.constant 2 : index
    %29 = vector.load %arg5[%c0_7, %c2_8] : memref<32x128xf32, #tpu.memory_space<vmem>>, vector<16x1xf32>
    %30 = vector.broadcast %29 : vector<16x1xf32> to vector<16x128xf32>
    %31 = vector.broadcast %14 : vector<1x128xf32> to vector<16x128xf32>
    %32 = arith.mulf %30, %31 : vector<16x128xf32>
    %33 = arith.addf %28, %32 : vector<16x128xf32>
    %c0_9 = arith.constant 0 : index
    %c3_10 = arith.constant 3 : index
    %34 = vector.load %arg5[%c0_9, %c3_10] : memref<32x128xf32, #tpu.memory_space<vmem>>, vector<16x1xf32>
    %35 = vector.broadcast %34 : vector<16x1xf32> to vector<16x128xf32>
    %36 = vector.broadcast %19 : vector<1x128xf32> to vector<16x128xf32>
    %37 = arith.mulf %35, %36 : vector<16x128xf32>
    %38 = arith.addf %33, %37 : vector<16x128xf32>
    %c0_11 = arith.constant 0 : index
    %c116 = arith.constant 116 : index
    %39 = vector.load %arg5[%c0_11, %c116] : memref<32x128xf32, #tpu.memory_space<vmem>>, vector<16x1xf32>
    %40 = vector.broadcast %39 : vector<16x1xf32> to vector<16x128xf32>
    %41 = arith.addf %38, %40 : vector<16x128xf32>
    %c0_12 = arith.constant 0 : index
    %c0_13 = arith.constant 0 : index
    %42 = vector.load %arg2[%c0_12, %c0_13] : memref<128x128xf32, #tpu.memory_space<vmem>>, vector<128x128xf32>
    %cst_14 = arith.constant dense<0.000000e+00> : vector<16x128xf32>
    %43 = tpu.matmul %41, %42, %cst_14 {dimension_numbers = #tpu.dot_dimension_numbers<[1], [0], [0], [1], [0, 0, 1, 1], [], []>} : vector<16x128xf32>, vector<128x128xf32>, vector<16x128xf32> -> vector<16x128xf32>
    %c0_15 = arith.constant 0 : index
    %c0_16 = arith.constant 0 : index
    %c0_17 = arith.constant 0 : index
    %c0_18 = arith.constant 0 : index
    %44 = vector.load %arg4[%c0_15, %c0_16, %c0_17, %c0_18] : memref<4x16x16x128xf32, #tpu.memory_space<vmem>>, vector<1x1x16x128xf32>
    %45 = vector.shape_cast %44 : vector<1x1x16x128xf32> to vector<16x128xf32>
    %46 = vector.extract_strided_slice %43 {offsets = [0, 0], sizes = [1, 128], strides = [1, 1]} : vector<16x128xf32> to vector<1x128xf32>
    %47 = vector.broadcast %46 : vector<1x128xf32> to vector<16x128xf32>
    %48 = arith.mulf %45, %47 : vector<16x128xf32>
    %c0_19 = arith.constant 0 : index
    %c1_20 = arith.constant 1 : index
    %c0_21 = arith.constant 0 : index
    %c0_22 = arith.constant 0 : index
    %49 = vector.load %arg4[%c0_19, %c1_20, %c0_21, %c0_22] : memref<4x16x16x128xf32, #tpu.memory_space<vmem>>, vector<1x1x16x128xf32>
    %50 = vector.shape_cast %49 : vector<1x1x16x128xf32> to vector<16x128xf32>
    %51 = vector.extract_strided_slice %43 {offsets = [1, 0], sizes = [1, 128], strides = [1, 1]} : vector<16x128xf32> to vector<1x128xf32>
    %52 = vector.broadcast %51 : vector<1x128xf32> to vector<16x128xf32>
    %53 = arith.mulf %50, %52 : vector<16x128xf32>
    %54 = arith.addf %48, %53 : vector<16x128xf32>
    %c0_23 = arith.constant 0 : index
    %c2_24 = arith.constant 2 : index
    %c0_25 = arith.constant 0 : index
    %c0_26 = arith.constant 0 : index
    %55 = vector.load %arg4[%c0_23, %c2_24, %c0_25, %c0_26] : memref<4x16x16x128xf32, #tpu.memory_space<vmem>>, vector<1x1x16x128xf32>
    %56 = vector.shape_cast %55 : vector<1x1x16x128xf32> to vector<16x128xf32>
    %57 = vector.extract_strided_slice %43 {offsets = [2, 0], sizes = [1, 128], strides = [1, 1]} : vector<16x128xf32> to vector<1x128xf32>
    %58 = vector.broadcast %57 : vector<1x128xf32> to vector<16x128xf32>
    %59 = arith.mulf %56, %58 : vector<16x128xf32>
    %60 = arith.addf %54, %59 : vector<16x128xf32>
    %c0_27 = arith.constant 0 : index
    %c3_28 = arith.constant 3 : index
    %c0_29 = arith.constant 0 : index
    %c0_30 = arith.constant 0 : index
    %61 = vector.load %arg4[%c0_27, %c3_28, %c0_29, %c0_30] : memref<4x16x16x128xf32, #tpu.memory_space<vmem>>, vector<1x1x16x128xf32>
    %62 = vector.shape_cast %61 : vector<1x1x16x128xf32> to vector<16x128xf32>
    %63 = vector.extract_strided_slice %43 {offsets = [3, 0], sizes = [1, 128], strides = [1, 1]} : vector<16x128xf32> to vector<1x128xf32>
    %64 = vector.broadcast %63 : vector<1x128xf32> to vector<16x128xf32>
    %65 = arith.mulf %62, %64 : vector<16x128xf32>
    %66 = arith.addf %60, %65 : vector<16x128xf32>
    %c0_31 = arith.constant 0 : index
    %c4 = arith.constant 4 : index
    %c0_32 = arith.constant 0 : index
    %c0_33 = arith.constant 0 : index
    %67 = vector.load %arg4[%c0_31, %c4, %c0_32, %c0_33] : memref<4x16x16x128xf32, #tpu.memory_space<vmem>>, vector<1x1x16x128xf32>
    %68 = vector.shape_cast %67 : vector<1x1x16x128xf32> to vector<16x128xf32>
    %69 = vector.extract_strided_slice %43 {offsets = [4, 0], sizes = [1, 128], strides = [1, 1]} : vector<16x128xf32> to vector<1x128xf32>
    %70 = vector.broadcast %69 : vector<1x128xf32> to vector<16x128xf32>
    %71 = arith.mulf %68, %70 : vector<16x128xf32>
    %72 = arith.addf %66, %71 : vector<16x128xf32>
    %c0_34 = arith.constant 0 : index
    %c5 = arith.constant 5 : index
    %c0_35 = arith.constant 0 : index
    %c0_36 = arith.constant 0 : index
    %73 = vector.load %arg4[%c0_34, %c5, %c0_35, %c0_36] : memref<4x16x16x128xf32, #tpu.memory_space<vmem>>, vector<1x1x16x128xf32>
    %74 = vector.shape_cast %73 : vector<1x1x16x128xf32> to vector<16x128xf32>
    %75 = vector.extract_strided_slice %43 {offsets = [5, 0], sizes = [1, 128], strides = [1, 1]} : vector<16x128xf32> to vector<1x128xf32>
    %76 = vector.broadcast %75 : vector<1x128xf32> to vector<16x128xf32>
    %77 = arith.mulf %74, %76 : vector<16x128xf32>
    %78 = arith.addf %72, %77 : vector<16x128xf32>
    %c0_37 = arith.constant 0 : index
    %c6 = arith.constant 6 : index
    %c0_38 = arith.constant 0 : index
    %c0_39 = arith.constant 0 : index
    %79 = vector.load %arg4[%c0_37, %c6, %c0_38, %c0_39] : memref<4x16x16x128xf32, #tpu.memory_space<vmem>>, vector<1x1x16x128xf32>
    %80 = vector.shape_cast %79 : vector<1x1x16x128xf32> to vector<16x128xf32>
    %81 = vector.extract_strided_slice %43 {offsets = [6, 0], sizes = [1, 128], strides = [1, 1]} : vector<16x128xf32> to vector<1x128xf32>
    %82 = vector.broadcast %81 : vector<1x128xf32> to vector<16x128xf32>
    %83 = arith.mulf %80, %82 : vector<16x128xf32>
    %84 = arith.addf %78, %83 : vector<16x128xf32>
    %c0_40 = arith.constant 0 : index
    %c7 = arith.constant 7 : index
    %c0_41 = arith.constant 0 : index
    %c0_42 = arith.constant 0 : index
    %85 = vector.load %arg4[%c0_40, %c7, %c0_41, %c0_42] : memref<4x16x16x128xf32, #tpu.memory_space<vmem>>, vector<1x1x16x128xf32>
    %86 = vector.shape_cast %85 : vector<1x1x16x128xf32> to vector<16x128xf32>
    %87 = vector.extract_strided_slice %43 {offsets = [7, 0], sizes = [1, 128], strides = [1, 1]} : vector<16x128xf32> to vector<1x128xf32>
    %88 = vector.broadcast %87 : vector<1x128xf32> to vector<16x128xf32>
    %89 = arith.mulf %86, %88 : vector<16x128xf32>
    %90 = arith.addf %84, %89 : vector<16x128xf32>
    %c0_43 = arith.constant 0 : index
    %c8 = arith.constant 8 : index
    %c0_44 = arith.constant 0 : index
    %c0_45 = arith.constant 0 : index
    %91 = vector.load %arg4[%c0_43, %c8, %c0_44, %c0_45] : memref<4x16x16x128xf32, #tpu.memory_space<vmem>>, vector<1x1x16x128xf32>
    %92 = vector.shape_cast %91 : vector<1x1x16x128xf32> to vector<16x128xf32>
    %93 = vector.extract_strided_slice %43 {offsets = [8, 0], sizes = [1, 128], strides = [1, 1]} : vector<16x128xf32> to vector<1x128xf32>
    %94 = vector.broadcast %93 : vector<1x128xf32> to vector<16x128xf32>
    %95 = arith.mulf %92, %94 : vector<16x128xf32>
    %96 = arith.addf %90, %95 : vector<16x128xf32>
    %c0_46 = arith.constant 0 : index
    %c9 = arith.constant 9 : index
    %c0_47 = arith.constant 0 : index
    %c0_48 = arith.constant 0 : index
    %97 = vector.load %arg4[%c0_46, %c9, %c0_47, %c0_48] : memref<4x16x16x128xf32, #tpu.memory_space<vmem>>, vector<1x1x16x128xf32>
    %98 = vector.shape_cast %97 : vector<1x1x16x128xf32> to vector<16x128xf32>
    %99 = vector.extract_strided_slice %43 {offsets = [9, 0], sizes = [1, 128], strides = [1, 1]} : vector<16x128xf32> to vector<1x128xf32>
    %100 = vector.broadcast %99 : vector<1x128xf32> to vector<16x128xf32>
    %101 = arith.mulf %98, %100 : vector<16x128xf32>
    %102 = arith.addf %96, %101 : vector<16x128xf32>
    %c0_49 = arith.constant 0 : index
    %c10 = arith.constant 10 : index
    %c0_50 = arith.constant 0 : index
    %c0_51 = arith.constant 0 : index
    %103 = vector.load %arg4[%c0_49, %c10, %c0_50, %c0_51] : memref<4x16x16x128xf32, #tpu.memory_space<vmem>>, vector<1x1x16x128xf32>
    %104 = vector.shape_cast %103 : vector<1x1x16x128xf32> to vector<16x128xf32>
    %105 = vector.extract_strided_slice %43 {offsets = [10, 0], sizes = [1, 128], strides = [1, 1]} : vector<16x128xf32> to vector<1x128xf32>
    %106 = vector.broadcast %105 : vector<1x128xf32> to vector<16x128xf32>
    %107 = arith.mulf %104, %106 : vector<16x128xf32>
    %108 = arith.addf %102, %107 : vector<16x128xf32>
    %c0_52 = arith.constant 0 : index
    %c11 = arith.constant 11 : index
    %c0_53 = arith.constant 0 : index
    %c0_54 = arith.constant 0 : index
    %109 = vector.load %arg4[%c0_52, %c11, %c0_53, %c0_54] : memref<4x16x16x128xf32, #tpu.memory_space<vmem>>, vector<1x1x16x128xf32>
    %110 = vector.shape_cast %109 : vector<1x1x16x128xf32> to vector<16x128xf32>
    %111 = vector.extract_strided_slice %43 {offsets = [11, 0], sizes = [1, 128], strides = [1, 1]} : vector<16x128xf32> to vector<1x128xf32>
    %112 = vector.broadcast %111 : vector<1x128xf32> to vector<16x128xf32>
    %113 = arith.mulf %110, %112 : vector<16x128xf32>
    %114 = arith.addf %108, %113 : vector<16x128xf32>
    %c0_55 = arith.constant 0 : index
    %c12 = arith.constant 12 : index
    %c0_56 = arith.constant 0 : index
    %c0_57 = arith.constant 0 : index
    %115 = vector.load %arg4[%c0_55, %c12, %c0_56, %c0_57] : memref<4x16x16x128xf32, #tpu.memory_space<vmem>>, vector<1x1x16x128xf32>
    %116 = vector.shape_cast %115 : vector<1x1x16x128xf32> to vector<16x128xf32>
    %117 = vector.extract_strided_slice %43 {offsets = [12, 0], sizes = [1, 128], strides = [1, 1]} : vector<16x128xf32> to vector<1x128xf32>
    %118 = vector.broadcast %117 : vector<1x128xf32> to vector<16x128xf32>
    %119 = arith.mulf %116, %118 : vector<16x128xf32>
    %120 = arith.addf %114, %119 : vector<16x128xf32>
    %c0_58 = arith.constant 0 : index
    %c13 = arith.constant 13 : index
    %c0_59 = arith.constant 0 : index
    %c0_60 = arith.constant 0 : index
    %121 = vector.load %arg4[%c0_58, %c13, %c0_59, %c0_60] : memref<4x16x16x128xf32, #tpu.memory_space<vmem>>, vector<1x1x16x128xf32>
    %122 = vector.shape_cast %121 : vector<1x1x16x128xf32> to vector<16x128xf32>
    %123 = vector.extract_strided_slice %43 {offsets = [13, 0], sizes = [1, 128], strides = [1, 1]} : vector<16x128xf32> to vector<1x128xf32>
    %124 = vector.broadcast %123 : vector<1x128xf32> to vector<16x128xf32>
    %125 = arith.mulf %122, %124 : vector<16x128xf32>
    %126 = arith.addf %120, %125 : vector<16x128xf32>
    %c0_61 = arith.constant 0 : index
    %c14 = arith.constant 14 : index
    %c0_62 = arith.constant 0 : index
    %c0_63 = arith.constant 0 : index
    %127 = vector.load %arg4[%c0_61, %c14, %c0_62, %c0_63] : memref<4x16x16x128xf32, #tpu.memory_space<vmem>>, vector<1x1x16x128xf32>
    %128 = vector.shape_cast %127 : vector<1x1x16x128xf32> to vector<16x128xf32>
    %129 = vector.extract_strided_slice %43 {offsets = [14, 0], sizes = [1, 128], strides = [1, 1]} : vector<16x128xf32> to vector<1x128xf32>
    %130 = vector.broadcast %129 : vector<1x128xf32> to vector<16x128xf32>
    %131 = arith.mulf %128, %130 : vector<16x128xf32>
    %132 = arith.addf %126, %131 : vector<16x128xf32>
    %c0_64 = arith.constant 0 : index
    %c15 = arith.constant 15 : index
    %c0_65 = arith.constant 0 : index
    %c0_66 = arith.constant 0 : index
    %133 = vector.load %arg4[%c0_64, %c15, %c0_65, %c0_66] : memref<4x16x16x128xf32, #tpu.memory_space<vmem>>, vector<1x1x16x128xf32>
    %134 = vector.shape_cast %133 : vector<1x1x16x128xf32> to vector<16x128xf32>
    %135 = vector.extract_strided_slice %43 {offsets = [15, 0], sizes = [1, 128], strides = [1, 1]} : vector<16x128xf32> to vector<1x128xf32>
    %136 = vector.broadcast %135 : vector<1x128xf32> to vector<16x128xf32>
    %137 = arith.mulf %134, %136 : vector<16x128xf32>
    %138 = arith.addf %132, %137 : vector<16x128xf32>
    %c0_67 = arith.constant 0 : index
    %c0_68 = arith.constant 0 : index
    %139 = vector.load %arg3[%c0_67, %c0_68] : memref<128x128xf32, #tpu.memory_space<vmem>>, vector<128x128xf32>
    %cst_69 = arith.constant dense<0.000000e+00> : vector<16x128xf32>
    %140 = tpu.matmul %138, %139, %cst_69 {dimension_numbers = #tpu.dot_dimension_numbers<[1], [0], [0], [1], [0, 0, 1, 1], [], []>} : vector<16x128xf32>, vector<128x128xf32>, vector<16x128xf32> -> vector<16x128xf32>
    %c0_70 = arith.constant 0 : index
    %c52 = arith.constant 52 : index
    %141 = vector.load %arg5[%c0_70, %c52] : memref<32x128xf32, #tpu.memory_space<vmem>>, vector<16x16xf32>
    %cst_71 = arith.constant dense<0.000000e+00> : vector<16x128xf32>
    %142 = tpu.matmul %141, %41, %cst_71 {dimension_numbers = #tpu.dot_dimension_numbers<[1], [0], [0], [1], [0, 0, 1, 1], [], []>} : vector<16x16xf32>, vector<16x128xf32>, vector<16x128xf32> -> vector<16x128xf32>
    %143 = arith.addf %140, %142 : vector<16x128xf32>
    %c0_72 = arith.constant 0 : index
    %c117 = arith.constant 117 : index
    %144 = vector.load %arg5[%c0_72, %c117] : memref<32x128xf32, #tpu.memory_space<vmem>>, vector<16x1xf32>
    %145 = vector.broadcast %144 : vector<16x1xf32> to vector<16x128xf32>
    %146 = arith.addf %143, %145 : vector<16x128xf32>
    %cst_73 = arith.constant 5.000000e-01 : f32
    %147 = vector.broadcast %cst_73 : f32 to vector<16x128xf32>
    %148 = arith.mulf %146, %147 : vector<16x128xf32>
    %cst_74 = arith.constant 0.707106769 : f32
    %149 = vector.broadcast %cst_74 : f32 to vector<16x128xf32>
    %150 = arith.mulf %146, %149 : vector<16x128xf32>
    %cst_75 = arith.constant 0.000000e+00 : f32
    %151 = vector.broadcast %cst_75 : f32 to vector<16x128xf32>
    %152 = arith.cmpf oge, %150, %151 : vector<16x128xf32>
    %cst_76 = arith.constant 1.000000e+00 : f32
    %cst_77 = arith.constant -1.000000e+00 : f32
    %153 = vector.broadcast %cst_76 : f32 to vector<16x128xf32>
    %154 = vector.broadcast %cst_77 : f32 to vector<16x128xf32>
    %155 = arith.select %152, %153, %154 : vector<16x128xi1>, vector<16x128xf32>
    %156 = math.absf %150 : vector<16x128xf32>
    %cst_78 = arith.constant 0.327591091 : f32
    %157 = vector.broadcast %cst_78 : f32 to vector<16x128xf32>
    %158 = arith.mulf %157, %156 : vector<16x128xf32>
    %cst_79 = arith.constant 1.000000e+00 : f32
    %159 = vector.broadcast %cst_79 : f32 to vector<16x128xf32>
    %160 = arith.addf %159, %158 : vector<16x128xf32>
    %161 = tpu.reciprocal %160 {approx = true} : vector<16x128xf32> -> vector<16x128xf32>
    %cst_80 = arith.constant 1.06140542 : f32
    %162 = vector.broadcast %cst_80 : f32 to vector<16x128xf32>
    %163 = arith.mulf %162, %161 : vector<16x128xf32>
    %cst_81 = arith.constant -1.45315206 : f32
    %164 = vector.broadcast %cst_81 : f32 to vector<16x128xf32>
    %165 = arith.addf %163, %164 : vector<16x128xf32>
    %166 = arith.mulf %165, %161 : vector<16x128xf32>
    %cst_82 = arith.constant 1.42141378 : f32
    %167 = vector.broadcast %cst_82 : f32 to vector<16x128xf32>
    %168 = arith.addf %166, %167 : vector<16x128xf32>
    %169 = arith.mulf %168, %161 : vector<16x128xf32>
    %cst_83 = arith.constant -0.284496725 : f32
    %170 = vector.broadcast %cst_83 : f32 to vector<16x128xf32>
    %171 = arith.addf %169, %170 : vector<16x128xf32>
    %172 = arith.mulf %171, %161 : vector<16x128xf32>
    %cst_84 = arith.constant 0.254829586 : f32
    %173 = vector.broadcast %cst_84 : f32 to vector<16x128xf32>
    %174 = arith.addf %172, %173 : vector<16x128xf32>
    %175 = arith.mulf %174, %161 : vector<16x128xf32>
    %cst_85 = arith.constant 0.000000e+00 : f32
    %176 = vector.broadcast %cst_85 : f32 to vector<16x128xf32>
    %177 = arith.subf %176, %156 : vector<16x128xf32>
    %178 = arith.mulf %177, %156 : vector<16x128xf32>
    %179 = math.exp %178 : vector<16x128xf32>
    %180 = arith.mulf %175, %179 : vector<16x128xf32>
    %cst_86 = arith.constant 1.000000e+00 : f32
    %181 = vector.broadcast %cst_86 : f32 to vector<16x128xf32>
    %182 = arith.subf %181, %180 : vector<16x128xf32>
    %183 = arith.mulf %155, %182 : vector<16x128xf32>
    %cst_87 = arith.constant 1.000000e+00 : f32
    %184 = vector.broadcast %cst_87 : f32 to vector<16x128xf32>
    %185 = arith.addf %184, %183 : vector<16x128xf32>
    %186 = arith.mulf %148, %185 : vector<16x128xf32>
    %c0_88 = arith.constant 0 : index
    %c0_89 = arith.constant 0 : index
    %187 = vector.load %arg2[%c0_88, %c0_89] : memref<128x128xf32, #tpu.memory_space<vmem>>, vector<128x128xf32>
    %cst_90 = arith.constant dense<0.000000e+00> : vector<16x128xf32>
    %188 = tpu.matmul %186, %187, %cst_90 {dimension_numbers = #tpu.dot_dimension_numbers<[1], [0], [0], [1], [0, 0, 1, 1], [], []>} : vector<16x128xf32>, vector<128x128xf32>, vector<16x128xf32> -> vector<16x128xf32>
    %c1_91 = arith.constant 1 : index
    %c0_92 = arith.constant 0 : index
    %c0_93 = arith.constant 0 : index
    %c0_94 = arith.constant 0 : index
    %189 = vector.load %arg4[%c1_91, %c0_92, %c0_93, %c0_94] : memref<4x16x16x128xf32, #tpu.memory_space<vmem>>, vector<1x1x16x128xf32>
    %190 = vector.shape_cast %189 : vector<1x1x16x128xf32> to vector<16x128xf32>
    %191 = vector.extract_strided_slice %188 {offsets = [0, 0], sizes = [1, 128], strides = [1, 1]} : vector<16x128xf32> to vector<1x128xf32>
    %192 = vector.broadcast %191 : vector<1x128xf32> to vector<16x128xf32>
    %193 = arith.mulf %190, %192 : vector<16x128xf32>
    %c1_95 = arith.constant 1 : index
    %c1_96 = arith.constant 1 : index
    %c0_97 = arith.constant 0 : index
    %c0_98 = arith.constant 0 : index
    %194 = vector.load %arg4[%c1_95, %c1_96, %c0_97, %c0_98] : memref<4x16x16x128xf32, #tpu.memory_space<vmem>>, vector<1x1x16x128xf32>
    %195 = vector.shape_cast %194 : vector<1x1x16x128xf32> to vector<16x128xf32>
    %196 = vector.extract_strided_slice %188 {offsets = [1, 0], sizes = [1, 128], strides = [1, 1]} : vector<16x128xf32> to vector<1x128xf32>
    %197 = vector.broadcast %196 : vector<1x128xf32> to vector<16x128xf32>
    %198 = arith.mulf %195, %197 : vector<16x128xf32>
    %199 = arith.addf %193, %198 : vector<16x128xf32>
    %c1_99 = arith.constant 1 : index
    %c2_100 = arith.constant 2 : index
    %c0_101 = arith.constant 0 : index
    %c0_102 = arith.constant 0 : index
    %200 = vector.load %arg4[%c1_99, %c2_100, %c0_101, %c0_102] : memref<4x16x16x128xf32, #tpu.memory_space<vmem>>, vector<1x1x16x128xf32>
    %201 = vector.shape_cast %200 : vector<1x1x16x128xf32> to vector<16x128xf32>
    %202 = vector.extract_strided_slice %188 {offsets = [2, 0], sizes = [1, 128], strides = [1, 1]} : vector<16x128xf32> to vector<1x128xf32>
    %203 = vector.broadcast %202 : vector<1x128xf32> to vector<16x128xf32>
    %204 = arith.mulf %201, %203 : vector<16x128xf32>
    %205 = arith.addf %199, %204 : vector<16x128xf32>
    %c1_103 = arith.constant 1 : index
    %c3_104 = arith.constant 3 : index
    %c0_105 = arith.constant 0 : index
    %c0_106 = arith.constant 0 : index
    %206 = vector.load %arg4[%c1_103, %c3_104, %c0_105, %c0_106] : memref<4x16x16x128xf32, #tpu.memory_space<vmem>>, vector<1x1x16x128xf32>
    %207 = vector.shape_cast %206 : vector<1x1x16x128xf32> to vector<16x128xf32>
    %208 = vector.extract_strided_slice %188 {offsets = [3, 0], sizes = [1, 128], strides = [1, 1]} : vector<16x128xf32> to vector<1x128xf32>
    %209 = vector.broadcast %208 : vector<1x128xf32> to vector<16x128xf32>
    %210 = arith.mulf %207, %209 : vector<16x128xf32>
    %211 = arith.addf %205, %210 : vector<16x128xf32>
    %c1_107 = arith.constant 1 : index
    %c4_108 = arith.constant 4 : index
    %c0_109 = arith.constant 0 : index
    %c0_110 = arith.constant 0 : index
    %212 = vector.load %arg4[%c1_107, %c4_108, %c0_109, %c0_110] : memref<4x16x16x128xf32, #tpu.memory_space<vmem>>, vector<1x1x16x128xf32>
    %213 = vector.shape_cast %212 : vector<1x1x16x128xf32> to vector<16x128xf32>
    %214 = vector.extract_strided_slice %188 {offsets = [4, 0], sizes = [1, 128], strides = [1, 1]} : vector<16x128xf32> to vector<1x128xf32>
    %215 = vector.broadcast %214 : vector<1x128xf32> to vector<16x128xf32>
    %216 = arith.mulf %213, %215 : vector<16x128xf32>
    %217 = arith.addf %211, %216 : vector<16x128xf32>
    %c1_111 = arith.constant 1 : index
    %c5_112 = arith.constant 5 : index
    %c0_113 = arith.constant 0 : index
    %c0_114 = arith.constant 0 : index
    %218 = vector.load %arg4[%c1_111, %c5_112, %c0_113, %c0_114] : memref<4x16x16x128xf32, #tpu.memory_space<vmem>>, vector<1x1x16x128xf32>
    %219 = vector.shape_cast %218 : vector<1x1x16x128xf32> to vector<16x128xf32>
    %220 = vector.extract_strided_slice %188 {offsets = [5, 0], sizes = [1, 128], strides = [1, 1]} : vector<16x128xf32> to vector<1x128xf32>
    %221 = vector.broadcast %220 : vector<1x128xf32> to vector<16x128xf32>
    %222 = arith.mulf %219, %221 : vector<16x128xf32>
    %223 = arith.addf %217, %222 : vector<16x128xf32>
    %c1_115 = arith.constant 1 : index
    %c6_116 = arith.constant 6 : index
    %c0_117 = arith.constant 0 : index
    %c0_118 = arith.constant 0 : index
    %224 = vector.load %arg4[%c1_115, %c6_116, %c0_117, %c0_118] : memref<4x16x16x128xf32, #tpu.memory_space<vmem>>, vector<1x1x16x128xf32>
    %225 = vector.shape_cast %224 : vector<1x1x16x128xf32> to vector<16x128xf32>
    %226 = vector.extract_strided_slice %188 {offsets = [6, 0], sizes = [1, 128], strides = [1, 1]} : vector<16x128xf32> to vector<1x128xf32>
    %227 = vector.broadcast %226 : vector<1x128xf32> to vector<16x128xf32>
    %228 = arith.mulf %225, %227 : vector<16x128xf32>
    %229 = arith.addf %223, %228 : vector<16x128xf32>
    %c1_119 = arith.constant 1 : index
    %c7_120 = arith.constant 7 : index
    %c0_121 = arith.constant 0 : index
    %c0_122 = arith.constant 0 : index
    %230 = vector.load %arg4[%c1_119, %c7_120, %c0_121, %c0_122] : memref<4x16x16x128xf32, #tpu.memory_space<vmem>>, vector<1x1x16x128xf32>
    %231 = vector.shape_cast %230 : vector<1x1x16x128xf32> to vector<16x128xf32>
    %232 = vector.extract_strided_slice %188 {offsets = [7, 0], sizes = [1, 128], strides = [1, 1]} : vector<16x128xf32> to vector<1x128xf32>
    %233 = vector.broadcast %232 : vector<1x128xf32> to vector<16x128xf32>
    %234 = arith.mulf %231, %233 : vector<16x128xf32>
    %235 = arith.addf %229, %234 : vector<16x128xf32>
    %c1_123 = arith.constant 1 : index
    %c8_124 = arith.constant 8 : index
    %c0_125 = arith.constant 0 : index
    %c0_126 = arith.constant 0 : index
    %236 = vector.load %arg4[%c1_123, %c8_124, %c0_125, %c0_126] : memref<4x16x16x128xf32, #tpu.memory_space<vmem>>, vector<1x1x16x128xf32>
    %237 = vector.shape_cast %236 : vector<1x1x16x128xf32> to vector<16x128xf32>
    %238 = vector.extract_strided_slice %188 {offsets = [8, 0], sizes = [1, 128], strides = [1, 1]} : vector<16x128xf32> to vector<1x128xf32>
    %239 = vector.broadcast %238 : vector<1x128xf32> to vector<16x128xf32>
    %240 = arith.mulf %237, %239 : vector<16x128xf32>
    %241 = arith.addf %235, %240 : vector<16x128xf32>
    %c1_127 = arith.constant 1 : index
    %c9_128 = arith.constant 9 : index
    %c0_129 = arith.constant 0 : index
    %c0_130 = arith.constant 0 : index
    %242 = vector.load %arg4[%c1_127, %c9_128, %c0_129, %c0_130] : memref<4x16x16x128xf32, #tpu.memory_space<vmem>>, vector<1x1x16x128xf32>
    %243 = vector.shape_cast %242 : vector<1x1x16x128xf32> to vector<16x128xf32>
    %244 = vector.extract_strided_slice %188 {offsets = [9, 0], sizes = [1, 128], strides = [1, 1]} : vector<16x128xf32> to vector<1x128xf32>
    %245 = vector.broadcast %244 : vector<1x128xf32> to vector<16x128xf32>
    %246 = arith.mulf %243, %245 : vector<16x128xf32>
    %247 = arith.addf %241, %246 : vector<16x128xf32>
    %c1_131 = arith.constant 1 : index
    %c10_132 = arith.constant 10 : index
    %c0_133 = arith.constant 0 : index
    %c0_134 = arith.constant 0 : index
    %248 = vector.load %arg4[%c1_131, %c10_132, %c0_133, %c0_134] : memref<4x16x16x128xf32, #tpu.memory_space<vmem>>, vector<1x1x16x128xf32>
    %249 = vector.shape_cast %248 : vector<1x1x16x128xf32> to vector<16x128xf32>
    %250 = vector.extract_strided_slice %188 {offsets = [10, 0], sizes = [1, 128], strides = [1, 1]} : vector<16x128xf32> to vector<1x128xf32>
    %251 = vector.broadcast %250 : vector<1x128xf32> to vector<16x128xf32>
    %252 = arith.mulf %249, %251 : vector<16x128xf32>
    %253 = arith.addf %247, %252 : vector<16x128xf32>
    %c1_135 = arith.constant 1 : index
    %c11_136 = arith.constant 11 : index
    %c0_137 = arith.constant 0 : index
    %c0_138 = arith.constant 0 : index
    %254 = vector.load %arg4[%c1_135, %c11_136, %c0_137, %c0_138] : memref<4x16x16x128xf32, #tpu.memory_space<vmem>>, vector<1x1x16x128xf32>
    %255 = vector.shape_cast %254 : vector<1x1x16x128xf32> to vector<16x128xf32>
    %256 = vector.extract_strided_slice %188 {offsets = [11, 0], sizes = [1, 128], strides = [1, 1]} : vector<16x128xf32> to vector<1x128xf32>
    %257 = vector.broadcast %256 : vector<1x128xf32> to vector<16x128xf32>
    %258 = arith.mulf %255, %257 : vector<16x128xf32>
    %259 = arith.addf %253, %258 : vector<16x128xf32>
    %c1_139 = arith.constant 1 : index
    %c12_140 = arith.constant 12 : index
    %c0_141 = arith.constant 0 : index
    %c0_142 = arith.constant 0 : index
    %260 = vector.load %arg4[%c1_139, %c12_140, %c0_141, %c0_142] : memref<4x16x16x128xf32, #tpu.memory_space<vmem>>, vector<1x1x16x128xf32>
    %261 = vector.shape_cast %260 : vector<1x1x16x128xf32> to vector<16x128xf32>
    %262 = vector.extract_strided_slice %188 {offsets = [12, 0], sizes = [1, 128], strides = [1, 1]} : vector<16x128xf32> to vector<1x128xf32>
    %263 = vector.broadcast %262 : vector<1x128xf32> to vector<16x128xf32>
    %264 = arith.mulf %261, %263 : vector<16x128xf32>
    %265 = arith.addf %259, %264 : vector<16x128xf32>
    %c1_143 = arith.constant 1 : index
    %c13_144 = arith.constant 13 : index
    %c0_145 = arith.constant 0 : index
    %c0_146 = arith.constant 0 : index
    %266 = vector.load %arg4[%c1_143, %c13_144, %c0_145, %c0_146] : memref<4x16x16x128xf32, #tpu.memory_space<vmem>>, vector<1x1x16x128xf32>
    %267 = vector.shape_cast %266 : vector<1x1x16x128xf32> to vector<16x128xf32>
    %268 = vector.extract_strided_slice %188 {offsets = [13, 0], sizes = [1, 128], strides = [1, 1]} : vector<16x128xf32> to vector<1x128xf32>
    %269 = vector.broadcast %268 : vector<1x128xf32> to vector<16x128xf32>
    %270 = arith.mulf %267, %269 : vector<16x128xf32>
    %271 = arith.addf %265, %270 : vector<16x128xf32>
    %c1_147 = arith.constant 1 : index
    %c14_148 = arith.constant 14 : index
    %c0_149 = arith.constant 0 : index
    %c0_150 = arith.constant 0 : index
    %272 = vector.load %arg4[%c1_147, %c14_148, %c0_149, %c0_150] : memref<4x16x16x128xf32, #tpu.memory_space<vmem>>, vector<1x1x16x128xf32>
    %273 = vector.shape_cast %272 : vector<1x1x16x128xf32> to vector<16x128xf32>
    %274 = vector.extract_strided_slice %188 {offsets = [14, 0], sizes = [1, 128], strides = [1, 1]} : vector<16x128xf32> to vector<1x128xf32>
    %275 = vector.broadcast %274 : vector<1x128xf32> to vector<16x128xf32>
    %276 = arith.mulf %273, %275 : vector<16x128xf32>
    %277 = arith.addf %271, %276 : vector<16x128xf32>
    %c1_151 = arith.constant 1 : index
    %c15_152 = arith.constant 15 : index
    %c0_153 = arith.constant 0 : index
    %c0_154 = arith.constant 0 : index
    %278 = vector.load %arg4[%c1_151, %c15_152, %c0_153, %c0_154] : memref<4x16x16x128xf32, #tpu.memory_space<vmem>>, vector<1x1x16x128xf32>
    %279 = vector.shape_cast %278 : vector<1x1x16x128xf32> to vector<16x128xf32>
    %280 = vector.extract_strided_slice %188 {offsets = [15, 0], sizes = [1, 128], strides = [1, 1]} : vector<16x128xf32> to vector<1x128xf32>
    %281 = vector.broadcast %280 : vector<1x128xf32> to vector<16x128xf32>
    %282 = arith.mulf %279, %281 : vector<16x128xf32>
    %283 = arith.addf %277, %282 : vector<16x128xf32>
    %c0_155 = arith.constant 0 : index
    %c0_156 = arith.constant 0 : index
    %284 = vector.load %arg3[%c0_155, %c0_156] : memref<128x128xf32, #tpu.memory_space<vmem>>, vector<128x128xf32>
    %cst_157 = arith.constant dense<0.000000e+00> : vector<16x128xf32>
    %285 = tpu.matmul %283, %284, %cst_157 {dimension_numbers = #tpu.dot_dimension_numbers<[1], [0], [0], [1], [0, 0, 1, 1], [], []>} : vector<16x128xf32>, vector<128x128xf32>, vector<16x128xf32> -> vector<16x128xf32>
    %c0_158 = arith.constant 0 : index
    %c68 = arith.constant 68 : index
    %286 = vector.load %arg5[%c0_158, %c68] : memref<32x128xf32, #tpu.memory_space<vmem>>, vector<16x16xf32>
    %cst_159 = arith.constant dense<0.000000e+00> : vector<16x128xf32>
    %287 = tpu.matmul %286, %186, %cst_159 {dimension_numbers = #tpu.dot_dimension_numbers<[1], [0], [0], [1], [0, 0, 1, 1], [], []>} : vector<16x16xf32>, vector<16x128xf32>, vector<16x128xf32> -> vector<16x128xf32>
    %288 = arith.addf %285, %287 : vector<16x128xf32>
    %c0_160 = arith.constant 0 : index
    %c118 = arith.constant 118 : index
    %289 = vector.load %arg5[%c0_160, %c118] : memref<32x128xf32, #tpu.memory_space<vmem>>, vector<16x1xf32>
    %290 = vector.broadcast %289 : vector<16x1xf32> to vector<16x128xf32>
    %291 = arith.addf %288, %290 : vector<16x128xf32>
    %cst_161 = arith.constant 5.000000e-01 : f32
    %292 = vector.broadcast %cst_161 : f32 to vector<16x128xf32>
    %293 = arith.mulf %291, %292 : vector<16x128xf32>
    %cst_162 = arith.constant 0.707106769 : f32
    %294 = vector.broadcast %cst_162 : f32 to vector<16x128xf32>
    %295 = arith.mulf %291, %294 : vector<16x128xf32>
    %cst_163 = arith.constant 0.000000e+00 : f32
    %296 = vector.broadcast %cst_163 : f32 to vector<16x128xf32>
    %297 = arith.cmpf oge, %295, %296 : vector<16x128xf32>
    %cst_164 = arith.constant 1.000000e+00 : f32
    %cst_165 = arith.constant -1.000000e+00 : f32
    %298 = vector.broadcast %cst_164 : f32 to vector<16x128xf32>
    %299 = vector.broadcast %cst_165 : f32 to vector<16x128xf32>
    %300 = arith.select %297, %298, %299 : vector<16x128xi1>, vector<16x128xf32>
    %301 = math.absf %295 : vector<16x128xf32>
    %cst_166 = arith.constant 0.327591091 : f32
    %302 = vector.broadcast %cst_166 : f32 to vector<16x128xf32>
    %303 = arith.mulf %302, %301 : vector<16x128xf32>
    %cst_167 = arith.constant 1.000000e+00 : f32
    %304 = vector.broadcast %cst_167 : f32 to vector<16x128xf32>
    %305 = arith.addf %304, %303 : vector<16x128xf32>
    %306 = tpu.reciprocal %305 {approx = true} : vector<16x128xf32> -> vector<16x128xf32>
    %cst_168 = arith.constant 1.06140542 : f32
    %307 = vector.broadcast %cst_168 : f32 to vector<16x128xf32>
    %308 = arith.mulf %307, %306 : vector<16x128xf32>
    %cst_169 = arith.constant -1.45315206 : f32
    %309 = vector.broadcast %cst_169 : f32 to vector<16x128xf32>
    %310 = arith.addf %308, %309 : vector<16x128xf32>
    %311 = arith.mulf %310, %306 : vector<16x128xf32>
    %cst_170 = arith.constant 1.42141378 : f32
    %312 = vector.broadcast %cst_170 : f32 to vector<16x128xf32>
    %313 = arith.addf %311, %312 : vector<16x128xf32>
    %314 = arith.mulf %313, %306 : vector<16x128xf32>
    %cst_171 = arith.constant -0.284496725 : f32
    %315 = vector.broadcast %cst_171 : f32 to vector<16x128xf32>
    %316 = arith.addf %314, %315 : vector<16x128xf32>
    %317 = arith.mulf %316, %306 : vector<16x128xf32>
    %cst_172 = arith.constant 0.254829586 : f32
    %318 = vector.broadcast %cst_172 : f32 to vector<16x128xf32>
    %319 = arith.addf %317, %318 : vector<16x128xf32>
    %320 = arith.mulf %319, %306 : vector<16x128xf32>
    %cst_173 = arith.constant 0.000000e+00 : f32
    %321 = vector.broadcast %cst_173 : f32 to vector<16x128xf32>
    %322 = arith.subf %321, %301 : vector<16x128xf32>
    %323 = arith.mulf %322, %301 : vector<16x128xf32>
    %324 = math.exp %323 : vector<16x128xf32>
    %325 = arith.mulf %320, %324 : vector<16x128xf32>
    %cst_174 = arith.constant 1.000000e+00 : f32
    %326 = vector.broadcast %cst_174 : f32 to vector<16x128xf32>
    %327 = arith.subf %326, %325 : vector<16x128xf32>
    %328 = arith.mulf %300, %327 : vector<16x128xf32>
    %cst_175 = arith.constant 1.000000e+00 : f32
    %329 = vector.broadcast %cst_175 : f32 to vector<16x128xf32>
    %330 = arith.addf %329, %328 : vector<16x128xf32>
    %331 = arith.mulf %293, %330 : vector<16x128xf32>
    %c0_176 = arith.constant 0 : index
    %c0_177 = arith.constant 0 : index
    %332 = vector.load %arg2[%c0_176, %c0_177] : memref<128x128xf32, #tpu.memory_space<vmem>>, vector<128x128xf32>
    %cst_178 = arith.constant dense<0.000000e+00> : vector<16x128xf32>
    %333 = tpu.matmul %331, %332, %cst_178 {dimension_numbers = #tpu.dot_dimension_numbers<[1], [0], [0], [1], [0, 0, 1, 1], [], []>} : vector<16x128xf32>, vector<128x128xf32>, vector<16x128xf32> -> vector<16x128xf32>
    %c2_179 = arith.constant 2 : index
    %c0_180 = arith.constant 0 : index
    %c0_181 = arith.constant 0 : index
    %c0_182 = arith.constant 0 : index
    %334 = vector.load %arg4[%c2_179, %c0_180, %c0_181, %c0_182] : memref<4x16x16x128xf32, #tpu.memory_space<vmem>>, vector<1x1x16x128xf32>
    %335 = vector.shape_cast %334 : vector<1x1x16x128xf32> to vector<16x128xf32>
    %336 = vector.extract_strided_slice %333 {offsets = [0, 0], sizes = [1, 128], strides = [1, 1]} : vector<16x128xf32> to vector<1x128xf32>
    %337 = vector.broadcast %336 : vector<1x128xf32> to vector<16x128xf32>
    %338 = arith.mulf %335, %337 : vector<16x128xf32>
    %c2_183 = arith.constant 2 : index
    %c1_184 = arith.constant 1 : index
    %c0_185 = arith.constant 0 : index
    %c0_186 = arith.constant 0 : index
    %339 = vector.load %arg4[%c2_183, %c1_184, %c0_185, %c0_186] : memref<4x16x16x128xf32, #tpu.memory_space<vmem>>, vector<1x1x16x128xf32>
    %340 = vector.shape_cast %339 : vector<1x1x16x128xf32> to vector<16x128xf32>
    %341 = vector.extract_strided_slice %333 {offsets = [1, 0], sizes = [1, 128], strides = [1, 1]} : vector<16x128xf32> to vector<1x128xf32>
    %342 = vector.broadcast %341 : vector<1x128xf32> to vector<16x128xf32>
    %343 = arith.mulf %340, %342 : vector<16x128xf32>
    %344 = arith.addf %338, %343 : vector<16x128xf32>
    %c2_187 = arith.constant 2 : index
    %c2_188 = arith.constant 2 : index
    %c0_189 = arith.constant 0 : index
    %c0_190 = arith.constant 0 : index
    %345 = vector.load %arg4[%c2_187, %c2_188, %c0_189, %c0_190] : memref<4x16x16x128xf32, #tpu.memory_space<vmem>>, vector<1x1x16x128xf32>
    %346 = vector.shape_cast %345 : vector<1x1x16x128xf32> to vector<16x128xf32>
    %347 = vector.extract_strided_slice %333 {offsets = [2, 0], sizes = [1, 128], strides = [1, 1]} : vector<16x128xf32> to vector<1x128xf32>
    %348 = vector.broadcast %347 : vector<1x128xf32> to vector<16x128xf32>
    %349 = arith.mulf %346, %348 : vector<16x128xf32>
    %350 = arith.addf %344, %349 : vector<16x128xf32>
    %c2_191 = arith.constant 2 : index
    %c3_192 = arith.constant 3 : index
    %c0_193 = arith.constant 0 : index
    %c0_194 = arith.constant 0 : index
    %351 = vector.load %arg4[%c2_191, %c3_192, %c0_193, %c0_194] : memref<4x16x16x128xf32, #tpu.memory_space<vmem>>, vector<1x1x16x128xf32>
    %352 = vector.shape_cast %351 : vector<1x1x16x128xf32> to vector<16x128xf32>
    %353 = vector.extract_strided_slice %333 {offsets = [3, 0], sizes = [1, 128], strides = [1, 1]} : vector<16x128xf32> to vector<1x128xf32>
    %354 = vector.broadcast %353 : vector<1x128xf32> to vector<16x128xf32>
    %355 = arith.mulf %352, %354 : vector<16x128xf32>
    %356 = arith.addf %350, %355 : vector<16x128xf32>
    %c2_195 = arith.constant 2 : index
    %c4_196 = arith.constant 4 : index
    %c0_197 = arith.constant 0 : index
    %c0_198 = arith.constant 0 : index
    %357 = vector.load %arg4[%c2_195, %c4_196, %c0_197, %c0_198] : memref<4x16x16x128xf32, #tpu.memory_space<vmem>>, vector<1x1x16x128xf32>
    %358 = vector.shape_cast %357 : vector<1x1x16x128xf32> to vector<16x128xf32>
    %359 = vector.extract_strided_slice %333 {offsets = [4, 0], sizes = [1, 128], strides = [1, 1]} : vector<16x128xf32> to vector<1x128xf32>
    %360 = vector.broadcast %359 : vector<1x128xf32> to vector<16x128xf32>
    %361 = arith.mulf %358, %360 : vector<16x128xf32>
    %362 = arith.addf %356, %361 : vector<16x128xf32>
    %c2_199 = arith.constant 2 : index
    %c5_200 = arith.constant 5 : index
    %c0_201 = arith.constant 0 : index
    %c0_202 = arith.constant 0 : index
    %363 = vector.load %arg4[%c2_199, %c5_200, %c0_201, %c0_202] : memref<4x16x16x128xf32, #tpu.memory_space<vmem>>, vector<1x1x16x128xf32>
    %364 = vector.shape_cast %363 : vector<1x1x16x128xf32> to vector<16x128xf32>
    %365 = vector.extract_strided_slice %333 {offsets = [5, 0], sizes = [1, 128], strides = [1, 1]} : vector<16x128xf32> to vector<1x128xf32>
    %366 = vector.broadcast %365 : vector<1x128xf32> to vector<16x128xf32>
    %367 = arith.mulf %364, %366 : vector<16x128xf32>
    %368 = arith.addf %362, %367 : vector<16x128xf32>
    %c2_203 = arith.constant 2 : index
    %c6_204 = arith.constant 6 : index
    %c0_205 = arith.constant 0 : index
    %c0_206 = arith.constant 0 : index
    %369 = vector.load %arg4[%c2_203, %c6_204, %c0_205, %c0_206] : memref<4x16x16x128xf32, #tpu.memory_space<vmem>>, vector<1x1x16x128xf32>
    %370 = vector.shape_cast %369 : vector<1x1x16x128xf32> to vector<16x128xf32>
    %371 = vector.extract_strided_slice %333 {offsets = [6, 0], sizes = [1, 128], strides = [1, 1]} : vector<16x128xf32> to vector<1x128xf32>
    %372 = vector.broadcast %371 : vector<1x128xf32> to vector<16x128xf32>
    %373 = arith.mulf %370, %372 : vector<16x128xf32>
    %374 = arith.addf %368, %373 : vector<16x128xf32>
    %c2_207 = arith.constant 2 : index
    %c7_208 = arith.constant 7 : index
    %c0_209 = arith.constant 0 : index
    %c0_210 = arith.constant 0 : index
    %375 = vector.load %arg4[%c2_207, %c7_208, %c0_209, %c0_210] : memref<4x16x16x128xf32, #tpu.memory_space<vmem>>, vector<1x1x16x128xf32>
    %376 = vector.shape_cast %375 : vector<1x1x16x128xf32> to vector<16x128xf32>
    %377 = vector.extract_strided_slice %333 {offsets = [7, 0], sizes = [1, 128], strides = [1, 1]} : vector<16x128xf32> to vector<1x128xf32>
    %378 = vector.broadcast %377 : vector<1x128xf32> to vector<16x128xf32>
    %379 = arith.mulf %376, %378 : vector<16x128xf32>
    %380 = arith.addf %374, %379 : vector<16x128xf32>
    %c2_211 = arith.constant 2 : index
    %c8_212 = arith.constant 8 : index
    %c0_213 = arith.constant 0 : index
    %c0_214 = arith.constant 0 : index
    %381 = vector.load %arg4[%c2_211, %c8_212, %c0_213, %c0_214] : memref<4x16x16x128xf32, #tpu.memory_space<vmem>>, vector<1x1x16x128xf32>
    %382 = vector.shape_cast %381 : vector<1x1x16x128xf32> to vector<16x128xf32>
    %383 = vector.extract_strided_slice %333 {offsets = [8, 0], sizes = [1, 128], strides = [1, 1]} : vector<16x128xf32> to vector<1x128xf32>
    %384 = vector.broadcast %383 : vector<1x128xf32> to vector<16x128xf32>
    %385 = arith.mulf %382, %384 : vector<16x128xf32>
    %386 = arith.addf %380, %385 : vector<16x128xf32>
    %c2_215 = arith.constant 2 : index
    %c9_216 = arith.constant 9 : index
    %c0_217 = arith.constant 0 : index
    %c0_218 = arith.constant 0 : index
    %387 = vector.load %arg4[%c2_215, %c9_216, %c0_217, %c0_218] : memref<4x16x16x128xf32, #tpu.memory_space<vmem>>, vector<1x1x16x128xf32>
    %388 = vector.shape_cast %387 : vector<1x1x16x128xf32> to vector<16x128xf32>
    %389 = vector.extract_strided_slice %333 {offsets = [9, 0], sizes = [1, 128], strides = [1, 1]} : vector<16x128xf32> to vector<1x128xf32>
    %390 = vector.broadcast %389 : vector<1x128xf32> to vector<16x128xf32>
    %391 = arith.mulf %388, %390 : vector<16x128xf32>
    %392 = arith.addf %386, %391 : vector<16x128xf32>
    %c2_219 = arith.constant 2 : index
    %c10_220 = arith.constant 10 : index
    %c0_221 = arith.constant 0 : index
    %c0_222 = arith.constant 0 : index
    %393 = vector.load %arg4[%c2_219, %c10_220, %c0_221, %c0_222] : memref<4x16x16x128xf32, #tpu.memory_space<vmem>>, vector<1x1x16x128xf32>
    %394 = vector.shape_cast %393 : vector<1x1x16x128xf32> to vector<16x128xf32>
    %395 = vector.extract_strided_slice %333 {offsets = [10, 0], sizes = [1, 128], strides = [1, 1]} : vector<16x128xf32> to vector<1x128xf32>
    %396 = vector.broadcast %395 : vector<1x128xf32> to vector<16x128xf32>
    %397 = arith.mulf %394, %396 : vector<16x128xf32>
    %398 = arith.addf %392, %397 : vector<16x128xf32>
    %c2_223 = arith.constant 2 : index
    %c11_224 = arith.constant 11 : index
    %c0_225 = arith.constant 0 : index
    %c0_226 = arith.constant 0 : index
    %399 = vector.load %arg4[%c2_223, %c11_224, %c0_225, %c0_226] : memref<4x16x16x128xf32, #tpu.memory_space<vmem>>, vector<1x1x16x128xf32>
    %400 = vector.shape_cast %399 : vector<1x1x16x128xf32> to vector<16x128xf32>
    %401 = vector.extract_strided_slice %333 {offsets = [11, 0], sizes = [1, 128], strides = [1, 1]} : vector<16x128xf32> to vector<1x128xf32>
    %402 = vector.broadcast %401 : vector<1x128xf32> to vector<16x128xf32>
    %403 = arith.mulf %400, %402 : vector<16x128xf32>
    %404 = arith.addf %398, %403 : vector<16x128xf32>
    %c2_227 = arith.constant 2 : index
    %c12_228 = arith.constant 12 : index
    %c0_229 = arith.constant 0 : index
    %c0_230 = arith.constant 0 : index
    %405 = vector.load %arg4[%c2_227, %c12_228, %c0_229, %c0_230] : memref<4x16x16x128xf32, #tpu.memory_space<vmem>>, vector<1x1x16x128xf32>
    %406 = vector.shape_cast %405 : vector<1x1x16x128xf32> to vector<16x128xf32>
    %407 = vector.extract_strided_slice %333 {offsets = [12, 0], sizes = [1, 128], strides = [1, 1]} : vector<16x128xf32> to vector<1x128xf32>
    %408 = vector.broadcast %407 : vector<1x128xf32> to vector<16x128xf32>
    %409 = arith.mulf %406, %408 : vector<16x128xf32>
    %410 = arith.addf %404, %409 : vector<16x128xf32>
    %c2_231 = arith.constant 2 : index
    %c13_232 = arith.constant 13 : index
    %c0_233 = arith.constant 0 : index
    %c0_234 = arith.constant 0 : index
    %411 = vector.load %arg4[%c2_231, %c13_232, %c0_233, %c0_234] : memref<4x16x16x128xf32, #tpu.memory_space<vmem>>, vector<1x1x16x128xf32>
    %412 = vector.shape_cast %411 : vector<1x1x16x128xf32> to vector<16x128xf32>
    %413 = vector.extract_strided_slice %333 {offsets = [13, 0], sizes = [1, 128], strides = [1, 1]} : vector<16x128xf32> to vector<1x128xf32>
    %414 = vector.broadcast %413 : vector<1x128xf32> to vector<16x128xf32>
    %415 = arith.mulf %412, %414 : vector<16x128xf32>
    %416 = arith.addf %410, %415 : vector<16x128xf32>
    %c2_235 = arith.constant 2 : index
    %c14_236 = arith.constant 14 : index
    %c0_237 = arith.constant 0 : index
    %c0_238 = arith.constant 0 : index
    %417 = vector.load %arg4[%c2_235, %c14_236, %c0_237, %c0_238] : memref<4x16x16x128xf32, #tpu.memory_space<vmem>>, vector<1x1x16x128xf32>
    %418 = vector.shape_cast %417 : vector<1x1x16x128xf32> to vector<16x128xf32>
    %419 = vector.extract_strided_slice %333 {offsets = [14, 0], sizes = [1, 128], strides = [1, 1]} : vector<16x128xf32> to vector<1x128xf32>
    %420 = vector.broadcast %419 : vector<1x128xf32> to vector<16x128xf32>
    %421 = arith.mulf %418, %420 : vector<16x128xf32>
    %422 = arith.addf %416, %421 : vector<16x128xf32>
    %c2_239 = arith.constant 2 : index
    %c15_240 = arith.constant 15 : index
    %c0_241 = arith.constant 0 : index
    %c0_242 = arith.constant 0 : index
    %423 = vector.load %arg4[%c2_239, %c15_240, %c0_241, %c0_242] : memref<4x16x16x128xf32, #tpu.memory_space<vmem>>, vector<1x1x16x128xf32>
    %424 = vector.shape_cast %423 : vector<1x1x16x128xf32> to vector<16x128xf32>
    %425 = vector.extract_strided_slice %333 {offsets = [15, 0], sizes = [1, 128], strides = [1, 1]} : vector<16x128xf32> to vector<1x128xf32>
    %426 = vector.broadcast %425 : vector<1x128xf32> to vector<16x128xf32>
    %427 = arith.mulf %424, %426 : vector<16x128xf32>
    %428 = arith.addf %422, %427 : vector<16x128xf32>
    %c0_243 = arith.constant 0 : index
    %c0_244 = arith.constant 0 : index
    %429 = vector.load %arg3[%c0_243, %c0_244] : memref<128x128xf32, #tpu.memory_space<vmem>>, vector<128x128xf32>
    %cst_245 = arith.constant dense<0.000000e+00> : vector<16x128xf32>
    %430 = tpu.matmul %428, %429, %cst_245 {dimension_numbers = #tpu.dot_dimension_numbers<[1], [0], [0], [1], [0, 0, 1, 1], [], []>} : vector<16x128xf32>, vector<128x128xf32>, vector<16x128xf32> -> vector<16x128xf32>
    %c0_246 = arith.constant 0 : index
    %c84 = arith.constant 84 : index
    %431 = vector.load %arg5[%c0_246, %c84] : memref<32x128xf32, #tpu.memory_space<vmem>>, vector<16x16xf32>
    %cst_247 = arith.constant dense<0.000000e+00> : vector<16x128xf32>
    %432 = tpu.matmul %431, %331, %cst_247 {dimension_numbers = #tpu.dot_dimension_numbers<[1], [0], [0], [1], [0, 0, 1, 1], [], []>} : vector<16x16xf32>, vector<16x128xf32>, vector<16x128xf32> -> vector<16x128xf32>
    %433 = arith.addf %430, %432 : vector<16x128xf32>
    %c0_248 = arith.constant 0 : index
    %c119 = arith.constant 119 : index
    %434 = vector.load %arg5[%c0_248, %c119] : memref<32x128xf32, #tpu.memory_space<vmem>>, vector<16x1xf32>
    %435 = vector.broadcast %434 : vector<16x1xf32> to vector<16x128xf32>
    %436 = arith.addf %433, %435 : vector<16x128xf32>
    %cst_249 = arith.constant 5.000000e-01 : f32
    %437 = vector.broadcast %cst_249 : f32 to vector<16x128xf32>
    %438 = arith.mulf %436, %437 : vector<16x128xf32>
    %cst_250 = arith.constant 0.707106769 : f32
    %439 = vector.broadcast %cst_250 : f32 to vector<16x128xf32>
    %440 = arith.mulf %436, %439 : vector<16x128xf32>
    %cst_251 = arith.constant 0.000000e+00 : f32
    %441 = vector.broadcast %cst_251 : f32 to vector<16x128xf32>
    %442 = arith.cmpf oge, %440, %441 : vector<16x128xf32>
    %cst_252 = arith.constant 1.000000e+00 : f32
    %cst_253 = arith.constant -1.000000e+00 : f32
    %443 = vector.broadcast %cst_252 : f32 to vector<16x128xf32>
    %444 = vector.broadcast %cst_253 : f32 to vector<16x128xf32>
    %445 = arith.select %442, %443, %444 : vector<16x128xi1>, vector<16x128xf32>
    %446 = math.absf %440 : vector<16x128xf32>
    %cst_254 = arith.constant 0.327591091 : f32
    %447 = vector.broadcast %cst_254 : f32 to vector<16x128xf32>
    %448 = arith.mulf %447, %446 : vector<16x128xf32>
    %cst_255 = arith.constant 1.000000e+00 : f32
    %449 = vector.broadcast %cst_255 : f32 to vector<16x128xf32>
    %450 = arith.addf %449, %448 : vector<16x128xf32>
    %451 = tpu.reciprocal %450 {approx = true} : vector<16x128xf32> -> vector<16x128xf32>
    %cst_256 = arith.constant 1.06140542 : f32
    %452 = vector.broadcast %cst_256 : f32 to vector<16x128xf32>
    %453 = arith.mulf %452, %451 : vector<16x128xf32>
    %cst_257 = arith.constant -1.45315206 : f32
    %454 = vector.broadcast %cst_257 : f32 to vector<16x128xf32>
    %455 = arith.addf %453, %454 : vector<16x128xf32>
    %456 = arith.mulf %455, %451 : vector<16x128xf32>
    %cst_258 = arith.constant 1.42141378 : f32
    %457 = vector.broadcast %cst_258 : f32 to vector<16x128xf32>
    %458 = arith.addf %456, %457 : vector<16x128xf32>
    %459 = arith.mulf %458, %451 : vector<16x128xf32>
    %cst_259 = arith.constant -0.284496725 : f32
    %460 = vector.broadcast %cst_259 : f32 to vector<16x128xf32>
    %461 = arith.addf %459, %460 : vector<16x128xf32>
    %462 = arith.mulf %461, %451 : vector<16x128xf32>
    %cst_260 = arith.constant 0.254829586 : f32
    %463 = vector.broadcast %cst_260 : f32 to vector<16x128xf32>
    %464 = arith.addf %462, %463 : vector<16x128xf32>
    %465 = arith.mulf %464, %451 : vector<16x128xf32>
    %cst_261 = arith.constant 0.000000e+00 : f32
    %466 = vector.broadcast %cst_261 : f32 to vector<16x128xf32>
    %467 = arith.subf %466, %446 : vector<16x128xf32>
    %468 = arith.mulf %467, %446 : vector<16x128xf32>
    %469 = math.exp %468 : vector<16x128xf32>
    %470 = arith.mulf %465, %469 : vector<16x128xf32>
    %cst_262 = arith.constant 1.000000e+00 : f32
    %471 = vector.broadcast %cst_262 : f32 to vector<16x128xf32>
    %472 = arith.subf %471, %470 : vector<16x128xf32>
    %473 = arith.mulf %445, %472 : vector<16x128xf32>
    %cst_263 = arith.constant 1.000000e+00 : f32
    %474 = vector.broadcast %cst_263 : f32 to vector<16x128xf32>
    %475 = arith.addf %474, %473 : vector<16x128xf32>
    %476 = arith.mulf %438, %475 : vector<16x128xf32>
    %c0_264 = arith.constant 0 : index
    %c0_265 = arith.constant 0 : index
    %477 = vector.load %arg2[%c0_264, %c0_265] : memref<128x128xf32, #tpu.memory_space<vmem>>, vector<128x128xf32>
    %cst_266 = arith.constant dense<0.000000e+00> : vector<16x128xf32>
    %478 = tpu.matmul %476, %477, %cst_266 {dimension_numbers = #tpu.dot_dimension_numbers<[1], [0], [0], [1], [0, 0, 1, 1], [], []>} : vector<16x128xf32>, vector<128x128xf32>, vector<16x128xf32> -> vector<16x128xf32>
    %c3_267 = arith.constant 3 : index
    %c0_268 = arith.constant 0 : index
    %c0_269 = arith.constant 0 : index
    %c0_270 = arith.constant 0 : index
    %479 = vector.load %arg4[%c3_267, %c0_268, %c0_269, %c0_270] : memref<4x16x16x128xf32, #tpu.memory_space<vmem>>, vector<1x1x16x128xf32>
    %480 = vector.shape_cast %479 : vector<1x1x16x128xf32> to vector<16x128xf32>
    %481 = vector.extract_strided_slice %478 {offsets = [0, 0], sizes = [1, 128], strides = [1, 1]} : vector<16x128xf32> to vector<1x128xf32>
    %482 = vector.broadcast %481 : vector<1x128xf32> to vector<16x128xf32>
    %483 = arith.mulf %480, %482 : vector<16x128xf32>
    %c3_271 = arith.constant 3 : index
    %c1_272 = arith.constant 1 : index
    %c0_273 = arith.constant 0 : index
    %c0_274 = arith.constant 0 : index
    %484 = vector.load %arg4[%c3_271, %c1_272, %c0_273, %c0_274] : memref<4x16x16x128xf32, #tpu.memory_space<vmem>>, vector<1x1x16x128xf32>
    %485 = vector.shape_cast %484 : vector<1x1x16x128xf32> to vector<16x128xf32>
    %486 = vector.extract_strided_slice %478 {offsets = [1, 0], sizes = [1, 128], strides = [1, 1]} : vector<16x128xf32> to vector<1x128xf32>
    %487 = vector.broadcast %486 : vector<1x128xf32> to vector<16x128xf32>
    %488 = arith.mulf %485, %487 : vector<16x128xf32>
    %489 = arith.addf %483, %488 : vector<16x128xf32>
    %c3_275 = arith.constant 3 : index
    %c2_276 = arith.constant 2 : index
    %c0_277 = arith.constant 0 : index
    %c0_278 = arith.constant 0 : index
    %490 = vector.load %arg4[%c3_275, %c2_276, %c0_277, %c0_278] : memref<4x16x16x128xf32, #tpu.memory_space<vmem>>, vector<1x1x16x128xf32>
    %491 = vector.shape_cast %490 : vector<1x1x16x128xf32> to vector<16x128xf32>
    %492 = vector.extract_strided_slice %478 {offsets = [2, 0], sizes = [1, 128], strides = [1, 1]} : vector<16x128xf32> to vector<1x128xf32>
    %493 = vector.broadcast %492 : vector<1x128xf32> to vector<16x128xf32>
    %494 = arith.mulf %491, %493 : vector<16x128xf32>
    %495 = arith.addf %489, %494 : vector<16x128xf32>
    %c3_279 = arith.constant 3 : index
    %c3_280 = arith.constant 3 : index
    %c0_281 = arith.constant 0 : index
    %c0_282 = arith.constant 0 : index
    %496 = vector.load %arg4[%c3_279, %c3_280, %c0_281, %c0_282] : memref<4x16x16x128xf32, #tpu.memory_space<vmem>>, vector<1x1x16x128xf32>
    %497 = vector.shape_cast %496 : vector<1x1x16x128xf32> to vector<16x128xf32>
    %498 = vector.extract_strided_slice %478 {offsets = [3, 0], sizes = [1, 128], strides = [1, 1]} : vector<16x128xf32> to vector<1x128xf32>
    %499 = vector.broadcast %498 : vector<1x128xf32> to vector<16x128xf32>
    %500 = arith.mulf %497, %499 : vector<16x128xf32>
    %501 = arith.addf %495, %500 : vector<16x128xf32>
    %c3_283 = arith.constant 3 : index
    %c4_284 = arith.constant 4 : index
    %c0_285 = arith.constant 0 : index
    %c0_286 = arith.constant 0 : index
    %502 = vector.load %arg4[%c3_283, %c4_284, %c0_285, %c0_286] : memref<4x16x16x128xf32, #tpu.memory_space<vmem>>, vector<1x1x16x128xf32>
    %503 = vector.shape_cast %502 : vector<1x1x16x128xf32> to vector<16x128xf32>
    %504 = vector.extract_strided_slice %478 {offsets = [4, 0], sizes = [1, 128], strides = [1, 1]} : vector<16x128xf32> to vector<1x128xf32>
    %505 = vector.broadcast %504 : vector<1x128xf32> to vector<16x128xf32>
    %506 = arith.mulf %503, %505 : vector<16x128xf32>
    %507 = arith.addf %501, %506 : vector<16x128xf32>
    %c3_287 = arith.constant 3 : index
    %c5_288 = arith.constant 5 : index
    %c0_289 = arith.constant 0 : index
    %c0_290 = arith.constant 0 : index
    %508 = vector.load %arg4[%c3_287, %c5_288, %c0_289, %c0_290] : memref<4x16x16x128xf32, #tpu.memory_space<vmem>>, vector<1x1x16x128xf32>
    %509 = vector.shape_cast %508 : vector<1x1x16x128xf32> to vector<16x128xf32>
    %510 = vector.extract_strided_slice %478 {offsets = [5, 0], sizes = [1, 128], strides = [1, 1]} : vector<16x128xf32> to vector<1x128xf32>
    %511 = vector.broadcast %510 : vector<1x128xf32> to vector<16x128xf32>
    %512 = arith.mulf %509, %511 : vector<16x128xf32>
    %513 = arith.addf %507, %512 : vector<16x128xf32>
    %c3_291 = arith.constant 3 : index
    %c6_292 = arith.constant 6 : index
    %c0_293 = arith.constant 0 : index
    %c0_294 = arith.constant 0 : index
    %514 = vector.load %arg4[%c3_291, %c6_292, %c0_293, %c0_294] : memref<4x16x16x128xf32, #tpu.memory_space<vmem>>, vector<1x1x16x128xf32>
    %515 = vector.shape_cast %514 : vector<1x1x16x128xf32> to vector<16x128xf32>
    %516 = vector.extract_strided_slice %478 {offsets = [6, 0], sizes = [1, 128], strides = [1, 1]} : vector<16x128xf32> to vector<1x128xf32>
    %517 = vector.broadcast %516 : vector<1x128xf32> to vector<16x128xf32>
    %518 = arith.mulf %515, %517 : vector<16x128xf32>
    %519 = arith.addf %513, %518 : vector<16x128xf32>
    %c3_295 = arith.constant 3 : index
    %c7_296 = arith.constant 7 : index
    %c0_297 = arith.constant 0 : index
    %c0_298 = arith.constant 0 : index
    %520 = vector.load %arg4[%c3_295, %c7_296, %c0_297, %c0_298] : memref<4x16x16x128xf32, #tpu.memory_space<vmem>>, vector<1x1x16x128xf32>
    %521 = vector.shape_cast %520 : vector<1x1x16x128xf32> to vector<16x128xf32>
    %522 = vector.extract_strided_slice %478 {offsets = [7, 0], sizes = [1, 128], strides = [1, 1]} : vector<16x128xf32> to vector<1x128xf32>
    %523 = vector.broadcast %522 : vector<1x128xf32> to vector<16x128xf32>
    %524 = arith.mulf %521, %523 : vector<16x128xf32>
    %525 = arith.addf %519, %524 : vector<16x128xf32>
    %c3_299 = arith.constant 3 : index
    %c8_300 = arith.constant 8 : index
    %c0_301 = arith.constant 0 : index
    %c0_302 = arith.constant 0 : index
    %526 = vector.load %arg4[%c3_299, %c8_300, %c0_301, %c0_302] : memref<4x16x16x128xf32, #tpu.memory_space<vmem>>, vector<1x1x16x128xf32>
    %527 = vector.shape_cast %526 : vector<1x1x16x128xf32> to vector<16x128xf32>
    %528 = vector.extract_strided_slice %478 {offsets = [8, 0], sizes = [1, 128], strides = [1, 1]} : vector<16x128xf32> to vector<1x128xf32>
    %529 = vector.broadcast %528 : vector<1x128xf32> to vector<16x128xf32>
    %530 = arith.mulf %527, %529 : vector<16x128xf32>
    %531 = arith.addf %525, %530 : vector<16x128xf32>
    %c3_303 = arith.constant 3 : index
    %c9_304 = arith.constant 9 : index
    %c0_305 = arith.constant 0 : index
    %c0_306 = arith.constant 0 : index
    %532 = vector.load %arg4[%c3_303, %c9_304, %c0_305, %c0_306] : memref<4x16x16x128xf32, #tpu.memory_space<vmem>>, vector<1x1x16x128xf32>
    %533 = vector.shape_cast %532 : vector<1x1x16x128xf32> to vector<16x128xf32>
    %534 = vector.extract_strided_slice %478 {offsets = [9, 0], sizes = [1, 128], strides = [1, 1]} : vector<16x128xf32> to vector<1x128xf32>
    %535 = vector.broadcast %534 : vector<1x128xf32> to vector<16x128xf32>
    %536 = arith.mulf %533, %535 : vector<16x128xf32>
    %537 = arith.addf %531, %536 : vector<16x128xf32>
    %c3_307 = arith.constant 3 : index
    %c10_308 = arith.constant 10 : index
    %c0_309 = arith.constant 0 : index
    %c0_310 = arith.constant 0 : index
    %538 = vector.load %arg4[%c3_307, %c10_308, %c0_309, %c0_310] : memref<4x16x16x128xf32, #tpu.memory_space<vmem>>, vector<1x1x16x128xf32>
    %539 = vector.shape_cast %538 : vector<1x1x16x128xf32> to vector<16x128xf32>
    %540 = vector.extract_strided_slice %478 {offsets = [10, 0], sizes = [1, 128], strides = [1, 1]} : vector<16x128xf32> to vector<1x128xf32>
    %541 = vector.broadcast %540 : vector<1x128xf32> to vector<16x128xf32>
    %542 = arith.mulf %539, %541 : vector<16x128xf32>
    %543 = arith.addf %537, %542 : vector<16x128xf32>
    %c3_311 = arith.constant 3 : index
    %c11_312 = arith.constant 11 : index
    %c0_313 = arith.constant 0 : index
    %c0_314 = arith.constant 0 : index
    %544 = vector.load %arg4[%c3_311, %c11_312, %c0_313, %c0_314] : memref<4x16x16x128xf32, #tpu.memory_space<vmem>>, vector<1x1x16x128xf32>
    %545 = vector.shape_cast %544 : vector<1x1x16x128xf32> to vector<16x128xf32>
    %546 = vector.extract_strided_slice %478 {offsets = [11, 0], sizes = [1, 128], strides = [1, 1]} : vector<16x128xf32> to vector<1x128xf32>
    %547 = vector.broadcast %546 : vector<1x128xf32> to vector<16x128xf32>
    %548 = arith.mulf %545, %547 : vector<16x128xf32>
    %549 = arith.addf %543, %548 : vector<16x128xf32>
    %c3_315 = arith.constant 3 : index
    %c12_316 = arith.constant 12 : index
    %c0_317 = arith.constant 0 : index
    %c0_318 = arith.constant 0 : index
    %550 = vector.load %arg4[%c3_315, %c12_316, %c0_317, %c0_318] : memref<4x16x16x128xf32, #tpu.memory_space<vmem>>, vector<1x1x16x128xf32>
    %551 = vector.shape_cast %550 : vector<1x1x16x128xf32> to vector<16x128xf32>
    %552 = vector.extract_strided_slice %478 {offsets = [12, 0], sizes = [1, 128], strides = [1, 1]} : vector<16x128xf32> to vector<1x128xf32>
    %553 = vector.broadcast %552 : vector<1x128xf32> to vector<16x128xf32>
    %554 = arith.mulf %551, %553 : vector<16x128xf32>
    %555 = arith.addf %549, %554 : vector<16x128xf32>
    %c3_319 = arith.constant 3 : index
    %c13_320 = arith.constant 13 : index
    %c0_321 = arith.constant 0 : index
    %c0_322 = arith.constant 0 : index
    %556 = vector.load %arg4[%c3_319, %c13_320, %c0_321, %c0_322] : memref<4x16x16x128xf32, #tpu.memory_space<vmem>>, vector<1x1x16x128xf32>
    %557 = vector.shape_cast %556 : vector<1x1x16x128xf32> to vector<16x128xf32>
    %558 = vector.extract_strided_slice %478 {offsets = [13, 0], sizes = [1, 128], strides = [1, 1]} : vector<16x128xf32> to vector<1x128xf32>
    %559 = vector.broadcast %558 : vector<1x128xf32> to vector<16x128xf32>
    %560 = arith.mulf %557, %559 : vector<16x128xf32>
    %561 = arith.addf %555, %560 : vector<16x128xf32>
    %c3_323 = arith.constant 3 : index
    %c14_324 = arith.constant 14 : index
    %c0_325 = arith.constant 0 : index
    %c0_326 = arith.constant 0 : index
    %562 = vector.load %arg4[%c3_323, %c14_324, %c0_325, %c0_326] : memref<4x16x16x128xf32, #tpu.memory_space<vmem>>, vector<1x1x16x128xf32>
    %563 = vector.shape_cast %562 : vector<1x1x16x128xf32> to vector<16x128xf32>
    %564 = vector.extract_strided_slice %478 {offsets = [14, 0], sizes = [1, 128], strides = [1, 1]} : vector<16x128xf32> to vector<1x128xf32>
    %565 = vector.broadcast %564 : vector<1x128xf32> to vector<16x128xf32>
    %566 = arith.mulf %563, %565 : vector<16x128xf32>
    %567 = arith.addf %561, %566 : vector<16x128xf32>
    %c3_327 = arith.constant 3 : index
    %c15_328 = arith.constant 15 : index
    %c0_329 = arith.constant 0 : index
    %c0_330 = arith.constant 0 : index
    %568 = vector.load %arg4[%c3_327, %c15_328, %c0_329, %c0_330] : memref<4x16x16x128xf32, #tpu.memory_space<vmem>>, vector<1x1x16x128xf32>
    %569 = vector.shape_cast %568 : vector<1x1x16x128xf32> to vector<16x128xf32>
    %570 = vector.extract_strided_slice %478 {offsets = [15, 0], sizes = [1, 128], strides = [1, 1]} : vector<16x128xf32> to vector<1x128xf32>
    %571 = vector.broadcast %570 : vector<1x128xf32> to vector<16x128xf32>
    %572 = arith.mulf %569, %571 : vector<16x128xf32>
    %573 = arith.addf %567, %572 : vector<16x128xf32>
    %c0_331 = arith.constant 0 : index
    %c0_332 = arith.constant 0 : index
    %574 = vector.load %arg3[%c0_331, %c0_332] : memref<128x128xf32, #tpu.memory_space<vmem>>, vector<128x128xf32>
    %cst_333 = arith.constant dense<0.000000e+00> : vector<16x128xf32>
    %575 = tpu.matmul %573, %574, %cst_333 {dimension_numbers = #tpu.dot_dimension_numbers<[1], [0], [0], [1], [0, 0, 1, 1], [], []>} : vector<16x128xf32>, vector<128x128xf32>, vector<16x128xf32> -> vector<16x128xf32>
    %c0_334 = arith.constant 0 : index
    %c100 = arith.constant 100 : index
    %576 = vector.load %arg5[%c0_334, %c100] : memref<32x128xf32, #tpu.memory_space<vmem>>, vector<16x16xf32>
    %cst_335 = arith.constant dense<0.000000e+00> : vector<16x128xf32>
    %577 = tpu.matmul %576, %476, %cst_335 {dimension_numbers = #tpu.dot_dimension_numbers<[1], [0], [0], [1], [0, 0, 1, 1], [], []>} : vector<16x16xf32>, vector<16x128xf32>, vector<16x128xf32> -> vector<16x128xf32>
    %578 = arith.addf %575, %577 : vector<16x128xf32>
    %c0_336 = arith.constant 0 : index
    %c120 = arith.constant 120 : index
    %579 = vector.load %arg5[%c0_336, %c120] : memref<32x128xf32, #tpu.memory_space<vmem>>, vector<16x1xf32>
    %580 = vector.broadcast %579 : vector<16x1xf32> to vector<16x128xf32>
    %581 = arith.addf %578, %580 : vector<16x128xf32>
    %c0_337 = arith.constant 0 : index
    %c4_338 = arith.constant 4 : index
    %582 = vector.load %arg5[%c0_337, %c4_338] : memref<32x128xf32, #tpu.memory_space<vmem>>, vector<32x16xf32>
    %cst_339 = arith.constant dense<0.000000e+00> : vector<32x128xf32>
    %583 = tpu.matmul %582, %581, %cst_339 {dimension_numbers = #tpu.dot_dimension_numbers<[1], [0], [0], [1], [0, 0, 1, 1], [], []>} : vector<32x16xf32>, vector<16x128xf32>, vector<32x128xf32> -> vector<32x128xf32>
    %c0_340 = arith.constant 0 : index
    %c121 = arith.constant 121 : index
    %584 = vector.load %arg5[%c0_340, %c121] : memref<32x128xf32, #tpu.memory_space<vmem>>, vector<32x1xf32>
    %585 = vector.broadcast %584 : vector<32x1xf32> to vector<32x128xf32>
    %586 = arith.addf %583, %585 : vector<32x128xf32>
    %cst_341 = arith.constant 5.000000e-01 : f32
    %587 = vector.broadcast %cst_341 : f32 to vector<32x128xf32>
    %588 = arith.mulf %586, %587 : vector<32x128xf32>
    %cst_342 = arith.constant 0.707106769 : f32
    %589 = vector.broadcast %cst_342 : f32 to vector<32x128xf32>
    %590 = arith.mulf %586, %589 : vector<32x128xf32>
    %cst_343 = arith.constant 0.000000e+00 : f32
    %591 = vector.broadcast %cst_343 : f32 to vector<32x128xf32>
    %592 = arith.cmpf oge, %590, %591 : vector<32x128xf32>
    %cst_344 = arith.constant 1.000000e+00 : f32
    %cst_345 = arith.constant -1.000000e+00 : f32
    %593 = vector.broadcast %cst_344 : f32 to vector<32x128xf32>
    %594 = vector.broadcast %cst_345 : f32 to vector<32x128xf32>
    %595 = arith.select %592, %593, %594 : vector<32x128xi1>, vector<32x128xf32>
    %596 = math.absf %590 : vector<32x128xf32>
    %cst_346 = arith.constant 0.327591091 : f32
    %597 = vector.broadcast %cst_346 : f32 to vector<32x128xf32>
    %598 = arith.mulf %597, %596 : vector<32x128xf32>
    %cst_347 = arith.constant 1.000000e+00 : f32
    %599 = vector.broadcast %cst_347 : f32 to vector<32x128xf32>
    %600 = arith.addf %599, %598 : vector<32x128xf32>
    %601 = tpu.reciprocal %600 {approx = true} : vector<32x128xf32> -> vector<32x128xf32>
    %cst_348 = arith.constant 1.06140542 : f32
    %602 = vector.broadcast %cst_348 : f32 to vector<32x128xf32>
    %603 = arith.mulf %602, %601 : vector<32x128xf32>
    %cst_349 = arith.constant -1.45315206 : f32
    %604 = vector.broadcast %cst_349 : f32 to vector<32x128xf32>
    %605 = arith.addf %603, %604 : vector<32x128xf32>
    %606 = arith.mulf %605, %601 : vector<32x128xf32>
    %cst_350 = arith.constant 1.42141378 : f32
    %607 = vector.broadcast %cst_350 : f32 to vector<32x128xf32>
    %608 = arith.addf %606, %607 : vector<32x128xf32>
    %609 = arith.mulf %608, %601 : vector<32x128xf32>
    %cst_351 = arith.constant -0.284496725 : f32
    %610 = vector.broadcast %cst_351 : f32 to vector<32x128xf32>
    %611 = arith.addf %609, %610 : vector<32x128xf32>
    %612 = arith.mulf %611, %601 : vector<32x128xf32>
    %cst_352 = arith.constant 0.254829586 : f32
    %613 = vector.broadcast %cst_352 : f32 to vector<32x128xf32>
    %614 = arith.addf %612, %613 : vector<32x128xf32>
    %615 = arith.mulf %614, %601 : vector<32x128xf32>
    %cst_353 = arith.constant 0.000000e+00 : f32
    %616 = vector.broadcast %cst_353 : f32 to vector<32x128xf32>
    %617 = arith.subf %616, %596 : vector<32x128xf32>
    %618 = arith.mulf %617, %596 : vector<32x128xf32>
    %619 = math.exp %618 : vector<32x128xf32>
    %620 = arith.mulf %615, %619 : vector<32x128xf32>
    %cst_354 = arith.constant 1.000000e+00 : f32
    %621 = vector.broadcast %cst_354 : f32 to vector<32x128xf32>
    %622 = arith.subf %621, %620 : vector<32x128xf32>
    %623 = arith.mulf %595, %622 : vector<32x128xf32>
    %cst_355 = arith.constant 1.000000e+00 : f32
    %624 = vector.broadcast %cst_355 : f32 to vector<32x128xf32>
    %625 = arith.addf %624, %623 : vector<32x128xf32>
    %626 = arith.mulf %588, %625 : vector<32x128xf32>
    %c0_356 = arith.constant 0 : index
    %c20 = arith.constant 20 : index
    %627 = vector.load %arg5[%c0_356, %c20] : memref<32x128xf32, #tpu.memory_space<vmem>>, vector<2x32xf32>
    %cst_357 = arith.constant dense<0.000000e+00> : vector<2x128xf32>
    %628 = tpu.matmul %627, %626, %cst_357 {dimension_numbers = #tpu.dot_dimension_numbers<[1], [0], [0], [1], [0, 0, 1, 1], [], []>} : vector<2x32xf32>, vector<32x128xf32>, vector<2x128xf32> -> vector<2x128xf32>
    %c0_358 = arith.constant 0 : index
    %c122 = arith.constant 122 : index
    %629 = vector.load %arg5[%c0_358, %c122] : memref<32x128xf32, #tpu.memory_space<vmem>>, vector<2x1xf32>
    %630 = vector.broadcast %629 : vector<2x1xf32> to vector<2x128xf32>
    %631 = arith.addf %628, %630 : vector<2x128xf32>
    %c0_359 = arith.constant 0 : index
    %c0_360 = arith.constant 0 : index
    %632 = vector.load %arg6[%c0_359, %c0_360] : memref<2x128xf32, #tpu.memory_space<vmem>>, vector<2x128xf32>
    tpu.vector_store %arg6[%c0_359, %c0_360], %631 {strides = array<i32>} : memref<2x128xf32, #tpu.memory_space<vmem>>, vector<2x128xf32>,
    return
  }
}

</mosaic_0001>

<bundles_post_ra>
// kernel: _lambda_.1
= control target key start
LH: loop header
LB: loop body
LE: loop exit
PB: predicated region body
PF: predicated region fallthrough
CT: control target
= control target key end

     0   :  { %11 = vsyncpa [#allocation4], 0  ;;  %s3950_s0 = inlined_call_operand.vmem [shape: f32[4], index: 0, kind: input, shape index: {}]   ;;  %s3951_s1 = inlined_call_operand.vmem [shape: f32[1,128], index: 1, kind: input, shape index: {}]   ;;  %s3952_s2 = inlined_call_operand.hbm [shape: f32[128,128], index: 2, kind: input, shape index: {}]   ;;  %s3953_s3 = inlined_call_operand.hbm [shape: f32[128,128], index: 3, kind: input, shape index: {}]   ;;  %s3954_s4 = inlined_call_operand.hbm [shape: f32[4,16,16,128], index: 4, kind: input, shape index: {}]   ;;  %s3955_s5 = inlined_call_operand.hbm [shape: f32[32,128], index: 5, kind: input, shape index: {}]   ;;  %s3956_s6 = inlined_call_operand.vmem [shape: f32[2,128], index: 6, kind: output, shape index: {}]  }
   0x1   :  { %12 = vsyncpa [#allocation3], 0 }
   0x2   :  { %13 = vsyncpa [#allocation7], 0 }
   0x3   :  { %14 = vsyncpa [#allocation10], 0  ;;  %s21_s23 = sshll.u32 %s3950_s0, 4  ;;  %s3234_s24 = smov [#allocation6]   ;;  %s22_s23 = int_to_ptr.vmem [resolvable:$true] %s21_s23 }
   0x4   :  { %s44_s25 = sshll.u32 %s3234_s24, 4  ;;  %s45_s25 = int_to_ptr.vmem [resolvable:$true] %s44_s25 }
   0x5   :  { %s3142_s26 = scalar_lea.vmem %s45_s25, 2048  ;;  %p3147_p1 = scmp.lt.s32.totalorder %s45_s25, %s45_s25 }
   0x6   :  { %p3143_p0 = scmp.ne.s32.totalorder %s45_s25, %s3142_s26  ;;  %p3148_p2 = scmp.lt.s32.totalorder %s3142_s26, %s3142_s26 }
   0x8   :  { %p3149_p3 = por %p3148_p2, %p3147_p1 }
   0xa   :  { %p3150_p4 = pnand %p3149_p3, %p3143_p0 }
   0xc   :  { %3153 = shalt.err (!%p3150_p4)
}
   0xd   :  { %s3235_s27 = smov 128   ;;  %s3236_s28 = smov 8  }
   0xe   :  { %50 = dma.hbm_to_vmem [thread:$0]  %s3953_s3, 2048, %s45_s25, [#allocation7], %s3235_s27, %s3235_s27, %s3236_s28  }
   0xf   :  { %s3154_s0 = scalar_lea.vmem %s22_s23, 16  ;;  %p3159_p6 = scmp.lt.s32.totalorder %s22_s23, %s22_s23 }
  0x10   :  { %p3155_p5 = scmp.ne.s32.totalorder %s22_s23, %s3154_s0  ;;  %p3160_p7 = scmp.lt.s32.totalorder %s3154_s0, %s3154_s0 }
  0x12   :  { %p3161_p8 = por %p3160_p7, %p3159_p6 }
  0x14   :  { %p3162_p9 = pnand %p3161_p8, %p3155_p5 }
  0x16   :  { %3165 = shalt.err (!%p3162_p9)
}
  0x17   :  { %s3237_s7 = smov [#allocation2]   ;;  %s3238_s8 = smov [#allocation5]  }
  0x18   :  { %24 = dma.vmem_to_smem %s22_s23, 16, %s3237_s7, [#allocation4]  }
  0x19   :  { %s32_s9 = sshll.u32 %s3238_s8, 4  ;;  %s3239_s10 = smov [#allocation8]   ;;  %s33_s9 = int_to_ptr.vmem [resolvable:$true] %s32_s9 }
  0x1a   :  { %s56_s11 = sshll.u32 %s3239_s10, 4  ;;  %s3174_s12 = scalar_lea.vmem %s33_s9, 2048  ;;  %s57_s11 = int_to_ptr.vmem [resolvable:$true] %s56_s11 }
  0x1b   :  { %p3175_p10 = scmp.ne.s32.totalorder %s33_s9, %s3174_s12  ;;  %p3179_p11 = scmp.lt.s32.totalorder %s33_s9, %s33_s9 }
  0x1c   :  { %p3180_p12 = scmp.lt.s32.totalorder %s3174_s12, %s3174_s12 }
  0x1e   :  { %p3181_p13 = por %p3180_p12, %p3179_p11 }
  0x20   :  { %p3182_p0 = pnand %p3181_p13, %p3175_p10 }
  0x22   :  { %3185 = shalt.err (!%p3182_p0)
}
  0x23   :  { %38 = dma.hbm_to_vmem [thread:$0]  %s3952_s2, 2048, %s33_s9, [#allocation3], %s3235_s27, %s3235_s27, %s3236_s28  }
  0x24   :  { %s3194_s14 = scalar_lea.vmem %s57_s11, 16384  ;;  %p3199_p2 = scmp.lt.s32.totalorder %s57_s11, %s57_s11 }
  0x25   :  { %p3195_p1 = scmp.ne.s32.totalorder %s57_s11, %s3194_s14  ;;  %p3200_p3 = scmp.lt.s32.totalorder %s3194_s14, %s3194_s14 }
  0x27   :  { %p3201_p4 = por %p3200_p3, %p3199_p2 }
  0x29   :  { %p3202_p5 = pnand %p3201_p4, %p3195_p1 }
  0x2b   :  { %3205 = shalt.err (!%p3202_p5)
}
  0x2c   :  { %62 = dma.hbm_to_vmem [thread:$0]  %s3954_s4, 16384, %s57_s11, [#allocation7], %s3235_s27, %s3235_s27, %s3236_s28  }
  0x2d   :  { %s3240_s17 = smov [#allocation9]  }
  0x2e   :  { %s68_s18 = sshll.u32 %s3240_s17, 4  ;;  %s69_s18 = int_to_ptr.vmem [resolvable:$true] %s68_s18 }
  0x2f   :  { %s3214_s19 = scalar_lea.vmem %s69_s18, 512  ;;  %p3219_p7 = scmp.lt.s32.totalorder %s69_s18, %s69_s18 }
  0x30   :  { %p3215_p6 = scmp.ne.s32.totalorder %s69_s18, %s3214_s19  ;;  %p3220_p8 = scmp.lt.s32.totalorder %s3214_s19, %s3214_s19 }
  0x32   :  { %p3221_p9 = por %p3220_p8, %p3219_p7 }
  0x34   :  { %p3222_p10 = pnand %p3221_p9, %p3215_p6 }
  0x36   :  { %3225 = shalt.err (!%p3222_p10)
}
  0x37   :  { %74 = dma.hbm_to_vmem [thread:$0]  %s3955_s5, 512, %s69_s18, [#allocation10], %s3235_s27, %s3235_s27, %s3236_s28  }
  0x38   :  { %3226 = dma.done.wait [#allocation4], 16  }
  0x39   :  { %3227 = vsyncadd [#allocation4], 4294967280 }
  0x3a   :  { %3228 = dma.done.wait [#allocation3], 2048  }
  0x3b   :  { %3229 = vsyncadd [#allocation3], 4294965248 }
  0x3c   :  { %3230 = dma.done.wait [#allocation7], 18432  }
  0x3d   :  { %3231 = vsyncadd [#allocation7], 4294948864 }
  0x3e   :  { %3232 = dma.done.wait [#allocation10], 512  }
  0x3f   :  { %3233 = vsyncadd [#allocation10], 4294966784 }
  0x40   :  { %90 = sfence }
  0x41   :  { %v3329_v0 = vld [vmem:[#allocation9 + $0x8] sm:$0xff]  ;;  %v3331_v1 = vld [vmem:[#allocation9] sm:$0xff]  ;;  %v3241_v2 = vmov 0   ;;  %v3333_v3 = vld [vmem:[#allocation5 + $0x78] sm:$0xff]  ;;  %s91_s4 = sld [smem:[#allocation2]]  ;;  %v3242_v6 = vmov 1  }
  0x42   :  { %3033 = vset.pattern.permute.xlu1 %v3241_v2  ;;  %3031 = vset.pattern.permute.xlu0 %v3241_v2  ;;  %v3337_v4 = vld [vmem:[#allocation5 + $0x70] sm:$0xff]  ;;  %v3345_v5 = vld [vmem:[%s3951_s1] sm:$0x1]  ;;  %v3347_v7 = vld [vmem:[#allocation5 + $0x68] sm:$0xff]  ;;  %v3243_v12 = vmov 2   ;;  %v3244_v17 = vmov 3  }
  0x43   :  { %224 = vperm.xlu1 %3033, %v3329_v0   ;;  %219 = vperm.xlu0 %3031, %v3331_v1   ;;  %v3358_v11 = vld [vmem:[#allocation5 + $0x60] sm:$0xff]  ;;  %v3362_v14 = vld [vmem:[#allocation5 + $0x58] sm:$0xff]  ;;  %v3245_v18 = vmov 116   ;;  %v3368_v20 = vld [vmem:[#allocation5 + $0x50] sm:$0xff]  ;;  %v3246_v29 = vmov 683565275  }
  0x44   :  { %2665 = vmatprep.subr.mxu0 %v3333_v3  ;;  %v3375_v22 = vld [vmem:[#allocation5 + $0x48] sm:$0xff]  ;;  %v3379_v25 = vld [vmem:[#allocation5 + $0x40] sm:$0xff]  ;;  %v3247_v31 = vmov 2475754826   ;;  %v3248_v33 = vmov 2131351028  }
  0x45   :  { %2666 = vmatpush3.msra.mxu0 %v3333_v3  ;;  %v3384_v35 = vld [vmem:[#allocation5 + $0x38] sm:$0xff]  ;;  %v3249_v36 = vmov 2102212464   ;;  %v3250_v38 = vmov 920167782   ;;  %v3388_v44 = vld [vmem:[#allocation5 + $0x30] sm:$0xff] }
  0x46   :  { %2667 = vmatprep.subr.mxu0 %v3337_v4  ;;  %v3251_v46 = vmov 1326507024   ;;  %v3393_v52 = vld [vmem:[#allocation5 + $0x28] sm:$0xff]  ;;  %v3401_v59 = vld [vmem:[#allocation5 + $0x20] sm:$0xff]  ;;  %s3252_s1 = smov 76   ;;  %s2475_s22 = sld [smem:[#allocation2 + $0x2]] }
  0x47   :  { %3034 = vset.pattern.permute.xlu1 %v3242_v6  ;;  %3032 = vset.pattern.permute.xlu0 %v3242_v6  ;;  %v96_v8 = vstv %s91_s4  ;;  %v3408_v6 = vld [vmem:[#allocation5 + $0x18] sm:$0xff]  ;;  %s2476_s24 = sld [smem:[#allocation2 + $0x3]]  ;;  %vm583_vm13 = vcmask 130048   ;;  %s3254_s27 = smov 60  }
  0x48   :  { %240 = vperm.xlu1 %3034, %v3329_v0   ;;  %236 = vperm.xlu0 %3032, %v3331_v1   ;;  %v3353_v9 = vmul.f32 %v96_v8, %v3345_v5  ;;  %s2474_s26 = sld [smem:[#allocation2 + $0x1]]  ;;  %s3257_s28 = smov 44  }
  0x49   :  { %2668 = vmatpush3.msra.mxu0 %v3337_v4  ;;  %s3259_s29 = smov 28   ;;  %s3261_s30 = smov 124  }
  0x4a   :  { %2669 = vmatprep.subr.mxu0 %v3347_v7  ;;  %v101_v10 = vand.u32 2139095040, %v3353_v9  ;;  %v98_v15 = vand.u32 2147483647, %v3353_v9  ;;  %vm100_vm7 = vcmp.lt.s32.totalorder %v3353_v9, 0  ;;  %vm190_vm12 = vweird.f32 %v3353_v9  ;;  %s3263_s0 = smov 108  }
  0x4b   :  { %2670 = vmatpush3.msra.mxu0 %v3347_v7 }
  0x4c   :  { %3035 = vset.pattern.permute.xlu1 %v3243_v12  ;;  %3036 = vset.pattern.permute.xlu0 %v3243_v12  ;;  %v102_v13 = vshrl.u32 %v101_v10, 23  ;;  %v105_v21 = vand.u32 8388607, %v98_v15  ;;  %vm99_vm8 = vcmp.le.f32.partialorder %v98_v15, 0.7853982 }
  0x4d   :  { %254 = vperm.xlu1 %3035, %v3331_v1   ;;  %258 = vperm.xlu0 %3036, %v3329_v0   ;;  %s204_s23 = sand.u32 2147483647, %s2475_s22 }
  0x4e   :  { %2671 = vmatprep.subr.mxu0 %v3358_v11  ;;  %v2477_v16 = vadd.s32 4294967169, %v102_v13  ;;  %v106_v26 = vor.u32 8388608, %v105_v21  ;;  %v3426_v21 = vld [vmem:[#allocation5 + $0x8] sm:$0xff]  ;;  %s205_s25 = ssub.f32 0.0, %s204_s23 }
  0x4f   :  { %2672 = vmatpush3.msra.mxu0 %v3358_v11 }
  0x50   :  { %2673 = vmatprep.subr.mxu0 %v3362_v14  ;;  %v108_v19 = vadd.s32 1, %v2477_v16  ;;  %v146_v48 = vshll.u32 %v106_v26, 8  ;;  %v3432_v26 = vld [vmem:[#allocation5] sm:$0xff] }
  0x51   :  { %3037 = vset.pattern.permute.xlu1 %v3244_v17  ;;  %3038 = vset.pattern.permute.xlu0 %v3245_v18 }
  0x52   :  { %272 = vperm.xlu1 %3037, %v3331_v1   ;;  %290 = vperm.xlu0 %3038, %v3331_v1   ;;  %vm109_vm0 = vcmp.gt.s32.totalorder %v108_v19, 0 }
  0x53   :  { %2674 = vmatpush3.msra.mxu0 %v3362_v14  ;;  %v110_v23 = vsel %vm109_vm0, %v108_v19, 0  ;;  %v3422_v19 = vld [vmem:[#allocation5 + $0x10] sm:$0xff] }
  0x54   :  { %2675 = vmatprep.subr.mxu0 %v3368_v20  ;;  %v112_v24 = vand.u32 31, %v110_v23  ;;  %v111_v27 = vshrl.u32 %v110_v23, 5 }
  0x55   :  { %2676 = vmatpush3.msra.mxu0 %v3368_v20 }
  0x56   :  { %276 = vperm.xlu1 %3037, %v3329_v0   ;;  %2677 = vmatprep.subr.mxu0 %v3375_v22  ;;  %v113_v28 = vsub.s32 32, %v112_v24  ;;  %v115_v30 = vshll.u32 %v3246_v29, %v112_v24  ;;  %v118_v32 = vshll.u32 %v3247_v31, %v112_v24  ;;  %v121_v34 = vshll.u32 %v3248_v33, %v112_v24 }
  0x57   :  { %2678 = vmatpush3.msra.mxu0 %v3375_v22  ;;  %v124_v37 = vshll.u32 %v3249_v36, %v112_v24  ;;  %v127_v39 = vshll.u32 %v3250_v38, %v112_v24  ;;  %vm130_vm1 = vcmp.lt.s32.totalorder %v111_v27, 1  ;;  %vm133_vm2 = vcmp.lt.s32.totalorder %v111_v27, 4  ;;  %581 = vrot.lane.b32.xlu0 %v3329_v0, %s3252_s1 }
  0x58   :  { %2679 = vmatprep.subr.mxu0 %v3379_v25  ;;  %v114_v40 = vshrl.u32 %v3246_v29, %v113_v28  ;;  %v116_v41 = vshrl.u32 %v3247_v31, %v113_v28  ;;  %v119_v42 = vshrl.u32 %v3248_v33, %v113_v28  ;;  %v122_v43 = vshrl.u32 %v3249_v36, %v113_v28 }
  0x59   :  { %2680 = vmatpush3.msra.mxu0 %v3379_v25  ;;  %v125_v45 = vshrl.u32 %v3250_v38, %v113_v28  ;;  %v128_v47 = vshrl.u32 %v3251_v46, %v113_v28  ;;  %vm131_vm3 = vcmp.lt.s32.totalorder %v111_v27, 2  ;;  %vm132_vm4 = vcmp.lt.s32.totalorder %v111_v27, 3 }
  0x5a   :  { %3039 = vset.pattern.permute.xlu1 %v3245_v18  ;;  %2681 = vmatprep.subr.mxu0 %v3384_v35  ;;  %v117_v49 = vor.u32 %v116_v41, %v115_v30  ;;  %v120_v50 = vor.u32 %v119_v42, %v118_v32  ;;  %v123_v51 = vor.u32 %v122_v43, %v121_v34 }
  0x5b   :  { %294 = vperm.xlu1 %3039, %v3329_v0   ;;  %2682 = vmatpush3.msra.mxu0 %v3384_v35  ;;  %v126_v53 = vor.u32 %v125_v45, %v124_v37  ;;  %v129_v54 = vor.u32 %v128_v47, %v127_v39 }
  0x5c   :  { %2683 = vmatprep.subr.mxu0 %v3388_v44  ;;  %v134_v55 = vsel %vm130_vm1, %v114_v40, %v117_v49  ;;  %v135_v56 = vsel %vm133_vm2, %v123_v51, 2102212464  ;;  %v138_v57 = vsel %vm130_vm1, %v117_v49, %v120_v50  ;;  %v142_v58 = vsel %vm130_vm1, %v120_v50, %v123_v51 }
  0x5d   :  { %2684 = vmatpush3.msra.mxu0 %v3388_v44  ;;  %v136_v60 = vsel %vm132_vm4, %v120_v50, %v135_v56  ;;  %v139_v61 = vsel %vm133_vm2, %v126_v53, 920167782  ;;  %v143_v62 = vsel %vm133_vm2, %v129_v54, 1326507024 }
  0x5e   :  { %2685 = vmatprep.subr.mxu0 %v3393_v52  ;;  %v140_v63 = vsel %vm132_vm4, %v123_v51, %v139_v61  ;;  %v144_v2 = vsel %vm132_vm4, %v126_v53, %v143_v62  ;;  %v137_v8 = vsel %vm131_vm3, %v134_v55, %v136_v60  ;;  %v206_v60 = vstv %s205_s25 }
  0x5f   :  { %2686 = vmatpush3.msra.mxu0 %v3393_v52  ;;  %579 = vrot.lane.b32.xlu1 %v3331_v1, %s3252_s1  ;;  %v141_v10 = vsel %vm131_vm3, %v138_v57, %v140_v63  ;;  %v145_v12 = vsel %vm131_vm3, %v142_v58, %v144_v2  ;;  %v153_v23 = vmul.u32 %v146_v48, %v137_v8  ;;  %v210_v61 = vstv %s2476_s24 }
  0x60   :  { %2687 = vmatprep.subr.mxu0 %v3401_v59  ;;  %v3415_v13 = vmul.u32.u64.low %v146_v48, %v145_v12  ;;  %v3416_v16 = vmul.u32.u64.high %v146_v48, %v145_v12, %v3415_v13  ;;  %v3418_v17 = vmul.u32.u64.low %v146_v48, %v141_v10  ;;  %v3419_v18 = vmul.u32.u64.high %v146_v48, %v141_v10, %v3418_v17 }
  0x61   :  { %2688 = vmatpush3.msra.mxu0 %v3401_v59  ;;  %v207_v63 = vmul.f32 %v206_v60, %v3345_v5  ;;  %v211_v2 = vmul.f32 %v210_v61, %v3345_v5  ;;  %vm3265_vm4 = vmmov 0  }
  0x62   :  { %2689 = vmatprep.subr.mxu0 %v3408_v6  ;;  %vm155_vm5 = vc.u32 %v3416_v16, %v3418_v17  ;;  %v156_v24 = vadd.s32 1, %v3419_v18  ;;  %v154_v40 = vadd.s32 %v3418_v17, %v3416_v16 }
  0x63   :  { %2690 = vmatpush3.msra.mxu0 %v3408_v6  ;;  %v208_v12 = vmul.f32 1.442695, %v207_v63  ;;  %v212_v13 = vadd.f32 1.0, %v211_v2 }
  0x64   :  { %2691 = vmatprep.subr.mxu0 %v3422_v19  ;;  %v157_v27 = vsel %vm155_vm5, %v156_v24, %v3419_v18  ;;  %v228_v18 = vlaneseq }
  0x65   :  { %2692 = vmatpush3.msra.mxu0 %v3422_v19  ;;  %v158_v28 = vadd.s32 %v157_v27, %v153_v23 }
  0x66   :  { %2693 = vmatprep.subr.mxu0 %v3426_v21  ;;  %v3447_v27 = vshrl.u32 %v228_v18, 7  ;;  %v3514_v18 = vld [vmem:[#allocation6 + $0x48] sm:$0xff] }
  0x67   :  { %2694 = vmatpush3.msra.mxu0 %v3426_v21  ;;  %v159_v29 = vadd.s32 536870912, %v158_v28 }
  0x68   :  { %2695 = vmatprep.subr.mxu0 %v3432_v26 }
  0x69   :  { %2696 = vmatpush3.msra.mxu0 %v3432_v26  ;;  %v160_v30 = vshrl.u32 %v159_v29, 30 }
  0x6a   :  { %2742 = vmatprep.subr.mxu0 %v3333_v3 }
  0x6b   :  { %v161_v31 = vshll.u32 %v160_v30, 30  ;;  %v184_v56 = vsub.s32 4, %v160_v30 }
  0x6d   :  { %v162_v32 = vsub.s32 %v158_v28, %v161_v31  ;;  %v185_v57 = vsel %vm100_vm7, %v184_v56, %v160_v30  ;;  %v202_v28 = vstv %s2474_s26  ;;  %v3451_v30 = vsub.s32 0, %v3447_v27 }
  0x6e   :  { %v187_v58 = vsel %vm99_vm8, 0, %v185_v57  ;;  %v203_v31 = vmul.f32 %v202_v28, %v3345_v5  ;;  %v3526_v28 = vld [vmem:[#allocation6 + $0x30] sm:$0xff] }
  0x6f   :  { %v164_v33 = vsub.s32 0, %v162_v32  ;;  %v191_v62 = vadd.s32 3, %v187_v58 }
  0x71   :  { %v2478_v34 = vmin.u32 %v164_v33, %v162_v32  ;;  %v192_v10 = vand.u32 3, %v191_v62 }
  0x73   :  { %v166_v36 = vclz %v2478_v34  ;;  %vm194_vm9 = vcmp.eq.s32.totalorder %v192_v10, 0  ;;  %vm197_vm10 = vcmp.eq.s32.totalorder %v192_v10, 2  ;;  %vm193_vm11 = vcmp.lt.s32.totalorder %v192_v10, 2 }
  0x75   :  { %v2479_v37 = vadd.s32 4294967294, %v166_v36 }
  0x77   :  { %vm2480_vm6 = vcmp.lt.s32.totalorder %v2479_v37, 0 }
  0x78   :  { %v169_v38 = vsel %vm2480_vm6, 0, %v2479_v37  ;;  %v247_v37 = vrot.slane %v203_v31, %v3451_v30  ;;  %v3534_v31 = vld [vmem:[#allocation6 + $0x20] sm:$0xff] }
  0x79   :  { %v174_v39 = vsub.s32 4294967266, %v169_v38  ;;  %v170_v41 = vsub.s32 32, %v169_v38  ;;  %v171_v43 = vshll.u32 %v162_v32, %v169_v38 }
  0x7b   :  { %v175_v42 = vadd.s32 127, %v174_v39  ;;  %v172_v45 = vshrl.u32 %v154_v40, %v170_v41 }
  0x7d   :  { %v176_v46 = vshll.u32 %v175_v42, 23  ;;  %v173_v47 = vor.u32 %v172_v45, %v171_v43 }
  0x7f   :  { %v177_v48 = vor.u32 4788187, %v176_v46  ;;  %v180_v50 = vcvt.s32.f32 %v173_v47 }
  0x81   :  { %v178_v49 = vand.u32 2147483647, %v177_v48 }
  0x83   :  { %v181_v51 = vmul.f32 %v180_v50, %v178_v49 }
  0x85   :  { %v182_v53 = vxor.u32 2147483648, %v181_v51 }
  0x87   :  { %v183_v54 = vsel %vm100_vm7, %v182_v53, %v181_v51 }
  0x88   :  { %v186_v55 = vsel %vm99_vm8, %v3353_v9, %v183_v54 }
  0x89   :  { %3052 = vcosq.f32 %v186_v55 }
  0x8a   :  { %3054 = vsinq.f32 %v186_v55 }
  0x8b   :  { %3056 = vpow2.f32 %v208_v12  ;;  %v3496_v12 = vld [vmem:[#allocation6 + $0x70] sm:$0xff] }
  0x8c   :  { %3058 = vlog2.f32 %v212_v13  ;;  %v3504_v13 = vld [vmem:[#allocation6 + $0x60] sm:$0xff] }
  0x96   :  { %v3053_v8 = vpop.eup %3052 }
  0x97   :  { %v3055_v15 = vpop.eup %3054  ;;  %v198_v17 = vxor.u32 2147483648, %v3053_v8 }
  0x98   :  { %v195_v16 = vxor.u32 2147483648, %v3055_v15  ;;  %v3057_v38 = vpop.eup %3056 }
  0x99   :  { %v199_v24 = vsel %vm197_vm10, %v198_v17, %v3055_v15  ;;  %v3059_v40 = vpop.eup %3058  ;;  %v265_v46 = vrot.slane %v3057_v38, %v3451_v30  ;;  %v3510_v17 = vld [vmem:[#allocation6 + $0x50] sm:$0xff] }
  0x9a   :  { %v196_v23 = vsel %vm194_vm9, %v3053_v8, %v195_v16  ;;  %v214_v5 = vmul.f32 0.6931472, %v3059_v40  ;;  %v3506_v16 = vld [vmem:[#allocation6 + $0x58] sm:$0xff]  ;;  %v390_v40 = vld [vmem:[#allocation8] sm:$0xff]  ;;  %vm2392_vm9 = vcmask 261120  }
  0x9b   :  { %v200_v29 = vsel %vm193_vm11, %v196_v23, %v199_v24  ;;  %v3518_v23 = vld [vmem:[#allocation6 + $0x40] sm:$0xff]  ;;  %v3522_v24 = vld [vmem:[#allocation6 + $0x38] sm:$0xff] }
  0x9c   :  { %v201_v32 = vsel %vm190_vm12, nan, %v200_v29  ;;  %v283_v54 = vrot.slane %v214_v5, %v3451_v30  ;;  %v3530_v29 = vld [vmem:[#allocation6 + $0x28] sm:$0xff] }
  0x9d   :  { %v231_v36 = vrot.slane %v201_v32, %v3451_v30  ;;  %v3538_v32 = vld [vmem:[#allocation6 + $0x18] sm:$0xff] }
  0x9e   :  { %3965 = vst [vmem:[#allocation15_spill] sm:$0xff] %v3538_v32 }
  0xbe   :  { %v225_v33 = vpop.permute.xlu1 %224  ;;  %v220_v34 = vpop.permute.xlu0 %219 }
  0xbf   :  { %v233_v39 = vmul.f32 %v231_v36, %v220_v34  ;;  %v234_v43 = vmul.f32 %v231_v36, %v225_v33  ;;  %v3542_v33 = vld [vmem:[#allocation6 + $0x10] sm:$0xff]  ;;  %v3546_v34 = vld [vmem:[#allocation6 + $0x8] sm:$0xff]  ;;  %v3550_v36 = vld [vmem:[#allocation6] sm:$0xff] }
  0xc0   :  { %3966 = vst [vmem:[#allocation16_spill] sm:$0xff] %v3542_v33  ;;  %3967 = vst [vmem:[#allocation17_spill] sm:$0xff] %v3546_v34 }
  0xc1   :  { %3968 = vst [vmem:[#allocation18_spill] sm:$0xff] %v3550_v36 }
  0xc3   :  { %v241_v41 = vpop.permute.xlu1 %240  ;;  %v237_v42 = vpop.permute.xlu0 %236 }
  0xc4   :  { %v250_v9 = vmul.f32 %v247_v37, %v241_v41  ;;  %v249_v45 = vmul.f32 %v247_v37, %v237_v42  ;;  %v3253_v37 = vmov 117   ;;  %v3564_v41 = vsub.s32 2, %v3447_v27 }
  0xc5   :  { %3041 = vset.pattern.permute.xlu0 %v3253_v37  ;;  %3040 = vset.pattern.permute.xlu1 %v3253_v37  ;;  %v3582_v37 = vsub.s32 6, %v3447_v27 }
  0xc6   :  { %v252_v47 = vadd.f32 %v250_v9, %v234_v43  ;;  %v251_v48 = vadd.f32 %v249_v45, %v233_v39  ;;  %743 = vperm.xlu0 %3041, %v3329_v0   ;;  %739 = vperm.xlu1 %3040, %v3331_v1   ;;  %v3561_v39 = vsub.s32 1, %v3447_v27  ;;  %v391_v43 = vld [vmem:[#allocation8 + $0x8] sm:$0xff]  ;;  %v399_v9 = vld [vmem:[#allocation8 + $0x10] sm:$0xff]  ;;  %v400_v45 = vld [vmem:[#allocation8 + $0x18] sm:$0xff] }
  0xc8   :  { %v255_v49 = vpop.permute.xlu1 %254  ;;  %v259_v50 = vpop.permute.xlu0 %258 }
  0xc9   :  { %v267_v51 = vmul.f32 %v265_v46, %v255_v49  ;;  %v268_v53 = vmul.f32 %v265_v46, %v259_v50  ;;  %v3567_v46 = vsub.s32 3, %v3447_v27  ;;  %v410_v49 = vld [vmem:[#allocation8 + $0x20] sm:$0xff]  ;;  %v411_v50 = vld [vmem:[#allocation8 + $0x28] sm:$0xff] }
  0xca   :  { %1049 = vrot.lane.b32.xlu1 %v3331_v1, %s3254_s27 }
  0xcb   :  { %v269_v55 = vadd.f32 %v267_v51, %v251_v48  ;;  %v270_v56 = vadd.f32 %v268_v53, %v252_v47  ;;  %v3574_v53 = vsub.s32 4, %v3447_v27 }
  0xcd   :  { %v273_v57 = vpop.permute.xlu1 %272  ;;  %v291_v60 = vpop.permute.xlu0 %290 }
  0xce   :  { %v285_v58 = vmul.f32 %v283_v54, %v273_v57  ;;  %1051 = vrot.lane.b32.xlu1 %v3329_v0, %s3254_s27 }
  0xd0   :  { %v287_v61 = vadd.f32 %v285_v58, %v269_v55  ;;  %v421_v58 = vld [vmem:[#allocation8 + $0x30] sm:$0xff] }
  0xd1   :  { %v277_v62 = vpop.permute.xlu1 %276 }
  0xd2   :  { %v286_v63 = vmul.f32 %v283_v54, %v277_v62  ;;  %v297_v2 = vadd.f32 %v291_v60, %v287_v61  ;;  %v422_v60 = vld [vmem:[#allocation8 + $0x38] sm:$0xff]  ;;  %v3578_v62 = vsub.s32 5, %v3447_v27 }
  0xd4   :  { %2697 = vmatprep.mubr.f32.mxu0 %v297_v2  ;;  %v288_v8 = vadd.f32 %v286_v63, %v270_v56 }
  0xd6   :  { %v295_v15 = vpop.permute.xlu1 %294 }
  0xd7   :  { %v298_v10 = vadd.f32 %v295_v15, %v288_v8 }
  0xd9   :  { %2698 = vmatmul.mubr.f32.vlgmr.msra.gmra.mxu0 %v298_v10  ;;  %2700 = vmatprep.subr.mxu1 %v298_v10 }
  0xda   :  { %2701 = vmatpush3.msra.mxu1 %v298_v10  ;;  %2743 = vmatpush3.msra.mxu0 %v3333_v3  ;;  %v432_v10 = vld [vmem:[#allocation8 + $0x40] sm:$0xff] }
  0xdb   :  { %2702 = vmatprep.subr.mxu1 %v297_v2  ;;  %2744 = vmatprep.subr.mxu0 %v3337_v4 }
  0xdc   :  { %2703 = vmatpush3.msra.mxu1 %v297_v2  ;;  %2745 = vmatpush3.msra.mxu0 %v3337_v4  ;;  %v580_v4 = vpop.permute.xlu1 %579 }
  0xdd   :  { %2746 = vmatprep.subr.mxu0 %v3347_v7  ;;  %2704 = vmatprep.mubr.msk.f32.mxu1 %vm583_vm13, %v580_v4  ;;  %v433_v4 = vld [vmem:[#allocation8 + $0x48] sm:$0xff] }
  0xde   :  { %2747 = vmatpush3.msra.mxu0 %v3347_v7  ;;  %v582_v7 = vpop.permute.xlu0 %581 }
  0xdf   :  { %2748 = vmatprep.subr.mxu0 %v3358_v11  ;;  %2705 = vmatmul.mubr.msk.f32.vlgmr.msra.gmra.mxu1 %vm583_vm13, %v582_v7 }
  0xe0   :  { %2749 = vmatpush3.msra.mxu0 %v3358_v11  ;;  %v3492_v11 = vld [vmem:[#allocation6 + $0x78] sm:$0xff] }
  0xe1   :  { %2750 = vmatprep.subr.mxu0 %v3362_v14  ;;  %2707 = vmatprep.subr.mxu1 %v3492_v11 }
  0xe2   :  { %2751 = vmatpush3.msra.mxu0 %v3362_v14  ;;  %2708 = vmatpush3.msra.mxu1 %v3492_v11 }
  0xe3   :  { %2752 = vmatprep.subr.mxu0 %v3368_v20  ;;  %2709 = vmatprep.subr.mxu1 %v3496_v12 }
  0xe4   :  { %2753 = vmatpush3.msra.mxu0 %v3368_v20  ;;  %2710 = vmatpush3.msra.mxu1 %v3496_v12 }
  0xe5   :  { %2754 = vmatprep.subr.mxu0 %v3375_v22 }
  0xe6   :  { %2755 = vmatpush3.msra.mxu0 %v3375_v22 }
  0xe7   :  { %2756 = vmatprep.subr.mxu0 %v3379_v25 }
  0xe8   :  { %2757 = vmatpush3.msra.mxu0 %v3379_v25 }
  0xe9   :  { %2758 = vmatprep.subr.mxu0 %v3384_v35 }
  0xea   :  { %2759 = vmatpush3.msra.mxu0 %v3384_v35 }
  0xeb   :  { %2760 = vmatprep.subr.mxu0 %v3388_v44 }
  0xec   :  { %2761 = vmatpush3.msra.mxu0 %v3388_v44 }
  0xed   :  { %2762 = vmatprep.subr.mxu0 %v3393_v52 }
  0xee   :  { %2763 = vmatpush3.msra.mxu0 %v3393_v52 }
  0xef   :  { %2764 = vmatprep.subr.mxu0 %v3401_v59 }
  0xf0   :  { %2765 = vmatpush3.msra.mxu0 %v3401_v59 }
  0xf1   :  { %2766 = vmatprep.subr.mxu0 %v3408_v6 }
  0xf2   :  { %2767 = vmatpush3.msra.mxu0 %v3408_v6 }
  0xf3   :  { %2768 = vmatprep.subr.mxu0 %v3422_v19 }
  0xf4   :  { %2769 = vmatpush3.msra.mxu0 %v3422_v19 }
  0xf5   :  { %2770 = vmatprep.subr.mxu0 %v3426_v21 }
  0xf6   :  { %2771 = vmatpush3.msra.mxu0 %v3426_v21 }
  0xf7   :  { %2772 = vmatprep.subr.mxu0 %v3432_v26 }
  0xf8   :  { %2773 = vmatpush3.msra.mxu0 %v3432_v26 }
  0xf9   :  { %2819 = vmatprep.subr.mxu0 %v3333_v3  ;;  %v3500_v3 = vld [vmem:[#allocation6 + $0x68] sm:$0xff] }
  0xfa   :  { %2711 = vmatprep.subr.mxu1 %v3500_v3 }
  0xfb   :  { %2712 = vmatpush3.msra.mxu1 %v3500_v3 }
  0xfc   :  { %2713 = vmatprep.subr.mxu1 %v3504_v13 }
  0xfd   :  { %2714 = vmatpush3.msra.mxu1 %v3504_v13 }
  0xfe   :  { %2715 = vmatprep.subr.mxu1 %v3506_v16 }
  0xff   :  { %2716 = vmatpush3.msra.mxu1 %v3506_v16 }
 0x100   :  { %2717 = vmatprep.subr.mxu1 %v3510_v17 }
 0x101   :  { %2718 = vmatpush3.msra.mxu1 %v3510_v17 }
 0x102   :  { %2719 = vmatprep.subr.mxu1 %v3514_v18 }
 0x103   :  { %2720 = vmatpush3.msra.mxu1 %v3514_v18 }
 0x104   :  { %2721 = vmatprep.subr.mxu1 %v3518_v23 }
 0x105   :  { %2722 = vmatpush3.msra.mxu1 %v3518_v23 }
 0x106   :  { %2723 = vmatprep.subr.mxu1 %v3522_v24 }
 0x107   :  { %2724 = vmatpush3.msra.mxu1 %v3522_v24 }
 0x108   :  { %2725 = vmatprep.subr.mxu1 %v3526_v28 }
 0x109   :  { %2726 = vmatpush3.msra.mxu1 %v3526_v28 }
 0x10a   :  { %2727 = vmatprep.subr.mxu1 %v3530_v29 }
 0x10b   :  { %2728 = vmatpush3.msra.mxu1 %v3530_v29 }
 0x10c   :  { %2729 = vmatprep.subr.mxu1 %v3534_v31 }
 0x10d   :  { %2730 = vmatpush3.msra.mxu1 %v3534_v31 }
 0x10e   :  { %2731 = vmatprep.subr.mxu1 %v3538_v32 }
 0x10f   :  { %2732 = vmatpush3.msra.mxu1 %v3538_v32 }
 0x110   :  { %2733 = vmatprep.subr.mxu1 %v3542_v33 }
 0x111   :  { %2734 = vmatpush3.msra.mxu1 %v3542_v33 }
 0x112   :  { %2735 = vmatprep.subr.mxu1 %v3546_v34 }
 0x113   :  { %2736 = vmatpush3.msra.mxu1 %v3546_v34  ;;  %v455_v34 = vld [vmem:[#allocation8 + $0x68] sm:$0xff] }
 0x114   :  { %2737 = vmatprep.subr.mxu1 %v3550_v36 }
 0x115   :  { %2738 = vmatpush3.msra.mxu1 %v3550_v36 }
 0x199   :  { %v3558_v38 = vpop.f32.mrf.mxu0 }
 0x19b   :  { %v381_v42 = vpop.f32.mrf.mxu0 }
 0x19c   :  { %v395_v47 = vrot.slane %v381_v42, %v3451_v30  ;;  %v404_v48 = vrot.slane %v381_v42, %v3561_v39  ;;  %v415_v5 = vrot.slane %v381_v42, %v3564_v41  ;;  %v426_v51 = vrot.slane %v381_v42, %v3567_v46 }
 0x19d   :  { %v437_v61 = vrot.slane %v381_v42, %v3574_v53  ;;  %v448_v7 = vrot.slane %v381_v42, %v3578_v62  ;;  %v459_v36 = vrot.slane %v381_v42, %v3582_v37 }
 0x19e   :  { %v396_v54 = vmul.f32 %v395_v47, %v390_v40  ;;  %v397_v55 = vmul.f32 %v395_v47, %v391_v43  ;;  %v405_v56 = vmul.f32 %v404_v48, %v399_v9  ;;  %v406_v57 = vmul.f32 %v404_v48, %v400_v45  ;;  %v443_v47 = vld [vmem:[#allocation8 + $0x50] sm:$0xff]  ;;  %v444_v48 = vld [vmem:[#allocation8 + $0x58] sm:$0xff] }
 0x19f   :  { %v416_v8 = vmul.f32 %v415_v5, %v410_v49  ;;  %v417_v15 = vmul.f32 %v415_v5, %v411_v50  ;;  %v427_v9 = vmul.f32 %v426_v51, %v421_v58  ;;  %v428_v45 = vmul.f32 %v426_v51, %v422_v60  ;;  %v465_v60 = vld [vmem:[#allocation8 + $0x70] sm:$0xff] }
 0x1a0   :  { %v407_v63 = vadd.f32 %v405_v56, %v396_v54  ;;  %v408_v2 = vadd.f32 %v406_v57, %v397_v55  ;;  %v3586_v54 = vsub.s32 7, %v3447_v27  ;;  %v438_v50 = vmul.f32 %v437_v61, %v432_v10  ;;  %v454_v57 = vld [vmem:[#allocation8 + $0x60] sm:$0xff] }
 0x1a1   :  { %v439_v55 = vmul.f32 %v437_v61, %v433_v4  ;;  %v449_v56 = vmul.f32 %v448_v7, %v443_v47  ;;  %v481_v51 = vrot.slane %v3558_v38, %v3451_v30  ;;  %v492_v61 = vrot.slane %v3558_v38, %v3561_v39  ;;  %v476_v10 = vld [vmem:[#allocation8 + $0x80] sm:$0xff]  ;;  %v487_v47 = vld [vmem:[#allocation8 + $0x90] sm:$0xff] }
 0x1a2   :  { %v418_v40 = vadd.f32 %v416_v8, %v407_v63  ;;  %v419_v43 = vadd.f32 %v417_v15, %v408_v2  ;;  %v450_v63 = vmul.f32 %v448_v7, %v444_v48  ;;  %v470_v58 = vrot.slane %v381_v42, %v3586_v54  ;;  %v466_v2 = vld [vmem:[#allocation8 + $0x78] sm:$0xff] }
 0x1a3   :  { %v460_v15 = vmul.f32 %v459_v36, %v454_v57  ;;  %v503_v42 = vrot.slane %v3558_v38, %v3564_v41  ;;  %v488_v48 = vld [vmem:[#allocation8 + $0x98] sm:$0xff] }
 0x1a4   :  { %v429_v49 = vadd.f32 %v427_v9, %v418_v40  ;;  %v430_v5 = vadd.f32 %v428_v45, %v419_v43  ;;  %v461_v40 = vmul.f32 %v459_v36, %v455_v34  ;;  %v477_v43 = vld [vmem:[#allocation8 + $0x88] sm:$0xff]  ;;  %v471_v9 = vmul.f32 %v470_v58, %v465_v60 }
 0x1a5   :  { %v472_v45 = vmul.f32 %v470_v58, %v466_v2  ;;  %v514_v34 = vrot.slane %v3558_v38, %v3567_v46  ;;  %v499_v36 = vld [vmem:[#allocation8 + $0xa8] sm:$0xff]  ;;  %v509_v58 = vld [vmem:[#allocation8 + $0xb0] sm:$0xff]  ;;  %v525_v60 = vrot.slane %v3558_v38, %v3574_v53  ;;  %v510_v2 = vld [vmem:[#allocation8 + $0xb8] sm:$0xff] }
 0x1a6   :  { %v440_v33 = vadd.f32 %v438_v50, %v429_v49  ;;  %v441_v32 = vadd.f32 %v439_v55, %v430_v5  ;;  %v483_v49 = vmul.f32 %v481_v51, %v477_v43  ;;  %v498_v50 = vld [vmem:[#allocation8 + $0xa0] sm:$0xff]  ;;  %v536_v43 = vrot.slane %v3558_v38, %v3578_v62 }
 0x1a8   :  { %v451_v8 = vadd.f32 %v449_v56, %v440_v33  ;;  %v452_v27 = vadd.f32 %v450_v63, %v441_v32  ;;  %v482_v33 = vmul.f32 %v481_v51, %v476_v10  ;;  %v493_v56 = vmul.f32 %v492_v61, %v487_v47  ;;  %v520_v51 = vld [vmem:[#allocation8 + $0xc0] sm:$0xff]  ;;  %v521_v10 = vld [vmem:[#allocation8 + $0xc8] sm:$0xff]  ;;  %v531_v47 = vld [vmem:[#allocation8 + $0xd0] sm:$0xff] }
 0x1a9   :  { %v494_v63 = vmul.f32 %v492_v61, %v488_v48  ;;  %v547_v61 = vrot.slane %v3558_v38, %v3582_v37  ;;  %v532_v48 = vld [vmem:[#allocation8 + $0xd8] sm:$0xff] }
 0x1aa   :  { %v463_v4 = vadd.f32 %v461_v40, %v452_v27  ;;  %v462_v7 = vadd.f32 %v460_v15, %v451_v8  ;;  %v504_v27 = vmul.f32 %v503_v42, %v498_v50  ;;  %v505_v40 = vmul.f32 %v503_v42, %v499_v36  ;;  %v542_v50 = vld [vmem:[#allocation8 + $0xe0] sm:$0xff]  ;;  %v543_v36 = vld [vmem:[#allocation8 + $0xe8] sm:$0xff] }
 0x1ab   :  { %v558_v42 = vrot.slane %v3558_v38, %v3586_v54  ;;  %v2706_v38 = vpop.f32.mrf.mxu1 }
 0x1ac   :  { %v473_v5 = vadd.f32 %v471_v9, %v462_v7  ;;  %v474_v32 = vadd.f32 %v472_v45, %v463_v4  ;;  %v515_v9 = vmul.f32 %v514_v34, %v509_v58  ;;  %v516_v7 = vmul.f32 %v514_v34, %v510_v2  ;;  %v553_v58 = vld [vmem:[#allocation8 + $0xf0] sm:$0xff]  ;;  %v554_v34 = vld [vmem:[#allocation8 + $0xf8] sm:$0xff] }
 0x1ae   :  { %v484_v55 = vadd.f32 %v482_v33, %v473_v5  ;;  %v485_v57 = vadd.f32 %v483_v49, %v474_v32  ;;  %v526_v5 = vmul.f32 %v525_v60, %v520_v51  ;;  %v527_v32 = vmul.f32 %v525_v60, %v521_v10 }
 0x1b0   :  { %v495_v8 = vadd.f32 %v493_v56, %v484_v55  ;;  %v496_v15 = vadd.f32 %v494_v63, %v485_v57  ;;  %v537_v56 = vmul.f32 %v536_v43, %v531_v47  ;;  %v538_v63 = vmul.f32 %v536_v43, %v532_v48  ;;  %v654_v43 = vpop.f32.mrf.mxu1 }
 0x1b2   :  { %v506_v4 = vadd.f32 %v504_v27, %v495_v8  ;;  %v507_v45 = vadd.f32 %v505_v40, %v496_v15  ;;  %v548_v8 = vmul.f32 %v547_v61, %v542_v50  ;;  %v549_v15 = vmul.f32 %v547_v61, %v543_v36  ;;  %v740_v61 = vpop.permute.xlu1 %739 }
 0x1b4   :  { %v517_v49 = vadd.f32 %v515_v9, %v506_v4  ;;  %v518_v33 = vadd.f32 %v516_v7, %v507_v45  ;;  %v559_v4 = vmul.f32 %v558_v42, %v553_v58  ;;  %v560_v9 = vmul.f32 %v558_v42, %v554_v34  ;;  %v744_v7 = vpop.permute.xlu0 %743 }
 0x1b6   :  { %v528_v55 = vadd.f32 %v526_v5, %v517_v49  ;;  %v529_v57 = vadd.f32 %v527_v32, %v518_v33 }
 0x1b8   :  { %v539_v2 = vadd.f32 %v537_v56, %v528_v55  ;;  %v540_v27 = vadd.f32 %v538_v63, %v529_v57 }
 0x1ba   :  { %v550_v40 = vadd.f32 %v548_v8, %v539_v2  ;;  %v551_v51 = vadd.f32 %v549_v15, %v540_v27 }
 0x1bc   :  { %v561_v60 = vadd.f32 %v559_v4, %v550_v40  ;;  %v562_v10 = vadd.f32 %v560_v9, %v551_v51 }
 0x1be   :  { %2739 = vmatprep.mubr.f32.mxu1 %v561_v60 }
 0x1bf   :  { %2740 = vmatmul.mubr.f32.vlgmr.msra.gmra.mxu1 %v562_v10 }
 0x27f   :  { %v2741_v45 = vpop.f32.mrf.mxu1 }
 0x280   :  { %v735_v47 = vadd.f32 %v2741_v45, %v2706_v38 }
 0x281   :  { %v729_v48 = vpop.f32.mrf.mxu1 }
 0x282   :  { %v747_v49 = vadd.f32 %v744_v7, %v735_v47  ;;  %v730_v5 = vadd.f32 %v729_v48, %v654_v43 }
 0x284   :  { %v751_v33 = vmul.f32 0.70710677, %v747_v49  ;;  %v746_v32 = vadd.f32 %v740_v61, %v730_v5 }
 0x286   :  { %v757_v50 = vand.u32 2147483647, %v751_v33  ;;  %v750_v42 = vmul.f32 0.70710677, %v746_v32  ;;  %vm753_vm14 = vcmp.ge.f32.partialorder %v751_v33, 0.0 }
 0x288   :  { %v759_v36 = vmul.f32 0.3275911, %v757_v50  ;;  %v756_v55 = vand.u32 2147483647, %v750_v42  ;;  %v783_v0 = vsub.f32 0.0, %v757_v50  ;;  %vm752_vm15 = vcmp.ge.f32.partialorder %v750_v42, 0.0 }
 0x289   :  { %v3611_v42 = vld [vmem:[#allocation5 + $0x78] sm:$0xff] }
 0x28a   :  { %v761_v56 = vadd.f32 1.0, %v759_v36  ;;  %v758_v57 = vmul.f32 0.3275911, %v756_v55  ;;  %v782_v63 = vsub.f32 0.0, %v756_v55  ;;  %v785_v58 = vmul.f32 %v783_v0, %v757_v50  ;;  %v1050_v0 = vpop.permute.xlu1 %1049 }
 0x28b   :  { %2781 = vmatprep.mubr.msk.f32.mxu1 %vm583_vm13, %v1050_v0 }
 0x28c   :  { %3060 = vrcp.f32 %v761_v56  ;;  %v760_v1 = vadd.f32 1.0, %v758_v57  ;;  %v784_v2 = vmul.f32 %v782_v63, %v756_v55  ;;  %v788_v8 = vmul.f32 1.442695, %v785_v58 }
 0x28e   :  { %3062 = vrcp.f32 %v760_v1  ;;  %v786_v4 = vmul.f32 1.442695, %v784_v2  ;;  %v3255_v2 = vmov -1.0  }
 0x28f   :  { %3064 = vpow2.f32 %v788_v8  ;;  %v755_v8 = vsel %vm753_vm14, 1.0, %v3255_v2 }
 0x290   :  { %3066 = vpow2.f32 %v786_v4 }
 0x299   :  { %v3061_v34 = vpop.eup %3060 }
 0x29a   :  { %v765_v27 = vmul.f32 1.0614054, %v3061_v34 }
 0x29b   :  { %v3063_v15 = vpop.eup %3062 }
 0x29c   :  { %v767_v40 = vadd.f32 -1.4531521, %v765_v27  ;;  %v764_v51 = vmul.f32 1.0614054, %v3063_v15  ;;  %v3065_v55 = vpop.eup %3064 }
 0x29d   :  { %v3067_v63 = vpop.eup %3066 }
 0x29e   :  { %v769_v9 = vmul.f32 %v3061_v34, %v767_v40  ;;  %v766_v60 = vadd.f32 -1.4531521, %v764_v51  ;;  %v749_v51 = vmul.f32 0.5, %v747_v49  ;;  %v3614_v49 = vld [vmem:[#allocation5 + $0x70] sm:$0xff] }
 0x2a0   :  { %v771_v10 = vadd.f32 1.4214138, %v769_v9  ;;  %v768_v38 = vmul.f32 %v3063_v15, %v766_v60 }
 0x2a2   :  { %v773_v43 = vmul.f32 %v3061_v34, %v771_v10  ;;  %v770_v45 = vadd.f32 1.4214138, %v768_v38  ;;  %v748_v10 = vmul.f32 0.5, %v746_v32  ;;  %v3618_v32 = vld [vmem:[#allocation5 + $0x68] sm:$0xff] }
 0x2a4   :  { %v775_v7 = vadd.f32 -0.28449672, %v773_v43  ;;  %v772_v47 = vmul.f32 %v3063_v15, %v770_v45  ;;  %v3622_v43 = vld [vmem:[#allocation5 + $0x60] sm:$0xff]  ;;  %v907_v45 = vld [vmem:[#allocation8 + $0x130] sm:$0xff] }
 0x2a6   :  { %v777_v48 = vmul.f32 %v3061_v34, %v775_v7  ;;  %v774_v61 = vadd.f32 -0.28449672, %v772_v47  ;;  %v908_v7 = vld [vmem:[#allocation8 + $0x138] sm:$0xff] }
 0x2a8   :  { %v779_v5 = vadd.f32 0.2548296, %v777_v48  ;;  %v776_v50 = vmul.f32 %v3063_v15, %v774_v61 }
 0x2aa   :  { %v781_v36 = vmul.f32 %v3061_v34, %v779_v5  ;;  %v778_v56 = vadd.f32 0.2548296, %v776_v50  ;;  %v754_v34 = vsel %vm752_vm15, 1.0, %v3255_v2 }
 0x2ac   :  { %v791_v57 = vmul.f32 %v3065_v55, %v781_v36  ;;  %v780_v1 = vmul.f32 %v3063_v15, %v778_v56  ;;  %v918_v36 = vld [vmem:[#allocation8 + $0x140] sm:$0xff]  ;;  %v919_v55 = vld [vmem:[#allocation8 + $0x148] sm:$0xff] }
 0x2ae   :  { %v793_v58 = vsub.f32 1.0, %v791_v57  ;;  %v790_v27 = vmul.f32 %v3067_v63, %v780_v1 }
 0x2b0   :  { %v795_v40 = vmul.f32 %v793_v58, %v755_v8  ;;  %v792_v4 = vsub.f32 1.0, %v790_v27  ;;  %v929_v58 = vld [vmem:[#allocation8 + $0x150] sm:$0xff]  ;;  %v930_v8 = vld [vmem:[#allocation8 + $0x158] sm:$0xff] }
 0x2b2   :  { %v797_v9 = vadd.f32 1.0, %v795_v40  ;;  %v794_v60 = vmul.f32 %v792_v4, %v754_v34 }
 0x2b4   :  { %v799_v33 = vmul.f32 %v797_v9, %v749_v51  ;;  %v796_v15 = vadd.f32 1.0, %v794_v60  ;;  %v940_v60 = vld [vmem:[#allocation8 + $0x160] sm:$0xff] }
 0x2b6   :  { %2777 = vmatprep.subr.mxu1 %v799_v33  ;;  %v798_v38 = vmul.f32 %v796_v15, %v748_v10 }
 0x2b7   :  { %2778 = vmatpush3.msra.mxu1 %v799_v33 }
 0x2b8   :  { %2774 = vmatprep.mubr.f32.mxu0 %v798_v38  ;;  %2779 = vmatprep.subr.mxu1 %v798_v38 }
 0x2b9   :  { %2775 = vmatmul.mubr.f32.vlgmr.msra.gmra.mxu0 %v799_v33  ;;  %2780 = vmatpush3.msra.mxu1 %v798_v38  ;;  %v941_v33 = vld [vmem:[#allocation8 + $0x168] sm:$0xff] }
 0x2ba   :  { %2784 = vmatprep.subr.mxu1 %v3492_v11  ;;  %2820 = vmatpush3.msra.mxu0 %v3611_v42 }
 0x2bb   :  { %2821 = vmatprep.subr.mxu0 %v3614_v49 }
 0x2bc   :  { %2822 = vmatpush3.msra.mxu0 %v3614_v49 }
 0x2bd   :  { %2823 = vmatprep.subr.mxu0 %v3618_v32 }
 0x2be   :  { %2824 = vmatpush3.msra.mxu0 %v3618_v32 }
 0x2bf   :  { %2825 = vmatprep.subr.mxu0 %v3622_v43 }
 0x2c0   :  { %2826 = vmatpush3.msra.mxu0 %v3622_v43 }
 0x2c1   :  { %2827 = vmatprep.subr.mxu0 %v3362_v14 }
 0x2c2   :  { %2828 = vmatpush3.msra.mxu0 %v3362_v14  ;;  %v1052_v14 = vpop.permute.xlu1 %1051 }
 0x2c3   :  { %2829 = vmatprep.subr.mxu0 %v3368_v20  ;;  %2782 = vmatmul.mubr.msk.f32.vlgmr.msra.gmra.mxu1 %vm583_vm13, %v1052_v14 }
 0x2c4   :  { %2830 = vmatpush3.msra.mxu0 %v3368_v20  ;;  %2785 = vmatpush3.msra.mxu1 %v3492_v11  ;;  %v3969_v20 = vld [vmem:[#allocation15_spill] sm:$0xff]  ;;  %v885_v11 = vld [vmem:[#allocation8 + $0x110] sm:$0xff] }
 0x2c5   :  { %2831 = vmatprep.subr.mxu0 %v3375_v22  ;;  %2786 = vmatprep.subr.mxu1 %v3496_v12 }
 0x2c6   :  { %2832 = vmatpush3.msra.mxu0 %v3375_v22  ;;  %2787 = vmatpush3.msra.mxu1 %v3496_v12  ;;  %v3256_v22 = vmov 118   ;;  %v886_v12 = vld [vmem:[#allocation8 + $0x118] sm:$0xff] }
 0x2c7   :  { %2833 = vmatprep.subr.mxu0 %v3379_v25  ;;  %2788 = vmatprep.subr.mxu1 %v3500_v3 }
 0x2c8   :  { %2834 = vmatpush3.msra.mxu0 %v3379_v25  ;;  %2789 = vmatpush3.msra.mxu1 %v3500_v3  ;;  %v3677_v25 = vld [vmem:[#allocation9 + $0x8] sm:$0xff] }
 0x2c9   :  { %2835 = vmatprep.subr.mxu0 %v3384_v35  ;;  %2790 = vmatprep.subr.mxu1 %v3504_v13 }
 0x2ca   :  { %2836 = vmatpush3.msra.mxu0 %v3384_v35  ;;  %2791 = vmatpush3.msra.mxu1 %v3504_v13  ;;  %v3970_v35 = vld [vmem:[#allocation16_spill] sm:$0xff] }
 0x2cb   :  { %2837 = vmatprep.subr.mxu0 %v3388_v44  ;;  %2792 = vmatprep.subr.mxu1 %v3506_v16 }
 0x2cc   :  { %2838 = vmatpush3.msra.mxu0 %v3388_v44  ;;  %2793 = vmatpush3.msra.mxu1 %v3506_v16  ;;  %v3682_v44 = vld [vmem:[#allocation9] sm:$0xff] }
 0x2cd   :  { %2839 = vmatprep.subr.mxu0 %v3393_v52  ;;  %2794 = vmatprep.subr.mxu1 %v3510_v17 }
 0x2ce   :  { %2840 = vmatpush3.msra.mxu0 %v3393_v52  ;;  %2795 = vmatpush3.msra.mxu1 %v3510_v17  ;;  %v3971_v52 = vld [vmem:[#allocation17_spill] sm:$0xff]  ;;  %v896_v17 = vld [vmem:[#allocation8 + $0x120] sm:$0xff] }
 0x2cf   :  { %2841 = vmatprep.subr.mxu0 %v3401_v59  ;;  %2796 = vmatprep.subr.mxu1 %v3514_v18 }
 0x2d0   :  { %2842 = vmatpush3.msra.mxu0 %v3401_v59  ;;  %2797 = vmatpush3.msra.mxu1 %v3514_v18  ;;  %v3972_v59 = vld [vmem:[#allocation18_spill] sm:$0xff]  ;;  %v897_v18 = vld [vmem:[#allocation8 + $0x128] sm:$0xff] }
 0x2d1   :  { %2843 = vmatprep.subr.mxu0 %v3408_v6  ;;  %2798 = vmatprep.subr.mxu1 %v3518_v23 }
 0x2d2   :  { %2844 = vmatpush3.msra.mxu0 %v3408_v6  ;;  %2799 = vmatpush3.msra.mxu1 %v3518_v23 }
 0x2d3   :  { %2845 = vmatprep.subr.mxu0 %v3422_v19  ;;  %2800 = vmatprep.subr.mxu1 %v3522_v24 }
 0x2d4   :  { %2846 = vmatpush3.msra.mxu0 %v3422_v19  ;;  %2801 = vmatpush3.msra.mxu1 %v3522_v24  ;;  %v876_v19 = vld [vmem:[#allocation8 + $0x100] sm:$0xff] }
 0x2d5   :  { %2847 = vmatprep.subr.mxu0 %v3426_v21  ;;  %2802 = vmatprep.subr.mxu1 %v3526_v28 }
 0x2d6   :  { %2848 = vmatpush3.msra.mxu0 %v3426_v21  ;;  %2803 = vmatpush3.msra.mxu1 %v3526_v28 }
 0x2d7   :  { %2849 = vmatprep.subr.mxu0 %v3432_v26  ;;  %2804 = vmatprep.subr.mxu1 %v3530_v29 }
 0x2d8   :  { %2850 = vmatpush3.msra.mxu0 %v3432_v26  ;;  %2805 = vmatpush3.msra.mxu1 %v3530_v29  ;;  %v877_v26 = vld [vmem:[#allocation8 + $0x108] sm:$0xff] }
 0x2d9   :  { %2896 = vmatprep.subr.mxu0 %v3611_v42  ;;  %2806 = vmatprep.subr.mxu1 %v3534_v31 }
 0x2da   :  { %2807 = vmatpush3.msra.mxu1 %v3534_v31  ;;  %3043 = vset.pattern.permute.xlu1 %v3256_v22 }
 0x2db   :  { %2808 = vmatprep.subr.mxu1 %v3969_v20  ;;  %1212 = vperm.xlu1 %3043, %v3677_v25  }
 0x2dc   :  { %2809 = vmatpush3.msra.mxu1 %v3969_v20  ;;  %3042 = vset.pattern.permute.xlu0 %v3256_v22  ;;  %v951_v22 = vld [vmem:[#allocation8 + $0x170] sm:$0xff] }
 0x2dd   :  { %2810 = vmatprep.subr.mxu1 %v3970_v35  ;;  %1208 = vperm.xlu0 %3042, %v3682_v44  }
 0x2de   :  { %2811 = vmatpush3.msra.mxu1 %v3970_v35  ;;  %v952_v35 = vld [vmem:[#allocation8 + $0x178] sm:$0xff] }
 0x2df   :  { %2812 = vmatprep.subr.mxu1 %v3971_v52  ;;  %1518 = vrot.lane.b32.xlu1 %v3682_v44, %s3257_s28 }
 0x2e0   :  { %2813 = vmatpush3.msra.mxu1 %v3971_v52 }
 0x2e1   :  { %2814 = vmatprep.subr.mxu1 %v3972_v59  ;;  %1520 = vrot.lane.b32.xlu0 %v3677_v25, %s3257_s28 }
 0x2e2   :  { %2815 = vmatpush3.msra.mxu1 %v3972_v59 }
 0x379   :  { %v3689_v6 = vpop.f32.mrf.mxu0 }
 0x37a   :  { %v967_v20 = vrot.slane %v3689_v6, %v3451_v30 }
 0x37b   :  { %v866_v21 = vpop.f32.mrf.mxu0 }
 0x37c   :  { %v881_v3 = vrot.slane %v866_v21, %v3451_v30  ;;  %v890_v13 = vrot.slane %v866_v21, %v3561_v39  ;;  %v901_v16 = vrot.slane %v866_v21, %v3564_v41  ;;  %v912_v23 = vrot.slane %v866_v21, %v3567_v46 }
 0x37d   :  { %v923_v47 = vrot.slane %v866_v21, %v3574_v53  ;;  %v934_v56 = vrot.slane %v866_v21, %v3578_v62  ;;  %v945_v27 = vrot.slane %v866_v21, %v3582_v37  ;;  %v956_v14 = vrot.slane %v866_v21, %v3586_v54 }
 0x37e   :  { %v882_v24 = vmul.f32 %v881_v3, %v876_v19  ;;  %v883_v28 = vmul.f32 %v881_v3, %v877_v26  ;;  %v891_v29 = vmul.f32 %v890_v13, %v885_v11  ;;  %v892_v31 = vmul.f32 %v890_v13, %v886_v12  ;;  %v963_v11 = vld [vmem:[#allocation8 + $0x188] sm:$0xff]  ;;  %v962_v3 = vld [vmem:[#allocation8 + $0x180] sm:$0xff] }
 0x37f   :  { %v902_v5 = vmul.f32 %v901_v16, %v896_v17  ;;  %v903_v50 = vmul.f32 %v901_v16, %v897_v18  ;;  %v913_v0 = vmul.f32 %v912_v23, %v907_v45  ;;  %v914_v63 = vmul.f32 %v912_v23, %v908_v7  ;;  %v973_v23 = vld [vmem:[#allocation8 + $0x190] sm:$0xff]  ;;  %v984_v7 = vld [vmem:[#allocation8 + $0x1a0] sm:$0xff] }
 0x380   :  { %v893_v48 = vadd.f32 %v891_v29, %v882_v24  ;;  %v894_v61 = vadd.f32 %v892_v31, %v883_v28  ;;  %v924_v51 = vmul.f32 %v923_v47, %v918_v36  ;;  %v925_v34 = vmul.f32 %v923_v47, %v919_v55  ;;  %v974_v24 = vld [vmem:[#allocation8 + $0x198] sm:$0xff]  ;;  %v995_v55 = vld [vmem:[#allocation8 + $0x1b0] sm:$0xff] }
 0x381   :  { %v935_v9 = vmul.f32 %v934_v56, %v929_v58  ;;  %v936_v38 = vmul.f32 %v934_v56, %v930_v8  ;;  %v946_v19 = vmul.f32 %v945_v27, %v940_v60  ;;  %v947_v26 = vmul.f32 %v945_v27, %v941_v33  ;;  %v1006_v8 = vld [vmem:[#allocation8 + $0x1c0] sm:$0xff]  ;;  %v1017_v60 = vld [vmem:[#allocation8 + $0x1d0] sm:$0xff] }
 0x382   :  { %v904_v57 = vadd.f32 %v902_v5, %v893_v48  ;;  %v905_v1 = vadd.f32 %v903_v50, %v894_v61  ;;  %v978_v12 = vrot.slane %v3689_v6, %v3561_v39  ;;  %v957_v16 = vmul.f32 %v956_v14, %v951_v22  ;;  %v985_v48 = vld [vmem:[#allocation8 + $0x1a8] sm:$0xff]  ;;  %v1028_v22 = vld [vmem:[#allocation8 + $0x1e0] sm:$0xff] }
 0x383   :  { %v958_v17 = vmul.f32 %v956_v14, %v952_v35  ;;  %v989_v21 = vrot.slane %v3689_v6, %v3564_v41  ;;  %v969_v28 = vmul.f32 %v967_v20, %v963_v11  ;;  %v968_v31 = vmul.f32 %v967_v20, %v962_v3  ;;  %v1040_v3 = vld [vmem:[#allocation8 + $0x1f8] sm:$0xff] }
 0x384   :  { %v915_v40 = vadd.f32 %v913_v0, %v904_v57  ;;  %v916_v4 = vadd.f32 %v914_v63, %v905_v1  ;;  %v1000_v47 = vrot.slane %v3689_v6, %v3567_v46  ;;  %v979_v5 = vmul.f32 %v978_v12, %v973_v23  ;;  %v996_v57 = vld [vmem:[#allocation8 + $0x1b8] sm:$0xff] }
 0x385   :  { %v980_v36 = vmul.f32 %v978_v12, %v974_v24  ;;  %v1011_v56 = vrot.slane %v3689_v6, %v3574_v53  ;;  %v990_v0 = vmul.f32 %v989_v21, %v984_v7  ;;  %v991_v58 = vmul.f32 %v989_v21, %v985_v48  ;;  %v1039_v12 = vld [vmem:[#allocation8 + $0x1f0] sm:$0xff] }
 0x386   :  { %v926_v10 = vadd.f32 %v924_v51, %v915_v40  ;;  %v927_v15 = vadd.f32 %v925_v34, %v916_v4  ;;  %v1022_v27 = vrot.slane %v3689_v6, %v3578_v62  ;;  %v1007_v40 = vld [vmem:[#allocation8 + $0x1c8] sm:$0xff]  ;;  %v1001_v51 = vmul.f32 %v1000_v47, %v995_v55 }
 0x387   :  { %v1033_v33 = vrot.slane %v3689_v6, %v3582_v37  ;;  %v1013_v20 = vmul.f32 %v1011_v56, %v1007_v40  ;;  %v1044_v35 = vrot.slane %v3689_v6, %v3586_v54  ;;  %v2783_v6 = vpop.f32.mrf.mxu1 }
 0x388   :  { %v937_v52 = vadd.f32 %v935_v9, %v926_v10  ;;  %v938_v59 = vadd.f32 %v936_v38, %v927_v15  ;;  %v1002_v9 = vmul.f32 %v1000_v47, %v996_v57  ;;  %v1018_v10 = vld [vmem:[#allocation8 + $0x1d8] sm:$0xff]  ;;  %v1012_v38 = vmul.f32 %v1011_v56, %v1006_v8  ;;  %v1213_v47 = vpop.permute.xlu1 %1212 }
 0x389   :  { %v1024_v11 = vmul.f32 %v1022_v27, %v1018_v10  ;;  %v1045_v21 = vmul.f32 %v1044_v35, %v1039_v12 }
 0x38a   :  { %v949_v13 = vadd.f32 %v947_v26, %v938_v59  ;;  %v948_v18 = vadd.f32 %v946_v19, %v937_v52  ;;  %v1029_v52 = vld [vmem:[#allocation8 + $0x1e8] sm:$0xff]  ;;  %v1023_v19 = vmul.f32 %v1022_v27, %v1017_v60 }
 0x38c   :  { %v959_v29 = vadd.f32 %v957_v16, %v948_v18  ;;  %v960_v45 = vadd.f32 %v958_v17, %v949_v13  ;;  %v1034_v16 = vmul.f32 %v1033_v33, %v1028_v22  ;;  %v1035_v18 = vmul.f32 %v1033_v33, %v1029_v52 }
 0x38e   :  { %v970_v61 = vadd.f32 %v968_v31, %v959_v29  ;;  %v971_v50 = vadd.f32 %v969_v28, %v960_v45  ;;  %v1046_v28 = vmul.f32 %v1044_v35, %v1040_v3  ;;  %v1123_v45 = vpop.f32.mrf.mxu1 }
 0x390   :  { %v981_v1 = vadd.f32 %v979_v5, %v970_v61  ;;  %v982_v63 = vadd.f32 %v980_v36, %v971_v50  ;;  %v1209_v5 = vpop.permute.xlu0 %1208 }
 0x392   :  { %v992_v4 = vadd.f32 %v990_v0, %v981_v1  ;;  %v993_v34 = vadd.f32 %v991_v58, %v982_v63 }
 0x394   :  { %v1003_v15 = vadd.f32 %v1001_v51, %v992_v4  ;;  %v1004_v14 = vadd.f32 %v1002_v9, %v993_v34 }
 0x396   :  { %v1014_v59 = vadd.f32 %v1012_v38, %v1003_v15  ;;  %v1015_v26 = vadd.f32 %v1013_v20, %v1004_v14 }
 0x398   :  { %v1025_v13 = vadd.f32 %v1023_v19, %v1014_v59  ;;  %v1026_v17 = vadd.f32 %v1024_v11, %v1015_v26 }
 0x39a   :  { %v1036_v23 = vadd.f32 %v1034_v16, %v1025_v13  ;;  %v1037_v24 = vadd.f32 %v1035_v18, %v1026_v17 }
 0x39c   :  { %v1047_v29 = vadd.f32 %v1045_v21, %v1036_v23  ;;  %v1048_v31 = vadd.f32 %v1046_v28, %v1037_v24 }
 0x39e   :  { %2816 = vmatprep.mubr.f32.mxu1 %v1047_v29 }
 0x39f   :  { %2817 = vmatmul.mubr.f32.vlgmr.msra.gmra.mxu1 %v1048_v31 }
 0x45f   :  { %v2818_v7 = vpop.f32.mrf.mxu1 }
 0x460   :  { %v1204_v48 = vadd.f32 %v2818_v7, %v2783_v6 }
 0x461   :  { %v1198_v61 = vpop.f32.mrf.mxu1 }
 0x462   :  { %v1216_v50 = vadd.f32 %v1213_v47, %v1204_v48  ;;  %v1199_v36 = vadd.f32 %v1198_v61, %v1123_v45 }
 0x464   :  { %v1220_v55 = vmul.f32 0.70710677, %v1216_v50  ;;  %v1215_v56 = vadd.f32 %v1209_v5, %v1199_v36  ;;  %v1218_v47 = vmul.f32 0.5, %v1216_v50  ;;  %v3107_v50 = vld [vmem:[#allocation5 + $0x58] sm:$0xff] }
 0x466   :  { %v1226_v57 = vand.u32 2147483647, %v1220_v55  ;;  %v1219_v1 = vmul.f32 0.70710677, %v1215_v56  ;;  %vm1222_vm0 = vcmp.ge.f32.partialorder %v1220_v55, 0.0 }
 0x467   :  { %v1224_v31 = vsel %vm1222_vm0, 1.0, %v3255_v2 }
 0x468   :  { %v1228_v0 = vmul.f32 0.3275911, %v1226_v57  ;;  %v1225_v63 = vand.u32 2147483647, %v1219_v1  ;;  %v1252_v40 = vsub.f32 0.0, %v1226_v57  ;;  %vm1221_vm1 = vcmp.ge.f32.partialorder %v1219_v1, 0.0 }
 0x469   :  { %v1223_v48 = vsel %vm1221_vm1, 1.0, %v3255_v2  ;;  %v3109_v1 = vld [vmem:[#allocation5 + $0x48] sm:$0xff] }
 0x46a   :  { %v1230_v58 = vadd.f32 1.0, %v1228_v0  ;;  %v1227_v8 = vmul.f32 0.3275911, %v1225_v63  ;;  %v1251_v4 = vsub.f32 0.0, %v1225_v63  ;;  %v1254_v51 = vmul.f32 %v1252_v40, %v1226_v57  ;;  %v3117_v40 = vld [vmem:[#allocation5 + $0x8] sm:$0xff] }
 0x46b   :  { %v1217_v57 = vmul.f32 0.5, %v1215_v56  ;;  %v3108_v56 = vld [vmem:[#allocation5 + $0x50] sm:$0xff] }
 0x46c   :  { %3068 = vrcp.f32 %v1230_v58  ;;  %v1229_v27 = vadd.f32 1.0, %v1227_v8  ;;  %v1253_v9 = vmul.f32 %v1251_v4, %v1225_v63  ;;  %v1257_v60 = vmul.f32 1.442695, %v1254_v51  ;;  %v3719_v63 = vld [vmem:[#allocation6 + $0x78] sm:$0xff]  ;;  %v3113_v58 = vld [vmem:[#allocation5 + $0x28] sm:$0xff]  ;;  %v3118_v4 = vld [vmem:[#allocation5] sm:$0xff]  ;;  %v1519_v51 = vpop.permute.xlu1 %1518 }
 0x46d   :  { %v3115_v8 = vld [vmem:[#allocation5 + $0x18] sm:$0xff]  ;;  %2858 = vmatprep.mubr.msk.f32.mxu1 %vm583_vm13, %v1519_v51 }
 0x46e   :  { %3070 = vrcp.f32 %v1229_v27  ;;  %v1255_v38 = vmul.f32 1.442695, %v1253_v9  ;;  %v3116_v27 = vld [vmem:[#allocation5 + $0x10] sm:$0xff] }
 0x46f   :  { %3072 = vpow2.f32 %v1257_v60  ;;  %v3732_v9 = vld [vmem:[#allocation6 + $0x70] sm:$0xff]  ;;  %v3736_v60 = vld [vmem:[#allocation6 + $0x68] sm:$0xff] }
 0x470   :  { %3074 = vpow2.f32 %v1255_v38  ;;  %v3752_v38 = vld [vmem:[#allocation6 + $0x48] sm:$0xff] }
 0x479   :  { %v3069_v34 = vpop.eup %3068 }
 0x47a   :  { %v1234_v33 = vmul.f32 1.0614054, %v3069_v34 }
 0x47b   :  { %v3071_v10 = vpop.eup %3070 }
 0x47c   :  { %v1236_v15 = vadd.f32 -1.4531521, %v1234_v33  ;;  %v1233_v14 = vmul.f32 1.0614054, %v3071_v10  ;;  %v3073_v18 = vpop.eup %3072  ;;  %v3740_v33 = vld [vmem:[#allocation6 + $0x60] sm:$0xff] }
 0x47d   :  { %v3075_v28 = vpop.eup %3074 }
 0x47e   :  { %v1238_v20 = vmul.f32 %v3069_v34, %v1236_v15  ;;  %v1235_v22 = vadd.f32 -1.4531521, %v1233_v14  ;;  %v3748_v15 = vld [vmem:[#allocation6 + $0x50] sm:$0xff]  ;;  %v3756_v14 = vld [vmem:[#allocation6 + $0x40] sm:$0xff] }
 0x480   :  { %v1240_v35 = vadd.f32 1.4214138, %v1238_v20  ;;  %v1237_v52 = vmul.f32 %v3071_v10, %v1235_v22  ;;  %v3760_v20 = vld [vmem:[#allocation6 + $0x38] sm:$0xff]  ;;  %v3764_v22 = vld [vmem:[#allocation6 + $0x30] sm:$0xff] }
 0x482   :  { %v1242_v59 = vmul.f32 %v3069_v34, %v1240_v35  ;;  %v1239_v19 = vadd.f32 1.4214138, %v1237_v52  ;;  %v3768_v35 = vld [vmem:[#allocation6 + $0x28] sm:$0xff]  ;;  %v3772_v52 = vld [vmem:[#allocation6 + $0x20] sm:$0xff] }
 0x484   :  { %v1244_v26 = vadd.f32 -0.28449672, %v1242_v59  ;;  %v1241_v11 = vmul.f32 %v3071_v10, %v1239_v19  ;;  %v3776_v59 = vld [vmem:[#allocation6 + $0x18] sm:$0xff]  ;;  %v3258_v19 = vmov 119  }
 0x485   :  { %3045 = vset.pattern.permute.xlu0 %v3258_v19  ;;  %3044 = vset.pattern.permute.xlu1 %v3258_v19 }
 0x486   :  { %v1246_v12 = vmul.f32 %v3069_v34, %v1244_v26  ;;  %v1243_v3 = vadd.f32 -0.28449672, %v1241_v11  ;;  %1681 = vperm.xlu0 %3045, %v3677_v25   ;;  %v3781_v26 = vld [vmem:[#allocation6 + $0x10] sm:$0xff]  ;;  %1677 = vperm.xlu1 %3044, %v3682_v44   ;;  %v3786_v11 = vld [vmem:[#allocation6 + $0x8] sm:$0xff] }
 0x488   :  { %v1248_v13 = vadd.f32 0.2548296, %v1246_v12  ;;  %v1245_v16 = vmul.f32 %v3071_v10, %v1243_v3  ;;  %v3790_v12 = vld [vmem:[#allocation6] sm:$0xff] }
 0x48a   :  { %v1250_v17 = vmul.f32 %v3069_v34, %v1248_v13  ;;  %v1247_v23 = vadd.f32 0.2548296, %v1245_v16  ;;  %v1521_v34 = vpop.permute.xlu0 %1520  ;;  %v1345_v13 = vld [vmem:[#allocation8 + $0x200] sm:$0xff]  ;;  %1987 = vrot.lane.b32.xlu1 %v3682_v44, %s3259_s29 }
 0x48c   :  { %v1260_v21 = vmul.f32 %v3073_v18, %v1250_v17  ;;  %v1249_v24 = vmul.f32 %v3071_v10, %v1247_v23  ;;  %v3744_v10 = vld [vmem:[#allocation6 + $0x58] sm:$0xff]  ;;  %v1346_v17 = vld [vmem:[#allocation8 + $0x208] sm:$0xff]  ;;  %v1354_v18 = vld [vmem:[#allocation8 + $0x210] sm:$0xff] }
 0x48d   :  { %v1355_v23 = vld [vmem:[#allocation8 + $0x218] sm:$0xff] }
 0x48e   :  { %v1262_v29 = vsub.f32 1.0, %v1260_v21  ;;  %v1259_v6 = vmul.f32 %v3075_v28, %v1249_v24  ;;  %1989 = vrot.lane.b32.xlu1 %v3677_v25, %s3259_s29 }
 0x490   :  { %v1264_v45 = vmul.f32 %v1262_v29, %v1224_v31  ;;  %v1261_v7 = vsub.f32 1.0, %v1259_v6  ;;  %v1365_v29 = vld [vmem:[#allocation8 + $0x220] sm:$0xff]  ;;  %v1366_v31 = vld [vmem:[#allocation8 + $0x228] sm:$0xff] }
 0x492   :  { %v1266_v61 = vadd.f32 1.0, %v1264_v45  ;;  %v1263_v5 = vmul.f32 %v1261_v7, %v1223_v48 }
 0x494   :  { %v1268_v36 = vmul.f32 %v1266_v61, %v1218_v47  ;;  %v1265_v0 = vadd.f32 1.0, %v1263_v5  ;;  %v1376_v61 = vld [vmem:[#allocation8 + $0x230] sm:$0xff]  ;;  %v1377_v5 = vld [vmem:[#allocation8 + $0x238] sm:$0xff] }
 0x496   :  { %2854 = vmatprep.subr.mxu1 %v1268_v36  ;;  %v1267_v55 = vmul.f32 %v1265_v0, %v1217_v57 }
 0x497   :  { %2855 = vmatpush3.msra.mxu1 %v1268_v36 }
 0x498   :  { %2851 = vmatprep.mubr.f32.mxu0 %v1267_v55  ;;  %2856 = vmatprep.subr.mxu1 %v1267_v55 }
 0x499   :  { %2852 = vmatmul.mubr.f32.vlgmr.msra.gmra.mxu0 %v1268_v36  ;;  %2857 = vmatpush3.msra.mxu1 %v1267_v55 }
 0x49a   :  { %2861 = vmatprep.subr.mxu1 %v3719_v63  ;;  %2897 = vmatpush3.msra.mxu0 %v3611_v42  ;;  %v3110_v42 = vld [vmem:[#allocation5 + $0x40] sm:$0xff] }
 0x49b   :  { %2898 = vmatprep.subr.mxu0 %v3614_v49  ;;  %2859 = vmatmul.mubr.msk.f32.vlgmr.msra.gmra.mxu1 %vm583_vm13, %v1521_v34 }
 0x49c   :  { %2899 = vmatpush3.msra.mxu0 %v3614_v49  ;;  %v3111_v49 = vld [vmem:[#allocation5 + $0x38] sm:$0xff]  ;;  %2862 = vmatpush3.msra.mxu1 %v3719_v63 }
 0x49d   :  { %2900 = vmatprep.subr.mxu0 %v3618_v32  ;;  %2863 = vmatprep.subr.mxu1 %v3732_v9 }
 0x49e   :  { %2901 = vmatpush3.msra.mxu0 %v3618_v32  ;;  %v3112_v32 = vld [vmem:[#allocation5 + $0x30] sm:$0xff]  ;;  %2864 = vmatpush3.msra.mxu1 %v3732_v9 }
 0x49f   :  { %2902 = vmatprep.subr.mxu0 %v3622_v43  ;;  %2865 = vmatprep.subr.mxu1 %v3736_v60 }
 0x4a0   :  { %2903 = vmatpush3.msra.mxu0 %v3622_v43  ;;  %v3114_v43 = vld [vmem:[#allocation5 + $0x20] sm:$0xff]  ;;  %2866 = vmatpush3.msra.mxu1 %v3736_v60 }
 0x4a1   :  { %2904 = vmatprep.subr.mxu0 %v3107_v50  ;;  %2867 = vmatprep.subr.mxu1 %v3740_v33 }
 0x4a2   :  { %2905 = vmatpush3.msra.mxu0 %v3107_v50  ;;  %2868 = vmatpush3.msra.mxu1 %v3740_v33 }
 0x4a3   :  { %2906 = vmatprep.subr.mxu0 %v3108_v56  ;;  %2869 = vmatprep.subr.mxu1 %v3744_v10 }
 0x4a4   :  { %2907 = vmatpush3.msra.mxu0 %v3108_v56  ;;  %2870 = vmatpush3.msra.mxu1 %v3744_v10  ;;  %v1387_v56 = vld [vmem:[#allocation8 + $0x240] sm:$0xff] }
 0x4a5   :  { %2908 = vmatprep.subr.mxu0 %v3109_v1  ;;  %2871 = vmatprep.subr.mxu1 %v3748_v15 }
 0x4a6   :  { %2909 = vmatpush3.msra.mxu0 %v3109_v1  ;;  %2872 = vmatpush3.msra.mxu1 %v3748_v15  ;;  %v1388_v1 = vld [vmem:[#allocation8 + $0x248] sm:$0xff] }
 0x4a7   :  { %2910 = vmatprep.subr.mxu0 %v3110_v42  ;;  %2873 = vmatprep.subr.mxu1 %v3752_v38 }
 0x4a8   :  { %2911 = vmatpush3.msra.mxu0 %v3110_v42  ;;  %2874 = vmatpush3.msra.mxu1 %v3752_v38 }
 0x4a9   :  { %2912 = vmatprep.subr.mxu0 %v3111_v49  ;;  %2875 = vmatprep.subr.mxu1 %v3756_v14 }
 0x4aa   :  { %2913 = vmatpush3.msra.mxu0 %v3111_v49  ;;  %2876 = vmatpush3.msra.mxu1 %v3756_v14 }
 0x4ab   :  { %2914 = vmatprep.subr.mxu0 %v3112_v32  ;;  %2877 = vmatprep.subr.mxu1 %v3760_v20 }
 0x4ac   :  { %2915 = vmatpush3.msra.mxu0 %v3112_v32  ;;  %2878 = vmatpush3.msra.mxu1 %v3760_v20 }
 0x4ad   :  { %2916 = vmatprep.subr.mxu0 %v3113_v58  ;;  %2879 = vmatprep.subr.mxu1 %v3764_v22 }
 0x4ae   :  { %2917 = vmatpush3.msra.mxu0 %v3113_v58  ;;  %2880 = vmatpush3.msra.mxu1 %v3764_v22 }
 0x4af   :  { %2918 = vmatprep.subr.mxu0 %v3114_v43  ;;  %2881 = vmatprep.subr.mxu1 %v3768_v35 }
 0x4b0   :  { %2919 = vmatpush3.msra.mxu0 %v3114_v43  ;;  %2882 = vmatpush3.msra.mxu1 %v3768_v35 }
 0x4b1   :  { %2920 = vmatprep.subr.mxu0 %v3115_v8  ;;  %2883 = vmatprep.subr.mxu1 %v3772_v52 }
 0x4b2   :  { %2921 = vmatpush3.msra.mxu0 %v3115_v8  ;;  %2884 = vmatpush3.msra.mxu1 %v3772_v52  ;;  %v1398_v8 = vld [vmem:[#allocation8 + $0x250] sm:$0xff] }
 0x4b3   :  { %2922 = vmatprep.subr.mxu0 %v3116_v27  ;;  %2885 = vmatprep.subr.mxu1 %v3776_v59 }
 0x4b4   :  { %2923 = vmatpush3.msra.mxu0 %v3116_v27  ;;  %2886 = vmatpush3.msra.mxu1 %v3776_v59  ;;  %v1399_v27 = vld [vmem:[#allocation8 + $0x258] sm:$0xff] }
 0x4b5   :  { %2924 = vmatprep.subr.mxu0 %v3117_v40  ;;  %2887 = vmatprep.subr.mxu1 %v3781_v26 }
 0x4b6   :  { %2925 = vmatpush3.msra.mxu0 %v3117_v40  ;;  %2888 = vmatpush3.msra.mxu1 %v3781_v26 }
 0x4b7   :  { %2926 = vmatprep.subr.mxu0 %v3118_v4  ;;  %2889 = vmatprep.subr.mxu1 %v3786_v11 }
 0x4b8   :  { %2927 = vmatpush3.msra.mxu0 %v3118_v4  ;;  %2890 = vmatpush3.msra.mxu1 %v3786_v11 }
 0x4b9   :  { %2891 = vmatprep.subr.mxu1 %v3790_v12 }
 0x4ba   :  { %2892 = vmatpush3.msra.mxu1 %v3790_v12 }
 0x559   :  { %v3794_v3 = vpop.f32.mrf.mxu0 }
 0x55b   :  { %v1335_v16 = vpop.f32.mrf.mxu0 }
 0x55c   :  { %v1350_v21 = vrot.slane %v1335_v16, %v3451_v30  ;;  %v1359_v24 = vrot.slane %v1335_v16, %v3561_v39  ;;  %v1370_v28 = vrot.slane %v1335_v16, %v3564_v41  ;;  %v1381_v6 = vrot.slane %v1335_v16, %v3567_v46 }
 0x55d   :  { %v1392_v36 = vrot.slane %v1335_v16, %v3574_v53  ;;  %v1403_v42 = vrot.slane %v1335_v16, %v3578_v62  ;;  %v1414_v40 = vrot.slane %v1335_v16, %v3582_v37 }
 0x55e   :  { %v1351_v45 = vmul.f32 %v1350_v21, %v1345_v13  ;;  %v1352_v7 = vmul.f32 %v1350_v21, %v1346_v17  ;;  %v1360_v47 = vmul.f32 %v1359_v24, %v1354_v18  ;;  %v1361_v48 = vmul.f32 %v1359_v24, %v1355_v23  ;;  %v1409_v17 = vld [vmem:[#allocation8 + $0x260] sm:$0xff]  ;;  %v1410_v18 = vld [vmem:[#allocation8 + $0x268] sm:$0xff] }
 0x55f   :  { %v1371_v55 = vmul.f32 %v1370_v28, %v1365_v29  ;;  %v1372_v50 = vmul.f32 %v1370_v28, %v1366_v31  ;;  %v1382_v58 = vmul.f32 %v1381_v6, %v1376_v61  ;;  %v1383_v43 = vmul.f32 %v1381_v6, %v1377_v5  ;;  %v1420_v31 = vld [vmem:[#allocation8 + $0x270] sm:$0xff]  ;;  %v1421_v6 = vld [vmem:[#allocation8 + $0x278] sm:$0xff]  ;;  %v1432_v61 = vld [vmem:[#allocation8 + $0x288] sm:$0xff] }
 0x560   :  { %v1362_v57 = vadd.f32 %v1360_v47, %v1351_v45  ;;  %v1363_v0 = vadd.f32 %v1361_v48, %v1352_v7  ;;  %v1393_v34 = vmul.f32 %v1392_v36, %v1387_v56  ;;  %v1394_v19 = vmul.f32 %v1392_v36, %v1388_v1  ;;  %v1431_v36 = vld [vmem:[#allocation8 + $0x280] sm:$0xff]  ;;  %v1442_v56 = vld [vmem:[#allocation8 + $0x290] sm:$0xff]  ;;  %v1443_v1 = vld [vmem:[#allocation8 + $0x298] sm:$0xff] }
 0x561   :  { %v1404_v13 = vmul.f32 %v1403_v42, %v1398_v8  ;;  %v1405_v24 = vmul.f32 %v1403_v42, %v1399_v27  ;;  %v1425_v28 = vrot.slane %v1335_v16, %v3586_v54  ;;  %v1436_v29 = vrot.slane %v3794_v3, %v3451_v30  ;;  %v1454_v27 = vld [vmem:[#allocation8 + $0x2a8] sm:$0xff] }
 0x562   :  { %v1373_v49 = vadd.f32 %v1371_v55, %v1362_v57  ;;  %v1374_v32 = vadd.f32 %v1372_v50, %v1363_v0  ;;  %v1415_v47 = vmul.f32 %v1414_v40, %v1409_v17  ;;  %v1416_v48 = vmul.f32 %v1414_v40, %v1410_v18  ;;  %v1465_v17 = vld [vmem:[#allocation8 + $0x2b8] sm:$0xff] }
 0x563   :  { %v1447_v5 = vrot.slane %v3794_v3, %v3561_v39  ;;  %v1426_v0 = vmul.f32 %v1425_v28, %v1420_v31  ;;  %v1427_v55 = vmul.f32 %v1425_v28, %v1421_v6  ;;  %v1458_v16 = vrot.slane %v3794_v3, %v3564_v41  ;;  %v1475_v28 = vld [vmem:[#allocation8 + $0x2c0] sm:$0xff]  ;;  %v1476_v31 = vld [vmem:[#allocation8 + $0x2c8] sm:$0xff] }
 0x564   :  { %v1384_v4 = vadd.f32 %v1382_v58, %v1373_v49  ;;  %v1385_v51 = vadd.f32 %v1383_v43, %v1374_v32  ;;  %v1438_v42 = vmul.f32 %v1436_v29, %v1432_v61  ;;  %v1437_v32 = vmul.f32 %v1436_v29, %v1431_v36  ;;  %v1453_v43 = vld [vmem:[#allocation8 + $0x2a0] sm:$0xff] }
 0x565   :  { %v1469_v8 = vrot.slane %v3794_v3, %v3567_v46  ;;  %v1491_v29 = vrot.slane %v3794_v3, %v3578_v62  ;;  %v1502_v61 = vrot.slane %v3794_v3, %v3582_v37 }
 0x566   :  { %v1395_v23 = vadd.f32 %v1393_v34, %v1384_v4  ;;  %v1396_v21 = vadd.f32 %v1394_v19, %v1385_v51  ;;  %v1448_v4 = vmul.f32 %v1447_v5, %v1442_v56  ;;  %v1449_v34 = vmul.f32 %v1447_v5, %v1443_v1  ;;  %v1464_v19 = vld [vmem:[#allocation8 + $0x2b0] sm:$0xff]  ;;  %v1487_v5 = vld [vmem:[#allocation8 + $0x2d8] sm:$0xff] }
 0x567   :  { %v1513_v56 = vrot.slane %v3794_v3, %v3586_v54 }
 0x568   :  { %v1406_v45 = vadd.f32 %v1404_v13, %v1395_v23  ;;  %v1407_v7 = vadd.f32 %v1405_v24, %v1396_v21  ;;  %v1480_v13 = vrot.slane %v3794_v3, %v3574_v53  ;;  %v1459_v23 = vmul.f32 %v1458_v16, %v1453_v43  ;;  %v1509_v43 = vld [vmem:[#allocation8 + $0x2f8] sm:$0xff]  ;;  %v2860_v3 = vpop.f32.mrf.mxu1 }
 0x569   :  { %v1460_v24 = vmul.f32 %v1458_v16, %v1454_v27  ;;  %v1498_v16 = vld [vmem:[#allocation8 + $0x2e8] sm:$0xff] }
 0x56a   :  { %v1418_v57 = vadd.f32 %v1416_v48, %v1407_v7  ;;  %v1417_v50 = vadd.f32 %v1415_v47, %v1406_v45  ;;  %v1470_v45 = vmul.f32 %v1469_v8, %v1464_v19  ;;  %v1471_v47 = vmul.f32 %v1469_v8, %v1465_v17  ;;  %v1486_v48 = vld [vmem:[#allocation8 + $0x2d0] sm:$0xff] }
 0x56b   :  { %v1515_v17 = vmul.f32 %v1513_v56, %v1509_v43 }
 0x56c   :  { %v1428_v49 = vadd.f32 %v1426_v0, %v1417_v50  ;;  %v1429_v58 = vadd.f32 %v1427_v55, %v1418_v57  ;;  %v1481_v57 = vmul.f32 %v1480_v13, %v1475_v28  ;;  %v1482_v55 = vmul.f32 %v1480_v13, %v1476_v31  ;;  %v1497_v50 = vld [vmem:[#allocation8 + $0x2e0] sm:$0xff]  ;;  %v1678_v31 = vpop.permute.xlu1 %1677 }
 0x56d   :  { %v1503_v27 = vmul.f32 %v1502_v61, %v1497_v50 }
 0x56e   :  { %v1439_v40 = vadd.f32 %v1437_v32, %v1428_v49  ;;  %v1440_v51 = vadd.f32 %v1438_v42, %v1429_v58  ;;  %v1492_v42 = vmul.f32 %v1491_v29, %v1486_v48  ;;  %v1493_v32 = vmul.f32 %v1491_v29, %v1487_v5  ;;  %v1508_v58 = vld [vmem:[#allocation8 + $0x2f0] sm:$0xff] }
 0x570   :  { %v1450_v18 = vadd.f32 %v1448_v4, %v1439_v40  ;;  %v1451_v21 = vadd.f32 %v1449_v34, %v1440_v51  ;;  %v1504_v4 = vmul.f32 %v1502_v61, %v1498_v16  ;;  %v1514_v34 = vmul.f32 %v1513_v56, %v1508_v58 }
 0x572   :  { %v1461_v6 = vadd.f32 %v1459_v23, %v1450_v18  ;;  %v1462_v7 = vadd.f32 %v1460_v24, %v1451_v21  ;;  %v1592_v23 = vpop.f32.mrf.mxu1  ;;  %v1682_v24 = vpop.permute.xlu0 %1681 }
 0x574   :  { %v1472_v36 = vadd.f32 %v1470_v45, %v1461_v6  ;;  %v1473_v0 = vadd.f32 %v1471_v47, %v1462_v7 }
 0x576   :  { %v1483_v1 = vadd.f32 %v1481_v57, %v1472_v36  ;;  %v1484_v49 = vadd.f32 %v1482_v55, %v1473_v0 }
 0x578   :  { %v1494_v8 = vadd.f32 %v1492_v42, %v1483_v1  ;;  %v1495_v40 = vadd.f32 %v1493_v32, %v1484_v49 }
 0x57a   :  { %v1505_v51 = vadd.f32 %v1503_v27, %v1494_v8  ;;  %v1506_v19 = vadd.f32 %v1504_v4, %v1495_v40 }
 0x57c   :  { %v1516_v13 = vadd.f32 %v1514_v34, %v1505_v51  ;;  %v1517_v18 = vadd.f32 %v1515_v17, %v1506_v19 }
 0x57e   :  { %2893 = vmatprep.mubr.f32.mxu1 %v1516_v13 }
 0x57f   :  { %2894 = vmatmul.mubr.f32.vlgmr.msra.gmra.mxu1 %v1517_v18 }
 0x63f   :  { %v2895_v21 = vpop.f32.mrf.mxu1 }
 0x640   :  { %v1673_v28 = vadd.f32 %v2895_v21, %v2860_v3 }
 0x641   :  { %v1667_v29 = vpop.f32.mrf.mxu1 }
 0x642   :  { %v1685_v6 = vadd.f32 %v1682_v24, %v1673_v28  ;;  %v1668_v45 = vadd.f32 %v1667_v29, %v1592_v23 }
 0x644   :  { %v1689_v7 = vmul.f32 0.70710677, %v1685_v6  ;;  %v1684_v47 = vadd.f32 %v1678_v31, %v1668_v45 }
 0x646   :  { %v1695_v48 = vand.u32 2147483647, %v1689_v7  ;;  %v1688_v61 = vmul.f32 0.70710677, %v1684_v47  ;;  %vm1691_vm2 = vcmp.ge.f32.partialorder %v1689_v7, 0.0  ;;  %v1686_v7 = vmul.f32 0.5, %v1684_v47 }
 0x648   :  { %v1697_v5 = vmul.f32 0.3275911, %v1695_v48  ;;  %v1694_v36 = vand.u32 2147483647, %v1688_v61  ;;  %v1721_v50 = vsub.f32 0.0, %v1695_v48  ;;  %vm1690_vm3 = vcmp.ge.f32.partialorder %v1688_v61, 0.0 }
 0x64a   :  { %v1699_v57 = vadd.f32 1.0, %v1697_v5  ;;  %v1696_v0 = vmul.f32 0.3275911, %v1694_v36  ;;  %v1720_v56 = vsub.f32 0.0, %v1694_v36  ;;  %v1723_v16 = vmul.f32 %v1721_v50, %v1695_v48  ;;  %v1988_v5 = vpop.permute.xlu1 %1987 }
 0x64b   :  { %2935 = vmatprep.mubr.msk.f32.mxu1 %vm583_vm13, %v1988_v5 }
 0x64c   :  { %3076 = vrcp.f32 %v1699_v57  ;;  %v1698_v55 = vadd.f32 1.0, %v1696_v0  ;;  %v1722_v42 = vmul.f32 %v1720_v56, %v1694_v36  ;;  %v1726_v49 = vmul.f32 1.442695, %v1723_v16 }
 0x64d   :  { %v1693_v0 = vsel %vm1691_vm2, 1.0, %v3255_v2  ;;  %v1687_v16 = vmul.f32 0.5, %v1685_v6 }
 0x64e   :  { %3078 = vrcp.f32 %v1698_v55  ;;  %v1724_v8 = vmul.f32 1.442695, %v1722_v42  ;;  %v1692_v42 = vsel %vm1690_vm3, 1.0, %v3255_v2  ;;  %v1990_v61 = vpop.permute.xlu1 %1989 }
 0x64f   :  { %3080 = vpow2.f32 %v1726_v49 }
 0x650   :  { %3082 = vpow2.f32 %v1724_v8 }
 0x659   :  { %v3077_v1 = vpop.eup %3076 }
 0x65a   :  { %v1703_v32 = vmul.f32 1.0614054, %v3077_v1 }
 0x65b   :  { %v3079_v58 = vpop.eup %3078 }
 0x65c   :  { %v1705_v43 = vadd.f32 -1.4531521, %v1703_v32  ;;  %v1702_v27 = vmul.f32 1.0614054, %v3079_v58  ;;  %v3081_v29 = vpop.eup %3080 }
 0x65d   :  { %v3083_v36 = vpop.eup %3082 }
 0x65e   :  { %v1707_v40 = vmul.f32 %v3077_v1, %v1705_v43  ;;  %v1704_v4 = vadd.f32 -1.4531521, %v1702_v27  ;;  %v1845_v27 = vld [vmem:[#allocation8 + $0x330] sm:$0xff] }
 0x660   :  { %v1709_v51 = vadd.f32 1.4214138, %v1707_v40  ;;  %v1706_v34 = vmul.f32 %v3079_v58, %v1704_v4  ;;  %v1846_v40 = vld [vmem:[#allocation8 + $0x338] sm:$0xff] }
 0x662   :  { %v1711_v19 = vmul.f32 %v3077_v1, %v1709_v51  ;;  %v1708_v17 = vadd.f32 1.4214138, %v1706_v34 }
 0x664   :  { %v1713_v13 = vadd.f32 -0.28449672, %v1711_v19  ;;  %v1710_v18 = vmul.f32 %v3079_v58, %v1708_v17 }
 0x666   :  { %v1715_v3 = vmul.f32 %v3077_v1, %v1713_v13  ;;  %v1712_v23 = vadd.f32 -0.28449672, %v1710_v18  ;;  %v1856_v13 = vld [vmem:[#allocation8 + $0x340] sm:$0xff]  ;;  %v1857_v18 = vld [vmem:[#allocation8 + $0x348] sm:$0xff] }
 0x668   :  { %v1717_v21 = vadd.f32 0.2548296, %v1715_v3  ;;  %v1714_v24 = vmul.f32 %v3079_v58, %v1712_v23 }
 0x66a   :  { %v1719_v28 = vmul.f32 %v3077_v1, %v1717_v21  ;;  %v1716_v31 = vadd.f32 0.2548296, %v1714_v24 }
 0x66c   :  { %v1729_v45 = vmul.f32 %v3081_v29, %v1719_v28  ;;  %v1718_v48 = vmul.f32 %v3079_v58, %v1716_v31  ;;  %v1867_v29 = vld [vmem:[#allocation8 + $0x350] sm:$0xff]  ;;  %v1868_v31 = vld [vmem:[#allocation8 + $0x358] sm:$0xff] }
 0x66e   :  { %v1731_v57 = vsub.f32 1.0, %v1729_v45  ;;  %v1728_v55 = vmul.f32 %v3083_v36, %v1718_v48 }
 0x670   :  { %v1733_v50 = vmul.f32 %v1731_v57, %v1693_v0  ;;  %v1730_v56 = vsub.f32 1.0, %v1728_v55  ;;  %v1878_v55 = vld [vmem:[#allocation8 + $0x360] sm:$0xff] }
 0x672   :  { %v1735_v1 = vadd.f32 1.0, %v1733_v50  ;;  %v1732_v49 = vmul.f32 %v1730_v56, %v1692_v42  ;;  %v1879_v50 = vld [vmem:[#allocation8 + $0x368] sm:$0xff] }
 0x674   :  { %v1737_v32 = vmul.f32 %v1735_v1, %v1687_v16  ;;  %v1734_v43 = vadd.f32 1.0, %v1732_v49 }
 0x676   :  { %2931 = vmatprep.subr.mxu1 %v1737_v32  ;;  %v1736_v58 = vmul.f32 %v1734_v43, %v1686_v7  ;;  %v1890_v7 = vld [vmem:[#allocation8 + $0x378] sm:$0xff] }
 0x677   :  { %2932 = vmatpush3.msra.mxu1 %v1737_v32 }
 0x678   :  { %2928 = vmatprep.mubr.f32.mxu0 %v1736_v58  ;;  %2933 = vmatprep.subr.mxu1 %v1736_v58 }
 0x679   :  { %2929 = vmatmul.mubr.f32.vlgmr.msra.gmra.mxu0 %v1737_v32  ;;  %2934 = vmatpush3.msra.mxu1 %v1736_v58  ;;  %v1889_v32 = vld [vmem:[#allocation8 + $0x370] sm:$0xff] }
 0x67a   :  { %2938 = vmatprep.subr.mxu1 %v3719_v63  ;;  %2936 = vmatmul.mubr.msk.f32.vlgmr.msra.gmra.mxu1 %vm583_vm13, %v1990_v61 }
 0x67b   :  { %2939 = vmatpush3.msra.mxu1 %v3719_v63  ;;  %v3260_v63 = vmov 120  }
 0x67c   :  { %2940 = vmatprep.subr.mxu1 %v3732_v9  ;;  %3046 = vset.pattern.permute.xlu0 %v3260_v63 }
 0x67d   :  { %2941 = vmatpush3.msra.mxu1 %v3732_v9  ;;  %3047 = vset.pattern.permute.xlu1 %v3260_v63  ;;  %v3856_v9 = vld [vmem:[#allocation9 + $0x8] sm:$0xff] }
 0x67e   :  { %2942 = vmatprep.subr.mxu1 %v3736_v60  ;;  %2150 = vperm.xlu0 %3046, %v3677_v25   ;;  %v3866_v25 = vld [vmem:[#allocation9 + $0x18] sm:$0xff] }
 0x67f   :  { %2943 = vmatpush3.msra.mxu1 %v3736_v60  ;;  %2146 = vperm.xlu1 %3047, %v3682_v44   ;;  %v3859_v60 = vld [vmem:[#allocation9] sm:$0xff]  ;;  %v3868_v44 = vld [vmem:[#allocation9 + $0x10] sm:$0xff] }
 0x680   :  { %2944 = vmatprep.subr.mxu1 %v3740_v33 }
 0x681   :  { %2945 = vmatpush3.msra.mxu1 %v3740_v33 }
 0x682   :  { %2946 = vmatprep.subr.mxu1 %v3744_v10  ;;  %2181 = vrot.lane.b32.xlu0 %v3856_v9, %s3261_s30 }
 0x683   :  { %2947 = vmatpush3.msra.mxu1 %v3744_v10  ;;  %2179 = vrot.lane.b32.xlu1 %v3859_v60, %s3261_s30  ;;  %v1814_v10 = vld [vmem:[#allocation8 + $0x300] sm:$0xff] }
 0x684   :  { %2948 = vmatprep.subr.mxu1 %v3748_v15 }
 0x685   :  { %2949 = vmatpush3.msra.mxu1 %v3748_v15 }
 0x686   :  { %2950 = vmatprep.subr.mxu1 %v3752_v38  ;;  %2185 = vrot.lane.b32.xlu0 %v3866_v25, %s3261_s30 }
 0x687   :  { %2951 = vmatpush3.msra.mxu1 %v3752_v38  ;;  %2183 = vrot.lane.b32.xlu1 %v3868_v44, %s3261_s30  ;;  %v1815_v38 = vld [vmem:[#allocation8 + $0x308] sm:$0xff] }
 0x688   :  { %2952 = vmatprep.subr.mxu1 %v3756_v14 }
 0x689   :  { %2953 = vmatpush3.msra.mxu1 %v3756_v14  ;;  %v1823_v14 = vld [vmem:[#allocation8 + $0x310] sm:$0xff] }
 0x68a   :  { %2954 = vmatprep.subr.mxu1 %v3760_v20 }
 0x68b   :  { %2955 = vmatpush3.msra.mxu1 %v3760_v20  ;;  %v1824_v20 = vld [vmem:[#allocation8 + $0x318] sm:$0xff] }
 0x68c   :  { %2956 = vmatprep.subr.mxu1 %v3764_v22 }
 0x68d   :  { %2957 = vmatpush3.msra.mxu1 %v3764_v22 }
 0x68e   :  { %2958 = vmatprep.subr.mxu1 %v3768_v35 }
 0x68f   :  { %2959 = vmatpush3.msra.mxu1 %v3768_v35 }
 0x690   :  { %2960 = vmatprep.subr.mxu1 %v3772_v52 }
 0x691   :  { %2961 = vmatpush3.msra.mxu1 %v3772_v52 }
 0x692   :  { %2962 = vmatprep.subr.mxu1 %v3776_v59 }
 0x693   :  { %2963 = vmatpush3.msra.mxu1 %v3776_v59  ;;  %v1834_v59 = vld [vmem:[#allocation8 + $0x320] sm:$0xff] }
 0x694   :  { %2964 = vmatprep.subr.mxu1 %v3781_v26 }
 0x695   :  { %2965 = vmatpush3.msra.mxu1 %v3781_v26  ;;  %v1835_v26 = vld [vmem:[#allocation8 + $0x328] sm:$0xff] }
 0x696   :  { %2966 = vmatprep.subr.mxu1 %v3786_v11 }
 0x697   :  { %2967 = vmatpush3.msra.mxu1 %v3786_v11 }
 0x698   :  { %2968 = vmatprep.subr.mxu1 %v3790_v12 }
 0x699   :  { %2969 = vmatpush3.msra.mxu1 %v3790_v12 }
 0x739   :  { %v3872_v33 = vpop.f32.mrf.mxu0 }
 0x73a   :  { %v1905_v49 = vrot.slane %v3872_v33, %v3451_v30 }
 0x73b   :  { %v1804_v15 = vpop.f32.mrf.mxu0 }
 0x73c   :  { %v1819_v22 = vrot.slane %v1804_v15, %v3451_v30  ;;  %v1828_v35 = vrot.slane %v1804_v15, %v3561_v39  ;;  %v1839_v52 = vrot.slane %v1804_v15, %v3564_v41  ;;  %v1850_v11 = vrot.slane %v1804_v15, %v3567_v46  ;;  %v1912_v30 = vld [vmem:[#allocation8 + $0x398] sm:$0xff] }
 0x73d   :  { %v1861_v4 = vrot.slane %v1804_v15, %v3574_v53  ;;  %v1872_v3 = vrot.slane %v1804_v15, %v3578_v62  ;;  %v1883_v45 = vrot.slane %v1804_v15, %v3582_v37  ;;  %v1894_v1 = vrot.slane %v1804_v15, %v3586_v54 }
 0x73e   :  { %v1820_v12 = vmul.f32 %v1819_v22, %v1814_v10  ;;  %v1821_v6 = vmul.f32 %v1819_v22, %v1815_v38  ;;  %v1829_v47 = vmul.f32 %v1828_v35, %v1823_v14  ;;  %v1830_v8 = vmul.f32 %v1828_v35, %v1824_v20  ;;  %v1901_v10 = vld [vmem:[#allocation8 + $0x388] sm:$0xff]  ;;  %v1900_v14 = vld [vmem:[#allocation8 + $0x380] sm:$0xff] }
 0x73f   :  { %v1840_v19 = vmul.f32 %v1839_v52, %v1834_v59  ;;  %v1841_v17 = vmul.f32 %v1839_v52, %v1835_v26  ;;  %v1851_v24 = vmul.f32 %v1850_v11, %v1845_v27  ;;  %v1852_v28 = vmul.f32 %v1850_v11, %v1846_v40  ;;  %v1911_v59 = vld [vmem:[#allocation8 + $0x390] sm:$0xff]  ;;  %v1923_v27 = vld [vmem:[#allocation8 + $0x3a8] sm:$0xff] }
 0x740   :  { %v1831_v51 = vadd.f32 %v1829_v47, %v1820_v12  ;;  %v1832_v34 = vadd.f32 %v1830_v8, %v1821_v6  ;;  %v1862_v36 = vmul.f32 %v1861_v4, %v1856_v13  ;;  %v1863_v57 = vmul.f32 %v1861_v4, %v1857_v18  ;;  %v1922_v47 = vld [vmem:[#allocation8 + $0x3a0] sm:$0xff] }
 0x741   :  { %v1873_v0 = vmul.f32 %v1872_v3, %v1867_v29  ;;  %v1874_v42 = vmul.f32 %v1872_v3, %v1868_v31  ;;  %v1884_v61 = vmul.f32 %v1883_v45, %v1878_v55  ;;  %v1885_v63 = vmul.f32 %v1883_v45, %v1879_v50  ;;  %v1955_v45 = vld [vmem:[#allocation8 + $0x3d0] sm:$0xff]  ;;  %v1966_v55 = vld [vmem:[#allocation8 + $0x3e0] sm:$0xff] }
 0x742   :  { %v1842_v23 = vadd.f32 %v1840_v19, %v1831_v51  ;;  %v1843_v21 = vadd.f32 %v1841_v17, %v1832_v34  ;;  %v1916_v38 = vrot.slane %v3872_v33, %v3561_v39  ;;  %v1895_v22 = vmul.f32 %v1894_v1, %v1889_v32  ;;  %v1933_v34 = vld [vmem:[#allocation8 + $0x3b0] sm:$0xff]  ;;  %v1934_v17 = vld [vmem:[#allocation8 + $0x3b8] sm:$0xff] }
 0x743   :  { %v1896_v35 = vmul.f32 %v1894_v1, %v1890_v7  ;;  %v1927_v15 = vrot.slane %v3872_v33, %v3564_v41  ;;  %v1907_v26 = vmul.f32 %v1905_v49, %v1901_v10  ;;  %v1906_v12 = vmul.f32 %v1905_v49, %v1900_v14  ;;  %v1977_v49 = vld [vmem:[#allocation8 + $0x3f0] sm:$0xff]  ;;  %v1978_v32 = vld [vmem:[#allocation8 + $0x3f8] sm:$0xff] }
 0x744   :  { %v1853_v48 = vadd.f32 %v1851_v24, %v1842_v23  ;;  %v1854_v5 = vadd.f32 %v1852_v28, %v1843_v21  ;;  %v1938_v8 = vrot.slane %v3872_v33, %v3567_v46  ;;  %v1917_v40 = vmul.f32 %v1916_v38, %v1911_v59  ;;  %v1944_v23 = vld [vmem:[#allocation8 + $0x3c0] sm:$0xff]  ;;  %v1945_v24 = vld [vmem:[#allocation8 + $0x3c8] sm:$0xff] }
 0x745   :  { %v1918_v51 = vmul.f32 %v1916_v38, %v1912_v30  ;;  %v1949_v19 = vrot.slane %v3872_v33, %v3574_v53  ;;  %v1928_v13 = vmul.f32 %v1927_v15, %v1922_v47  ;;  %v1929_v3 = vmul.f32 %v1927_v15, %v1923_v27  ;;  %v2151_v30 = vpop.permute.xlu0 %2150 }
 0x746   :  { %v1864_v56 = vadd.f32 %v1862_v36, %v1853_v48  ;;  %v1865_v16 = vadd.f32 %v1863_v57, %v1854_v5  ;;  %v1960_v21 = vrot.slane %v3872_v33, %v3578_v62  ;;  %v1939_v28 = vmul.f32 %v1938_v8, %v1933_v34  ;;  %v1956_v5 = vld [vmem:[#allocation8 + $0x3d8] sm:$0xff] }
 0x747   :  { %v1940_v31 = vmul.f32 %v1938_v8, %v1934_v17  ;;  %v1971_v48 = vrot.slane %v3872_v33, %v3582_v37  ;;  %v1950_v36 = vmul.f32 %v1949_v19, %v1944_v23  ;;  %v1982_v50 = vrot.slane %v3872_v33, %v3586_v54  ;;  %v2147_v54 = vpop.permute.xlu1 %2146 }
 0x748   :  { %v1875_v43 = vadd.f32 %v1873_v0, %v1864_v56  ;;  %v1876_v58 = vadd.f32 %v1874_v42, %v1865_v16  ;;  %v1951_v0 = vmul.f32 %v1949_v19, %v1945_v24  ;;  %v1967_v56 = vld [vmem:[#allocation8 + $0x3e8] sm:$0xff]  ;;  %v1961_v16 = vmul.f32 %v1960_v21, %v1955_v45 }
 0x749   :  { %v1962_v1 = vmul.f32 %v1960_v21, %v1956_v5  ;;  %v1973_v37 = vmul.f32 %v1971_v48, %v1967_v56  ;;  %v1984_v38 = vmul.f32 %v1982_v50, %v1978_v32  ;;  %v2182_v47 = vpop.permute.xlu0 %2181 }
 0x74a   :  { %v1887_v20 = vadd.f32 %v1885_v63, %v1876_v58  ;;  %v1886_v52 = vadd.f32 %v1884_v61, %v1875_v43  ;;  %v1972_v43 = vmul.f32 %v1971_v48, %v1966_v55  ;;  %v1983_v63 = vmul.f32 %v1982_v50, %v1977_v49 }
 0x74b   :  { %v2180_v33 = vpop.permute.xlu1 %2179 }
 0x74c   :  { %v1897_v11 = vadd.f32 %v1895_v22, %v1886_v52  ;;  %v1898_v6 = vadd.f32 %v1896_v35, %v1887_v20  ;;  %2977 = vmatprep.mubr.msk.f32.mxu0 %vm583_vm13, %v2180_v33  ;;  %v3262_v22 = vmov 121   ;;  %v2384_v35 = vld [vmem:[#allocation9] sm:$0x3]  ;;  %v2937_v52 = vpop.f32.mrf.mxu1 }
 0x74d   :  { %3048 = vset.pattern.permute.xlu1 %v3262_v22  ;;  %3049 = vset.pattern.permute.xlu0 %v3262_v22 }
 0x74e   :  { %v1908_v39 = vadd.f32 %v1906_v12, %v1897_v11  ;;  %v1909_v4 = vadd.f32 %v1907_v26, %v1898_v6  ;;  %2176 = vperm.xlu1 %3048, %v3866_v25   ;;  %2171 = vperm.xlu0 %3049, %v3868_v44   ;;  %v2061_v59 = vpop.f32.mrf.mxu1  ;;  %v3266_v44 = vmov 122  }
 0x74f   :  { %v2184_v25 = vpop.permute.xlu1 %2183 }
 0x750   :  { %v1919_v41 = vadd.f32 %v1917_v40, %v1908_v39  ;;  %v1920_v18 = vadd.f32 %v1918_v51, %v1909_v4 }
 0x752   :  { %v1930_v46 = vadd.f32 %v1928_v13, %v1919_v41  ;;  %v1931_v29 = vadd.f32 %v1929_v3, %v1920_v18  ;;  %2166 = vperm.xlu1 %3048, %v3856_v9   ;;  %2390 = vrot.lane.b32.xlu0 %v2384_v35, %s3263_s0  ;;  %v2186_v9 = vpop.permute.xlu0 %2185 }
 0x753   :  { %3051 = vset.pattern.permute.xlu0 %v3266_v44 }
 0x754   :  { %v1941_v53 = vadd.f32 %v1939_v28, %v1930_v46  ;;  %v1942_v57 = vadd.f32 %v1940_v31, %v1931_v29 }
 0x756   :  { %v1952_v62 = vadd.f32 %v1950_v36, %v1941_v53  ;;  %v1953_v42 = vadd.f32 %v1951_v0, %v1942_v57  ;;  %2161 = vperm.xlu1 %3048, %v3859_v60   ;;  %v3264_v60 = vmov 0.0  }
 0x758   :  { %v1963_v7 = vadd.f32 %v1961_v16, %v1952_v62  ;;  %v1964_v58 = vadd.f32 %v1962_v1, %v1953_v42 }
 0x75a   :  { %v1974_v61 = vadd.f32 %v1972_v43, %v1963_v7  ;;  %v1975_v10 = vadd.f32 %v1973_v37, %v1964_v58  ;;  %3050 = vset.pattern.permute.xlu1 %v3266_v44 }
 0x75b   :  { %2387 = vperm.xlu1 %3050, %v2384_v35  }
 0x75c   :  { %v1985_v14 = vadd.f32 %v1983_v63, %v1974_v61  ;;  %v1986_v20 = vadd.f32 %v1984_v38, %v1975_v10 }
 0x75e   :  { %2970 = vmatprep.mubr.f32.mxu1 %v1985_v14 }
 0x75f   :  { %2971 = vmatmul.mubr.f32.vlgmr.msra.gmra.mxu1 %v1986_v20 }
 0x7c9   :  { %v2177_v27 = vpop.permute.xlu1 %2176  ;;  %v2172_v3 = vpop.permute.xlu0 %2171 }
 0x7cd   :  { %v2167_v39 = vpop.permute.xlu1 %2166 }
 0x7d1   :  { %v2162_v4 = vpop.permute.xlu1 %2161 }
 0x81f   :  { %v2972_v15 = vpop.f32.mrf.mxu1 }
 0x820   :  { %v2142_v26 = vadd.f32 %v2972_v15, %v2937_v52 }
 0x821   :  { %v2136_v11 = vpop.f32.mrf.mxu1 }
 0x822   :  { %v2154_v12 = vadd.f32 %v2151_v30, %v2142_v26  ;;  %v2137_v6 = vadd.f32 %v2136_v11, %v2061_v59 }
 0x824   :  { %v2153_v8 = vadd.f32 %v2147_v54, %v2137_v6  ;;  %2973 = vmatprep.subr.mxu0 %v2154_v12 }
 0x825   :  { %2974 = vmatpush3.msra.mxu0 %v2154_v12 }
 0x826   :  { %2975 = vmatprep.subr.mxu0 %v2153_v8 }
 0x827   :  { %2976 = vmatpush3.msra.mxu0 %v2153_v8 }
 0x828   :  { %2978 = vmatmul.mubr.msk.f32.vlgmr.msra.gmra.mxu0 %vm583_vm13, %v2182_v47  ;;  %2983 = vmatprep.subr.mxu0 %v3264_v60 }
 0x829   :  { %2980 = vmatprep.mubr.msk.f32.mxu0 %vm583_vm13, %v2184_v25 }
 0x82c   :  { %2981 = vmatmul.mubr.msk.f32.gmra.mxu0 %vm583_vm13, %v2186_v9 }
 0x82d   :  { %2991 = vmatprep.mubr.msk.f32.mxu0 %vm3265_vm4, %v3264_v60 }
 0x8e8   :  { %v2979_v40 = vpop.f32.mrf.mxu0 }
 0x8e9   :  { %v3908_v51 = vadd.f32 %v2979_v40, %v2167_v39 }
 0x8ea   :  { %v2261_v34 = vpop.f32.mrf.mxu0 }
 0x8eb   :  { %v3911_v19 = vmul.f32 0.70710677, %v3908_v51  ;;  %v3913_v17 = vadd.f32 %v2261_v34, %v2162_v4 }
 0x8ec   :  { %v2982_v41 = vpop.f32.mrf.mxu0 }
 0x8ed   :  { %v2297_v13 = vand.u32 2147483647, %v3911_v19  ;;  %v3917_v18 = vmul.f32 0.70710677, %v3913_v17  ;;  %v3919_v23 = vadd.f32 %v2982_v41, %v2177_v27  ;;  %vm2289_vm6 = vcmp.ge.f32.partialorder %v3911_v19, 0.0 }
 0x8ee   :  { %v2271_v21 = vpop.f32.mrf.mxu0 }
 0x8ef   :  { %v2301_v24 = vmul.f32 0.3275911, %v2297_v13  ;;  %v2296_v46 = vand.u32 2147483647, %v3917_v18  ;;  %v3923_v28 = vmul.f32 0.70710677, %v3919_v23  ;;  %v3925_v29 = vadd.f32 %v2271_v21, %v2172_v3 }
 0x8f0   :  { %v2349_v56 = vsub.f32 0.0, %v2297_v13  ;;  %vm2288_vm7 = vcmp.ge.f32.partialorder %v3917_v18, 0.0  ;;  %v2283_v19 = vmul.f32 0.5, %v3919_v23  ;;  %v2280_v23 = vmul.f32 0.5, %v3913_v17 }
 0x8f1   :  { %v2305_v31 = vadd.f32 1.0, %v2301_v24  ;;  %v2300_v45 = vmul.f32 0.3275911, %v2296_v46  ;;  %v2299_v48 = vand.u32 2147483647, %v3923_v28  ;;  %v2348_v62 = vsub.f32 0.0, %v2296_v46 }
 0x8f2   :  { %v3929_v5 = vmul.f32 0.70710677, %v3925_v29  ;;  %v2353_v42 = vmul.f32 %v2349_v56, %v2297_v13  ;;  %vm2291_vm5 = vcmp.ge.f32.partialorder %v3923_v28, 0.0 }
 0x8f3   :  { %3084 = vrcp.f32 %v2305_v31  ;;  %v2304_v53 = vadd.f32 1.0, %v2300_v45  ;;  %v2303_v36 = vmul.f32 0.3275911, %v2299_v48  ;;  %v2351_v16 = vsub.f32 0.0, %v2299_v48 }
 0x8f4   :  { %v2298_v57 = vand.u32 2147483647, %v3929_v5  ;;  %v2352_v32 = vmul.f32 %v2348_v62, %v2296_v46  ;;  %v2358_v61 = vmul.f32 1.442695, %v2353_v42  ;;  %vm2290_vm8 = vcmp.ge.f32.partialorder %v3929_v5, 0.0 }
 0x8f5   :  { %3086 = vrcp.f32 %v2304_v53  ;;  %v2307_v0 = vadd.f32 1.0, %v2303_v36  ;;  %v2355_v43 = vmul.f32 %v2351_v16, %v2299_v48 }
 0x8f6   :  { %v2302_v55 = vmul.f32 0.3275911, %v2298_v57  ;;  %v2350_v7 = vsub.f32 0.0, %v2298_v57  ;;  %v2356_v14 = vmul.f32 1.442695, %v2352_v32 }
 0x8f7   :  { %3088 = vrcp.f32 %v2307_v0  ;;  %v2362_v22 = vmul.f32 1.442695, %v2355_v43  ;;  %v2295_v43 = vsel %vm2291_vm5, 1.0, %v3255_v2 }
 0x8f8   :  { %v2306_v50 = vadd.f32 1.0, %v2302_v55  ;;  %v2354_v20 = vmul.f32 %v2350_v7, %v2298_v57 }
 0x8fa   :  { %3090 = vrcp.f32 %v2306_v50  ;;  %v2360_v11 = vmul.f32 1.442695, %v2354_v20 }
 0x8fb   :  { %3092 = vpow2.f32 %v2358_v61 }
 0x8fc   :  { %3094 = vpow2.f32 %v2356_v14  ;;  %v2294_v14 = vsel %vm2290_vm8, 1.0, %v3255_v2 }
 0x8fd   :  { %3096 = vpow2.f32 %v2362_v22  ;;  %v2282_v22 = vmul.f32 0.5, %v3925_v29  ;;  %v2388_v29 = vpop.permute.xlu1 %2387 }
 0x8fe   :  { %3098 = vpow2.f32 %v2360_v11 }
 0x900   :  { %v3085_v1 = vpop.eup %3084 }
 0x901   :  { %v2313_v49 = vmul.f32 1.0614054, %v3085_v1 }
 0x902   :  { %v3087_v58 = vpop.eup %3086 }
 0x903   :  { %v2317_v37 = vadd.f32 -1.4531521, %v2313_v49  ;;  %v2312_v63 = vmul.f32 1.0614054, %v3087_v58 }
 0x904   :  { %v3089_v10 = vpop.eup %3088 }
 0x905   :  { %v2321_v38 = vmul.f32 %v3085_v1, %v2317_v37  ;;  %v2316_v54 = vadd.f32 -1.4531521, %v2312_v63  ;;  %v2315_v33 = vmul.f32 1.0614054, %v3089_v10  ;;  %v2293_v37 = vsel %vm2289_vm6, 1.0, %v3255_v2 }
 0x907   :  { %v2325_v35 = vadd.f32 1.4214138, %v2321_v38  ;;  %v3091_v52 = vpop.eup %3090  ;;  %v2320_v59 = vmul.f32 %v3087_v58, %v2316_v54  ;;  %v2319_v15 = vadd.f32 -1.4531521, %v2315_v33 }
 0x908   :  { %v2314_v26 = vmul.f32 1.0614054, %v3091_v52  ;;  %v3093_v45 = vpop.eup %3092 }
 0x909   :  { %v2329_v30 = vmul.f32 %v3085_v1, %v2325_v35  ;;  %v2324_v12 = vadd.f32 1.4214138, %v2320_v59  ;;  %v2323_v6 = vmul.f32 %v3089_v10, %v2319_v15  ;;  %v3095_v0 = vpop.eup %3094  ;;  %v2281_v35 = vmul.f32 0.5, %v3908_v51 }
 0x90a   :  { %v2318_v8 = vadd.f32 -1.4531521, %v2314_v26  ;;  %v3097_v50 = vpop.eup %3096 }
 0x90b   :  { %v2333_v47 = vadd.f32 -0.28449672, %v2329_v30  ;;  %v2328_v25 = vmul.f32 %v3087_v58, %v2324_v12  ;;  %v2327_v9 = vadd.f32 1.4214138, %v2323_v6  ;;  %v3099_v49 = vpop.eup %3098  ;;  %v2391_v30 = vpop.permute.xlu0 %2390 }
 0x90c   :  { %v2322_v27 = vmul.f32 %v3091_v52, %v2318_v8 }
 0x90d   :  { %v2337_v44 = vmul.f32 %v3085_v1, %v2333_v47  ;;  %v2332_v39 = vadd.f32 -0.28449672, %v2328_v25  ;;  %v2331_v40 = vmul.f32 %v3089_v10, %v2327_v9 }
 0x90e   :  { %v2326_v34 = vadd.f32 1.4214138, %v2322_v27 }
 0x90f   :  { %v2341_v4 = vadd.f32 0.2548296, %v2337_v44  ;;  %v2336_v41 = vmul.f32 %v3087_v58, %v2332_v39  ;;  %v2335_v13 = vadd.f32 -0.28449672, %v2331_v40 }
 0x910   :  { %v2330_v21 = vmul.f32 %v3091_v52, %v2326_v34 }
 0x911   :  { %v2345_v3 = vmul.f32 %v3085_v1, %v2341_v4  ;;  %v2340_v24 = vadd.f32 0.2548296, %v2336_v41  ;;  %v2339_v46 = vmul.f32 %v3089_v10, %v2335_v13 }
 0x912   :  { %v2334_v31 = vadd.f32 -0.28449672, %v2330_v21 }
 0x913   :  { %v2344_v48 = vmul.f32 %v3087_v58, %v2340_v24  ;;  %v2343_v53 = vadd.f32 0.2548296, %v2339_v46  ;;  %v2365_v36 = vmul.f32 %v3093_v45, %v2345_v3 }
 0x914   :  { %v2338_v57 = vmul.f32 %v3091_v52, %v2334_v31 }
 0x915   :  { %v2347_v55 = vmul.f32 %v3089_v10, %v2343_v53  ;;  %v2364_v56 = vmul.f32 %v3095_v0, %v2344_v48  ;;  %v2369_v42 = vsub.f32 1.0, %v2365_v36  ;;  %v2292_v10 = vsel %vm2288_vm7, 1.0, %v3255_v2 }
 0x916   :  { %v2342_v62 = vadd.f32 0.2548296, %v2338_v57 }
 0x917   :  { %v2367_v16 = vmul.f32 %v3097_v50, %v2347_v55  ;;  %v2368_v7 = vsub.f32 1.0, %v2364_v56  ;;  %v2373_v63 = vmul.f32 %v2369_v42, %v2293_v37 }
 0x918   :  { %v2346_v1 = vmul.f32 %v3091_v52, %v2342_v62 }
 0x919   :  { %v2371_v32 = vsub.f32 1.0, %v2367_v16  ;;  %v2372_v18 = vmul.f32 %v2368_v7, %v2292_v10  ;;  %v2377_v33 = vadd.f32 1.0, %v2373_v63 }
 0x91a   :  { %v2366_v58 = vmul.f32 %v3099_v49, %v2346_v1 }
 0x91b   :  { %v2375_v61 = vmul.f32 %v2371_v32, %v2295_v43  ;;  %v2376_v52 = vadd.f32 1.0, %v2372_v18  ;;  %v2381_v15 = vmul.f32 %v2377_v33, %v2281_v35 }
 0x91c   :  { %v2370_v28 = vsub.f32 1.0, %v2366_v58 }
 0x91d   :  { %v2379_v38 = vadd.f32 1.0, %v2375_v61  ;;  %v2380_v2 = vmul.f32 %v2376_v52, %v2280_v23 }
 0x91e   :  { %v2374_v20 = vmul.f32 %v2370_v28, %v2294_v14 }
 0x91f   :  { %v2383_v54 = vmul.f32 %v2379_v38, %v2283_v19 }
 0x920   :  { %v2378_v5 = vadd.f32 1.0, %v2374_v20 }
 0x921   :  { %2984 = vmatpush3.msra.mxu0 %v2383_v54 }
 0x922   :  { %v2382_v59 = vmul.f32 %v2378_v5, %v2282_v22  ;;  %2985 = vmatprep.subr.mxu0 %v3264_v60 }
 0x924   :  { %2986 = vmatpush3.msra.mxu0 %v2382_v59 }
 0x925   :  { %2987 = vmatprep.subr.mxu0 %v3264_v60 }
 0x926   :  { %2988 = vmatpush3.msra.mxu0 %v2381_v15 }
 0x927   :  { %2989 = vmatprep.subr.mxu0 %v3264_v60 }
 0x928   :  { %2990 = vmatpush3.msra.mxu0 %v2380_v2 }
 0x929   :  { %2992 = vmatmul.mubr.msk.f32.vlgmr.msra.gmra.mxu0 %vm2392_vm9, %v2391_v30 }
 0x9e9   :  { %v2461_v51 = vpop.f32.mrf.mxu0 }
 0x9ea   :  { %v2462_v26 = vadd.f32 %v2461_v51, %v2388_v29 }
 0x9eb   :  { %v2993_v11 = vpop.f32.mrf.mxu0 }
 0x9ec   :  { %2465 = vst [vmem:[%s3956_s6] sm:$0x3] %v2462_v26 }
 0x9ed   :  { %2470 = vsyncpa [#allocation3], 1 }
 0x9ee   :  { %2471 = vsyncpa [#allocation7], 1 }
 0x9ef   :  { %2472 = vsyncpa [#allocation10], 1 }
 0x9f0   :  { %2473 = vsyncpa [#allocation4], 1 }

</bundles_post_ra>
